<compile_context>
chip_gen: v7x
topology: tpu7x:2x2x1
jax: 0.10.0
libtpu: 0.0.40
codegen_flags: <defaults>
</compile_context>

<pallas_src>
import jax
import jax.numpy as jnp
from jax.experimental import pallas as pl
from jax.experimental.pallas import tpu as pltpu

IN_FEATURES = 100 * 100 * 3          # 30000
H1, H2, H3, OUT = 256, 64, 32, 3
K_TILE = 10240                       # K reduction tile (multiple of 128)
K_PAD = pl.cdiv(IN_FEATURES, K_TILE) * K_TILE   # 30720 -> 3 grid steps


def _mlp_kernel(x_ref, w1_ref, b1_ref, w2_ref, b2_ref, w3_ref, b3_ref,
                w4_ref, b4_ref, out_ref, acc_ref):
    """Grid axis 0 reduces over the (padded) input-feature dim of the first
    Linear; the tiny layers 2-4 run on the final reduction step."""
    k = pl.program_id(0)

    @pl.when(k == 0)
    def _():
        acc_ref[...] = jnp.zeros_like(acc_ref)

    # x is resident in VMEM as one (B, K_PAD) bf16 block; slice current K tile.
    start = pl.multiple_of(k * K_TILE, 128)
    x_tile = x_ref[:, pl.ds(start, K_TILE)]

    # Hot path: (B, K_TILE) bf16 @ (K_TILE, 256) bf16 -> f32 accumulation.
    acc_ref[...] += jnp.dot(x_tile, w1_ref[...],
                            preferred_element_type=jnp.float32)

    @pl.when(k == pl.num_programs(0) - 1)
    def _():
        h1 = jnp.maximum(acc_ref[...] + b1_ref[...], 0.0)
        h2 = jnp.maximum(
            jnp.dot(h1, w2_ref[...], preferred_element_type=jnp.float32)
            + b2_ref[...], 0.0)
        h3 = jnp.maximum(
            jnp.dot(h2, w3_ref[...], preferred_element_type=jnp.float32)
            + b3_ref[...], 0.0)
        logits = (jnp.dot(h3, w4_ref[...], preferred_element_type=jnp.float32)
                  + b4_ref[...])
        out_ref[...] = logits.astype(out_ref.dtype)


@jax.jit
def nn_forward(x, kparams):
    """x: (B, 3, 100, 100) float32.  kparams: prepare_kernel_params(params).
    Returns logits (B, 3) float32."""
    w1, b1, w2, b2, w3, b3, w4, b4 = (
        kparams["w1"], kparams["b1"], kparams["w2"], kparams["b2"],
        kparams["w3"], kparams["b3"], kparams["w4"], kparams["b4"])

    B = x.shape[0]
    # nn.Flatten on NCHW -> (B, C*H*W), channel-major.
    x_flat = x.reshape(B, -1)
    # Per-call prep on the tiny activation only: zero-pad K and cast to bf16
    # (halves both the resident x footprint and its DMA).
    x_flat = jnp.pad(x_flat, ((0, 0), (0, K_PAD - IN_FEATURES)))
    x_flat = x_flat.astype(jnp.bfloat16)

    grid = (K_PAD // K_TILE,)

    bytes_accessed = (
        2 * (B * K_PAD + K_PAD * H1)                       # bf16 x + W1
        + 4 * (H1 * H2 + H2 * H3 + H3 * OUT
               + H1 + H2 + H3 + OUT + B * OUT))            # f32 small tensors
    flops = 2 * B * (K_PAD * H1 + H1 * H2 + H2 * H3 + H3 * OUT)

    return pl.pallas_call(
        _mlp_kernel,
        out_shape=jax.ShapeDtypeStruct((B, OUT), jnp.float32),
        grid_spec=pltpu.PrefetchScalarGridSpec(
            num_scalar_prefetch=0,
            grid=grid,
            in_specs=[
                # x: single resident VMEM block, sliced in-kernel with pl.ds.
                pl.BlockSpec((B, K_PAD), lambda k: (0, 0)),
                # W1 (bf16): streamed K-tile by K-tile (the only big traffic).
                pl.BlockSpec((K_TILE, H1), lambda k: (k, 0)),
                pl.BlockSpec((1, H1), lambda k: (0, 0)),         # b1
                pl.BlockSpec((H1, H2), lambda k: (0, 0)),        # W2
                pl.BlockSpec((1, H2), lambda k: (0, 0)),         # b2
                pl.BlockSpec((H2, H3), lambda k: (0, 0)),        # W3
                pl.BlockSpec((1, H3), lambda k: (0, 0)),         # b3
                pl.BlockSpec((H3, OUT), lambda k: (0, 0)),       # W4
                pl.BlockSpec((1, OUT), lambda k: (0, 0)),        # b4
            ],
            out_specs=pl.BlockSpec((B, OUT), lambda k: (0, 0)),
            scratch_shapes=[pltpu.VMEM((B, H1), jnp.float32)],
        ),
        compiler_params=pltpu.CompilerParams(
            dimension_semantics=("arbitrary",),      # K is a reduction axis
            vmem_limit_bytes=32 * 1024 * 1024),      # >= v5e's 16 MiB default
        cost_estimate=pl.CostEstimate(
            flops=flops, transcendentals=0, bytes_accessed=bytes_accessed),
    )(x_flat, w1, b1, w2, b2, w3, b3, w4, b4)


def init_params(key):
    """Deterministic init (uniform +-1/sqrt(fan_in), like torch default)."""
    def linear(k, fan_in, fan_out):
        kw, kb = jax.random.split(k)
        bound = 1.0 / jnp.sqrt(fan_in)
        w = jax.random.uniform(kw, (fan_in, fan_out), jnp.float32,
                               -bound, bound)
        b = jax.random.uniform(kb, (1, fan_out), jnp.float32, -bound, bound)
        return w, b

    k1, k2, k3, k4 = jax.random.split(key, 4)
    w1, b1 = linear(k1, IN_FEATURES, H1)
    w2, b2 = linear(k2, H1, H2)
    w3, b3 = linear(k3, H2, H3)
    w4, b4 = linear(k4, H3, OUT)
    return dict(w1=w1, b1=b1, w2=w2, b2=b2, w3=w3, b3=b3, w4=w4, b4=b4)


def prepare_kernel_params(params):
    """One-time prep: zero-pad W1's input dim to K_PAD and cast to bf16 so the
    per-call HBM stream of the dominant weight matrix is halved."""
    kparams = dict(params)
    kparams["w1"] = jnp.pad(
        params["w1"], ((0, K_PAD - IN_FEATURES), (0, 0))).astype(jnp.bfloat16)
    return kparams


def _reference(x, p, bf16_layer1=False):
    h = x.reshape(x.shape[0], -1)
    if bf16_layer1:
        h1 = jnp.dot(h.astype(jnp.bfloat16), p["w1"].astype(jnp.bfloat16),
                     preferred_element_type=jnp.float32)
    else:
        h1 = h @ p["w1"]
    h = jnp.maximum(h1 + p["b1"], 0.0)
    h = jnp.maximum(h @ p["w2"] + p["b2"], 0.0)
    h = jnp.maximum(h @ p["w3"] + p["b3"], 0.0)
    return h @ p["w4"] + p["b4"]


if __name__ == "__main__":
    key = jax.random.PRNGKey(0)
    kx, kp = jax.random.split(key)
    # Module hard-codes 100*100*3 input features -> (B, 3, 100, 100) NCHW.
    x = jax.random.normal(kx, (2, 3, 100, 100), jnp.float32)
    params = init_params(kp)
    kernel_params = prepare_kernel_params(params)   # one-time W1 pad + bf16

    logits = nn_forward(x, kernel_params)
    jax.block_until_ready(logits)
    assert logits.shape == (2, 3)

    # Strict check vs. a reference using the same bf16 layer-1 quantization
    # (isolates kernel correctness from the deliberate precision choice).
    ref_bf16 = _reference(x, params, bf16_layer1=True)
    assert jnp.allclose(logits, ref_bf16, atol=2e-3, rtol=2e-3)

    # Looser check vs. the full-f32 PyTorch-equivalent forward pass.
    ref_f32 = _reference(x, params, bf16_layer1=False)
    assert jnp.allclose(logits, ref_f32, atol=5e-2, rtol=5e-2)

    print("KERNEL_OK")
</pallas_src>

<mosaic_0001>
module attributes {stable_mosaic.version = 11 : i64} {
  func.func @_mlp_kernel(%arg0: i32, %arg1: memref<2x30720xbf16, #tpu.memory_space<vmem>>, %arg2: memref<10240x256xbf16, #tpu.memory_space<vmem>>, %arg3: memref<1x256xf32, #tpu.memory_space<vmem>>, %arg4: memref<256x64xf32, #tpu.memory_space<vmem>>, %arg5: memref<1x64xf32, #tpu.memory_space<vmem>>, %arg6: memref<64x32xf32, #tpu.memory_space<vmem>>, %arg7: memref<1x32xf32, #tpu.memory_space<vmem>>, %arg8: memref<32x3xf32, #tpu.memory_space<vmem>>, %arg9: memref<1x3xf32, #tpu.memory_space<vmem>>, %arg10: memref<2x3xf32, #tpu.memory_space<vmem>>, %arg11: memref<2x256xf32, #tpu.memory_space<vmem>>) attributes {dimension_semantics = [#tpu.dimension_semantics<arbitrary>], iteration_bounds = array<i64: 3>, scalar_prefetch = 0 : i64, scratch_operands = 1 : i64, tpu.core_type = #tpu.core_type<tc>, window_params = [{pipeline_mode = #tpu.pipeline_mode<synchronous>, transform_indices = @transform_0, window_bounds = array<i64: 2, 30720>}, {transform_indices = @transform_1, window_bounds = array<i64: 10240, 256>}, {pipeline_mode = #tpu.pipeline_mode<synchronous>, transform_indices = @transform_2, window_bounds = array<i64: 1, 256>}, {pipeline_mode = #tpu.pipeline_mode<synchronous>, transform_indices = @transform_3, window_bounds = array<i64: 256, 64>}, {pipeline_mode = #tpu.pipeline_mode<synchronous>, transform_indices = @transform_4, window_bounds = array<i64: 1, 64>}, {pipeline_mode = #tpu.pipeline_mode<synchronous>, transform_indices = @transform_5, window_bounds = array<i64: 64, 32>}, {pipeline_mode = #tpu.pipeline_mode<synchronous>, transform_indices = @transform_6, window_bounds = array<i64: 1, 32>}, {pipeline_mode = #tpu.pipeline_mode<synchronous>, transform_indices = @transform_7, window_bounds = array<i64: 32, 3>}, {pipeline_mode = #tpu.pipeline_mode<synchronous>, transform_indices = @transform_8, window_bounds = array<i64: 1, 3>}, {pipeline_mode = #tpu.pipeline_mode<synchronous>, transform_indices = @transform_9, window_bounds = array<i64: 2, 3>}]} {
    %c0_i32 = arith.constant 0 : i32
    %0 = arith.cmpi eq, %arg0, %c0_i32 : i32
    %1 = arith.extui %0 : i1 to i32
    %c0_i32_0 = arith.constant 0 : i32
    %2 = arith.cmpi ne, %1, %c0_i32_0 : i32
    scf.if %2 {
      %cst_8 = arith.constant 0.000000e+00 : f32
      %15 = vector.broadcast %cst_8 : f32 to vector<2x256xf32>
      %c0_9 = arith.constant 0 : index
      %c0_10 = arith.constant 0 : index
      %16 = vector.load %arg11[%c0_9, %c0_10] : memref<2x256xf32, #tpu.memory_space<vmem>>, vector<2x256xf32>
      tpu.vector_store %arg11[%c0_9, %c0_10], %15 {strides = array<i32>} : memref<2x256xf32, #tpu.memory_space<vmem>>, vector<2x256xf32>,
    } else {
    }
    %c10240_i32 = arith.constant 10240 : i32
    %3 = arith.muli %arg0, %c10240_i32 : i32
    %4 = tpu.assume_multiple %3, 128 : i32
    %c0 = arith.constant 0 : index
    %5 = arith.index_cast %4 : i32 to index
    %6 = vector.load %arg1[%c0, %5] : memref<2x30720xbf16, #tpu.memory_space<vmem>>, vector<2x10240xbf16>
    %c0_1 = arith.constant 0 : index
    %c0_2 = arith.constant 0 : index
    %7 = vector.load %arg11[%c0_1, %c0_2] : memref<2x256xf32, #tpu.memory_space<vmem>>, vector<2x256xf32>
    %c0_3 = arith.constant 0 : index
    %c0_4 = arith.constant 0 : index
    %8 = vector.load %arg2[%c0_3, %c0_4] : memref<10240x256xbf16, #tpu.memory_space<vmem>>, vector<10240x256xbf16>
    %cst = arith.constant dense<0.000000e+00> : vector<2x256xf32>
    %9 = tpu.matmul %6, %8, %cst {dimension_numbers = #tpu.dot_dimension_numbers<[1], [0], [0], [1], [0, 0, 1, 1], [], []>} : vector<2x10240xbf16>, vector<10240x256xbf16>, vector<2x256xf32> -> vector<2x256xf32>
    %10 = arith.addf %7, %9 : vector<2x256xf32>
    %c0_5 = arith.constant 0 : index
    %c0_6 = arith.constant 0 : index
    %11 = vector.load %arg11[%c0_5, %c0_6] : memref<2x256xf32, #tpu.memory_space<vmem>>, vector<2x256xf32>
    tpu.vector_store %arg11[%c0_5, %c0_6], %10 {strides = array<i32>} : memref<2x256xf32, #tpu.memory_space<vmem>>, vector<2x256xf32>,
    %c2_i32 = arith.constant 2 : i32
    %12 = arith.cmpi eq, %arg0, %c2_i32 : i32
    %13 = arith.extui %12 : i1 to i32
    %c0_i32_7 = arith.constant 0 : i32
    %14 = arith.cmpi ne, %13, %c0_i32_7 : i32
    scf.if %14 {
      %c0_8 = arith.constant 0 : index
      %c0_9 = arith.constant 0 : index
      %15 = vector.load %arg11[%c0_8, %c0_9] : memref<2x256xf32, #tpu.memory_space<vmem>>, vector<2x256xf32>
      %c0_10 = arith.constant 0 : index
      %c0_11 = arith.constant 0 : index
      %16 = vector.load %arg3[%c0_10, %c0_11] : memref<1x256xf32, #tpu.memory_space<vmem>>, vector<1x256xf32>
      %17 = vector.broadcast %16 : vector<1x256xf32> to vector<2x256xf32>
      %18 = arith.addf %15, %17 : vector<2x256xf32>
      %cst_12 = arith.constant 0.000000e+00 : f32
      %19 = vector.broadcast %cst_12 : f32 to vector<2x256xf32>
      %20 = arith.maximumf %18, %19 : vector<2x256xf32>
      %c0_13 = arith.constant 0 : index
      %c0_14 = arith.constant 0 : index
      %21 = vector.load %arg4[%c0_13, %c0_14] : memref<256x64xf32, #tpu.memory_space<vmem>>, vector<256x64xf32>
      %cst_15 = arith.constant dense<0.000000e+00> : vector<2x64xf32>
      %22 = tpu.matmul %20, %21, %cst_15 {dimension_numbers = #tpu.dot_dimension_numbers<[1], [0], [0], [1], [0, 0, 1, 1], [], []>} : vector<2x256xf32>, vector<256x64xf32>, vector<2x64xf32> -> vector<2x64xf32>
      %c0_16 = arith.constant 0 : index
      %c0_17 = arith.constant 0 : index
      %23 = vector.load %arg5[%c0_16, %c0_17] : memref<1x64xf32, #tpu.memory_space<vmem>>, vector<1x64xf32>
      %24 = vector.broadcast %23 : vector<1x64xf32> to vector<2x64xf32>
      %25 = arith.addf %22, %24 : vector<2x64xf32>
      %cst_18 = arith.constant 0.000000e+00 : f32
      %26 = vector.broadcast %cst_18 : f32 to vector<2x64xf32>
      %27 = arith.maximumf %25, %26 : vector<2x64xf32>
      %c0_19 = arith.constant 0 : index
      %c0_20 = arith.constant 0 : index
      %28 = vector.load %arg6[%c0_19, %c0_20] : memref<64x32xf32, #tpu.memory_space<vmem>>, vector<64x32xf32>
      %cst_21 = arith.constant dense<0.000000e+00> : vector<2x32xf32>
      %29 = tpu.matmul %27, %28, %cst_21 {dimension_numbers = #tpu.dot_dimension_numbers<[1], [0], [0], [1], [0, 0, 1, 1], [], []>} : vector<2x64xf32>, vector<64x32xf32>, vector<2x32xf32> -> vector<2x32xf32>
      %c0_22 = arith.constant 0 : index
      %c0_23 = arith.constant 0 : index
      %30 = vector.load %arg7[%c0_22, %c0_23] : memref<1x32xf32, #tpu.memory_space<vmem>>, vector<1x32xf32>
      %31 = vector.broadcast %30 : vector<1x32xf32> to vector<2x32xf32>
      %32 = arith.addf %29, %31 : vector<2x32xf32>
      %cst_24 = arith.constant 0.000000e+00 : f32
      %33 = vector.broadcast %cst_24 : f32 to vector<2x32xf32>
      %34 = arith.maximumf %32, %33 : vector<2x32xf32>
      %c0_25 = arith.constant 0 : index
      %c0_26 = arith.constant 0 : index
      %35 = vector.load %arg8[%c0_25, %c0_26] : memref<32x3xf32, #tpu.memory_space<vmem>>, vector<32x3xf32>
      %cst_27 = arith.constant dense<0.000000e+00> : vector<2x3xf32>
      %36 = tpu.matmul %34, %35, %cst_27 {dimension_numbers = #tpu.dot_dimension_numbers<[1], [0], [0], [1], [0, 0, 1, 1], [], []>} : vector<2x32xf32>, vector<32x3xf32>, vector<2x3xf32> -> vector<2x3xf32>
      %c0_28 = arith.constant 0 : index
      %c0_29 = arith.constant 0 : index
      %37 = vector.load %arg9[%c0_28, %c0_29] : memref<1x3xf32, #tpu.memory_space<vmem>>, vector<1x3xf32>
      %38 = vector.broadcast %37 : vector<1x3xf32> to vector<2x3xf32>
      %39 = arith.addf %36, %38 : vector<2x3xf32>
      %c0_30 = arith.constant 0 : index
      %c0_31 = arith.constant 0 : index
      %40 = vector.load %arg10[%c0_30, %c0_31] : memref<2x3xf32, #tpu.memory_space<vmem>>, vector<2x3xf32>
      tpu.vector_store %arg10[%c0_30, %c0_31], %39 {strides = array<i32>} : memref<2x3xf32, #tpu.memory_space<vmem>>, vector<2x3xf32>,
    } else {
    }
    return
  }
  func.func @transform_0(%arg0: i32) -> (i32, i32) {
    %c0_i32 = arith.constant 0 : i32
    %c0_i32_0 = arith.constant 0 : i32
    %c0_i32_1 = arith.constant 0 : i32
    return %c0_i32, %c0_i32_0 : i32, i32
  }
  func.func @transform_1(%arg0: i32) -> (i32, i32) {
    %c0_i32 = arith.constant 0 : i32
    %c0_i32_0 = arith.constant 0 : i32
    return %arg0, %c0_i32 : i32, i32
  }
  func.func @transform_2(%arg0: i32) -> (i32, i32) {
    %c0_i32 = arith.constant 0 : i32
    %c0_i32_0 = arith.constant 0 : i32
    %c0_i32_1 = arith.constant 0 : i32
    return %c0_i32, %c0_i32_0 : i32, i32
  }
  func.func @transform_3(%arg0: i32) -> (i32, i32) {
    %c0_i32 = arith.constant 0 : i32
    %c0_i32_0 = arith.constant 0 : i32
    %c0_i32_1 = arith.constant 0 : i32
    return %c0_i32, %c0_i32_0 : i32, i32
  }
  func.func @transform_4(%arg0: i32) -> (i32, i32) {
    %c0_i32 = arith.constant 0 : i32
    %c0_i32_0 = arith.constant 0 : i32
    %c0_i32_1 = arith.constant 0 : i32
    return %c0_i32, %c0_i32_0 : i32, i32
  }
  func.func @transform_5(%arg0: i32) -> (i32, i32) {
    %c0_i32 = arith.constant 0 : i32
    %c0_i32_0 = arith.constant 0 : i32
    %c0_i32_1 = arith.constant 0 : i32
    return %c0_i32, %c0_i32_0 : i32, i32
  }
  func.func @transform_6(%arg0: i32) -> (i32, i32) {
    %c0_i32 = arith.constant 0 : i32
    %c0_i32_0 = arith.constant 0 : i32
    %c0_i32_1 = arith.constant 0 : i32
    return %c0_i32, %c0_i32_0 : i32, i32
  }
  func.func @transform_7(%arg0: i32) -> (i32, i32) {
    %c0_i32 = arith.constant 0 : i32
    %c0_i32_0 = arith.constant 0 : i32
    %c0_i32_1 = arith.constant 0 : i32
    return %c0_i32, %c0_i32_0 : i32, i32
  }
  func.func @transform_8(%arg0: i32) -> (i32, i32) {
    %c0_i32 = arith.constant 0 : i32
    %c0_i32_0 = arith.constant 0 : i32
    %c0_i32_1 = arith.constant 0 : i32
    return %c0_i32, %c0_i32_0 : i32, i32
  }
  func.func @transform_9(%arg0: i32) -> (i32, i32) {
    %c0_i32 = arith.constant 0 : i32
    %c0_i32_0 = arith.constant 0 : i32
    %c0_i32_1 = arith.constant 0 : i32
    return %c0_i32, %c0_i32_0 : i32, i32
  }
}

</mosaic_0001>

<bundles_post_ra>
// kernel: nn_forward.1
= control target key start
LH: loop header
LB: loop body
LE: loop exit
PB: predicated region body
PF: predicated region fallthrough
CT: control target
= control target key end

     0   :  { %14 = vsyncpa [#allocation4], 0  ;;  %s16715_s0 = inlined_call_operand.vmem [shape: bf16[2,30720], index: 0, kind: input, shape index: {}]   ;;  %s16716_s1 = inlined_call_operand.hbm [shape: bf16[30720,256], index: 1, kind: input, shape index: {}]   ;;  %s16717_s2 = inlined_call_operand.hbm [shape: f32[1,256], index: 2, kind: input, shape index: {}]   ;;  %s16718_s3 = inlined_call_operand.vmem [shape: f32[256,64], index: 3, kind: input, shape index: {}]   ;;  %s16719_s4 = inlined_call_operand.hbm [shape: f32[1,64], index: 4, kind: input, shape index: {}]   ;;  %s16720_s5 = inlined_call_operand.vmem [shape: f32[64,32], index: 5, kind: input, shape index: {}]   ;;  %s16721_s6 = inlined_call_operand.hbm [shape: f32[1,32], index: 6, kind: input, shape index: {}]   ;;  %s16722_s7 = inlined_call_operand.vmem [shape: f32[32,3], index: 7, kind: input, shape index: {}]   ;;  %s16723_s8 = inlined_call_operand.hbm [shape: f32[1,3], index: 8, kind: input, shape index: {}]   ;;  %s16724_s9 = inlined_call_operand.hbm [shape: f32[2,3], index: 9, kind: output, shape index: {}]  }
   0x1   :  { %16 = vsyncpa [#allocation4 + $0x1], 0 }
   0x2   :  { %17 = vsyncpa [#allocation7], 0 }
   0x3   :  { %18 = vsyncpa [#allocation10], 0 }
   0x4   :  { %19 = vsyncpa [#allocation5], 0  ;;  %s14650_s30 = smov 0   ;;  %s14652_s10 = smov 0  }
   0x5   :  { %s14654_s11 = smov 0   ;;  %s14656_s12 = smov 0  }
   0x6 LB: > { %s14669_s13 = sadd.s32 4294967295, %s14584_s12   ;;  %p66_p0 = scmp.ne.s32.totalorder %s14576_s10, %s14572_s30  ;;  %s14584_s12 = sphi %s14656_s12, %s16743_s12   ;;  %s14580_s11 = sphi %s14654_s11, %s16742_s11   ;;  %s14576_s10 = sphi %s14652_s10, %s16741_s10   ;;  %s14572_s30 = sphi %s14650_s30, %s16740_s30  }
   0x7   : > { %p16725_p1 = scmp.eq.s32.totalorder %s14669_s13, 0  ;;  %p10745_p2 = scmp.ge.s32.totalorder %s14584_s12, 1 }
   0x8   : > { %p245_p3 = scmp.lt.s32.totalorder %s14584_s12, 4  ;;  %s14586_s16 = smov [#allocation6]  }
   0x9   : > { %p14678_p5 = por %p16725_p1, %p66_p0  ;;  %s261_s17 = sshll.u32 %s14586_s16, 4  ;;  %s262_s17 = int_to_ptr.vmem [resolvable:$true] %s261_s17 }
   0xa   : > { %p14682_p6 = pnand %p10745_p2, %p245_p3  ;;  %s14587_s18 = smov [#allocation9]  }
   0xb   : > { %s16728_s14 = scalar_select %p14678_p5, 1, 0 }
   0xc   : > { %s16729_s15 = scalar_select %p14682_p6, 1, 0 }
   0xd   : > { %p12359_p7 = pneg %p14682_p6  ;;  %s289_s19 = sshll.u32 %s14587_s18, 4  ;;  %s14694_s19 = int_to_ptr.vmem [resolvable:$true] %s289_s19 }
   0xe   : > { %s14588_s21 = smov [#allocation8]   ;;  %s14370_s25 = scalar_lea.hbm %s16717_s2, 32 }
   0xf   : > { %p14690_p8 = pnand %p12359_p7, %p16725_p1  ;;  %s275_s22 = sshll.u32 %s14588_s21, 4  ;;  %s14696_s22 = int_to_ptr.vmem [resolvable:$true] %s275_s22 }
  0x10   : > { %p14371_p9 = scmp.ne.s32.totalorder %s16717_s2, %s14370_s25  ;;  %p14377_p13 = scmp.lt.u32.totalorder %s14370_s25, %s16717_s2 }
  0x11   : > { %p14706_p10 = pneg %p14690_p8 }
  0x13   : > { %p14373_p11 = pnand %p14706_p10, %p14371_p9 }
  0x15   : > { %p14374_p12 = pneg %p14373_p11 }
  0x17   : > { %p14379_p0 = pnand %p14377_p13, %p14374_p12 }
  0x19   : > { %14382 = shalt.err (!%p14379_p0)
}
  0x1a   : > { %s14383_s16 = scalar_lea.vmem %s262_s17, 32  ;;  %p14391_p4 = scmp.lt.s32.totalorder %s262_s17, %s262_s17 }
  0x1b   : > { %p14384_p2 = scmp.ne.s32.totalorder %s262_s17, %s14383_s16  ;;  %p14392_p1 = scmp.lt.s32.totalorder %s14383_s16, %s14383_s16 }
  0x1d   : > { %p14386_p3 = pnand %p14384_p2, %p14706_p10  ;;  %p14393_p5 = por %p14392_p1, %p14391_p4 }
  0x1f   : > { %p14387_p7 = pneg %p14386_p3 }
  0x21   : > { %p14394_p6 = pnand %p14393_p5, %p14387_p7 }
  0x23   : > { %14397 = shalt.err (!%p14394_p6)
}
  0x24   : > { %12362 = dma.hbm_to_vmem [thread:$0]  (!%p14690_p8), %s16717_s2, 32, %s262_s17, [#allocation7]  }
  0x25   : > { %s14398_s25 = scalar_lea.hbm %s16721_s6, 16 }
  0x26   : > { %p14399_p9 = scmp.ne.s32.totalorder %s16721_s6, %s14398_s25  ;;  %p14405_p4 = scmp.lt.u32.totalorder %s14398_s25, %s16721_s6 }
  0x28   : > { %p14401_p11 = pnand %p14399_p9, %p14706_p10 }
  0x2a   : > { %p14402_p1 = pneg %p14401_p11 }
  0x2c   : > { %p14407_p5 = pnand %p14405_p4, %p14402_p1 }
  0x2e   : > { %14410 = shalt.err (!%p14407_p5)
}
  0x2f   : > { %s14411_s17 = scalar_lea.vmem %s14694_s19, 16  ;;  %s14418_s16 = scalar_lea.vmem %s14694_s19, 32 }
  0x30   : > { %p14412_p6 = scmp.ne.s32.totalorder %s14694_s19, %s14411_s17  ;;  %p14419_p0 = scmp.lt.s32.totalorder %s14694_s19, %s14694_s19 }
  0x31   : > { %p14420_p2 = scmp.lt.s32.totalorder %s14418_s16, %s14411_s17 }
  0x32   : > { %p14414_p12 = pnand %p14412_p6, %p14706_p10 }
  0x33   : > { %p14421_p3 = por %p14420_p2, %p14419_p0 }
  0x34   : > { %p14415_p13 = pneg %p14414_p12 }
  0x36   : > { %p14422_p7 = pnand %p14421_p3, %p14415_p13 }
  0x38   : > { %14425 = shalt.err (!%p14422_p7)
}
  0x39   : > { %12368 = dma.hbm_to_vmem [thread:$0]  (!%p14690_p8), %s16721_s6, 16, %s14694_s19, [#allocation10]  }
  0x3a   : > { %s14426_s25 = scalar_lea.hbm %s16719_s4, 16 }
  0x3b   : > { %p14427_p9 = scmp.ne.s32.totalorder %s16719_s4, %s14426_s25  ;;  %p14433_p4 = scmp.lt.u32.totalorder %s14426_s25, %s16719_s4 }
  0x3d   : > { %p14429_p11 = pnand %p14427_p9, %p14706_p10 }
  0x3f   : > { %p14430_p1 = pneg %p14429_p11 }
  0x41   : > { %p14435_p5 = pnand %p14433_p4, %p14430_p1 }
  0x43   : > { %14438 = shalt.err (!%p14435_p5)
}
  0x44   : > { %s14439_s19 = scalar_lea.vmem %s14696_s22, 16  ;;  %s14446_s17 = scalar_lea.vmem %s14696_s22, 32 }
  0x45   : > { %p14440_p6 = scmp.ne.s32.totalorder %s14696_s22, %s14439_s19  ;;  %p14447_p0 = scmp.lt.s32.totalorder %s14696_s22, %s14696_s22 }
  0x46   : > { %p14448_p2 = scmp.lt.s32.totalorder %s14446_s17, %s14439_s19 }
  0x47   : > { %p14442_p12 = pnand %p14440_p6, %p14706_p10 }
  0x48   : > { %p14449_p3 = por %p14448_p2, %p14447_p0 }
  0x49   : > { %p14443_p13 = pneg %p14442_p12 }
  0x4b   : > { %p14450_p7 = pnand %p14449_p3, %p14443_p13 }
  0x4d   : > { %14453 = shalt.err (!%p14450_p7)
}
  0x4e   : > { %12365 = dma.hbm_to_vmem [thread:$0]  (!%p14690_p8), %s16719_s4, 16, %s14696_s22, [#allocation7]  }
  0x4f   : > { %s14589_s21 = smov [#allocation11]   ;;  %s14454_s26 = scalar_lea.hbm %s16723_s8, 16 }
  0x50   : > { %s303_s23 = sshll.u32 %s14589_s21, 4  ;;  %p14455_p9 = scmp.ne.s32.totalorder %s16723_s8, %s14454_s26  ;;  %s304_s23 = int_to_ptr.vmem [resolvable:$true] %s303_s23 }
  0x51   : > { %p14461_p4 = scmp.lt.u32.totalorder %s14454_s26, %s16723_s8 }
  0x52   : > { %p14457_p11 = pnand %p14455_p9, %p14706_p10 }
  0x54   : > { %p14458_p1 = pneg %p14457_p11 }
  0x56   : > { %p14463_p5 = pnand %p14461_p4, %p14458_p1 }
  0x58   : > { %14466 = shalt.err (!%p14463_p5)
}
  0x59   : > { %s14467_s22 = scalar_lea.vmem %s304_s23, 16  ;;  %s14474_s17 = scalar_lea.vmem %s304_s23, 32 }
  0x5a   : > { %p14468_p6 = scmp.ne.s32.totalorder %s304_s23, %s14467_s22  ;;  %p14475_p0 = scmp.lt.s32.totalorder %s304_s23, %s304_s23 }
  0x5b   : > { %p14476_p2 = scmp.lt.s32.totalorder %s14474_s17, %s14467_s22 }
  0x5c   : > { %p14470_p12 = pnand %p14468_p6, %p14706_p10 }
  0x5d   : > { %p14477_p3 = por %p14476_p2, %p14475_p0 }
  0x5e   : > { %p14471_p13 = pneg %p14470_p12 }
  0x60   : > { %p14478_p7 = pnand %p14477_p3, %p14471_p13 }
  0x62   : > { %14481 = shalt.err (!%p14478_p7)
}
  0x63   : > { %12371 = dma.hbm_to_vmem [thread:$0]  (!%p14690_p8), %s16723_s8, 16, %s304_s23, [#allocation10]  }
  0x64   : > { %s14789_s28 = sadd.s32 1, %s14584_s12   ;;  %s53_s21 = sadd.s32 1, %s14580_s11 }
  0x65   : > { %s50_s24 = ssub.s32 %s14584_s12, %s14789_s28  ;;  %p60_p10 = scmp.ne.s32.totalorder %s14580_s11, %s14576_s10 }
  0x66   : > { %p51_p9 = scmp.eq.s32.totalorder %s50_s24, 0  ;;  %p61_p11 = scmp.eq.s32.totalorder %s14584_s12, 0 }
  0x67   : > { %p12380_p1 = scmp.lt.s32.totalorder %s14584_s12, 3  ;;  %s314_s20 = sand.u32 1, %s14580_s11  }
  0x68   : > { %s14800_s25 = scalar_select %p51_p9, %s14580_s11, %s53_s21  }
  0x69   : > { %p62_p4 = por %p61_p11, %p60_p10  ;;  %s12335_s26 = smul.u32 10240, %s314_s20 }
  0x6a   : > { %s12051_s27 = smul.u32 163840, %s14584_s12  ;;  %s14814_s12 = scalar_lea.sflag [#allocation4], %s314_s20 }
  0x6b   : > { %p14803_p5 = pnand %p12380_p1, %p62_p4  ;;  %s318_s22 = scalar_lea.vmem [#allocation3], %s12335_s26 }
  0x6c   : > { %s14810_s19 = scalar_lea.hbm %s16716_s1, %s12051_s27  ;;  %s326_s17 = sshll.u32 %s318_s22, 4  ;;  %s14812_s17 = int_to_ptr.vmem [resolvable:$true] %s326_s17 }
  0x6d   : > { %s14482_s16 = scalar_lea.hbm %s14810_s19, 163840  ;;  %p14484_p6 = pneg %p14803_p5 }
  0x6e   : > { %p14483_p8 = scmp.ne.s32.totalorder %s14810_s19, %s14482_s16  ;;  %s14487_s24 = scalar_lea.hbm %s16716_s1, 491520 }
  0x6f   : > { %p14488_p0 = scmp.lt.u32.totalorder %s14810_s19, %s16716_s1  ;;  %p14489_p2 = scmp.lt.u32.totalorder %s14487_s24, %s14482_s16 }
  0x70   : > { %p14485_p12 = pnand %p14484_p6, %p14483_p8  ;;  %p14491_p7 = scmp.lt.u32.totalorder %s14482_s16, %s14810_s19 }
  0x71   : > { %p14490_p3 = por %p14489_p2, %p14488_p0 }
  0x72   : > { %p14486_p13 = pneg %p14485_p12 }
  0x73   : > { %p14492_p10 = por %p14491_p7, %p14490_p3 }
  0x75   : > { %p14493_p9 = pnand %p14492_p10, %p14486_p13 }
  0x77   : > { %14496 = shalt.err (!%p14493_p9)
}
  0x78   : > { %s14497_s20 = scalar_lea.vmem %s14812_s17, 163840  ;;  %s14590_s26 = smov [#allocation3]  }
  0x79   : > { %p14498_p11 = scmp.ne.s32.totalorder %s14812_s17, %s14497_s20  ;;  %s14502_s30 = sshll.u32 %s14590_s26, 4  ;;  %s14503_s30 = int_to_ptr.vmem [resolvable:$false] %s14502_s30 }
  0x7a   : > { %s14504_s22 = scalar_lea.vmem %s14503_s30, 327680  ;;  %p14505_p8 = scmp.lt.s32.totalorder %s14812_s17, %s14503_s30 }
  0x7b   : > { %p14500_p1 = pnand %p14498_p11, %p14484_p6  ;;  %p14506_p12 = scmp.lt.s32.totalorder %s14504_s22, %s14497_s20 }
  0x7d   : > { %p14501_p4 = pneg %p14500_p1  ;;  %p14507_p0 = por %p14506_p12, %p14505_p8 }
  0x7f   : > { %p14508_p2 = pnand %p14507_p0, %p14501_p4 }
  0x81   : > { %14511 = shalt.err (!%p14508_p2)
}
  0x82   : > { %s14591_s16 = smov 128   ;;  %s14592_s18 = smov 8  }
  0x83   : > { %12375 = dma.hbm_to_vmem [thread:$0]  (!%p14803_p5), %s14810_s19, 163840, %s14812_s17, %s14814_s12, %s14591_s16, %s14591_s16, %s14592_s18  }
  0x84   : > { %p16733_p6 = scmp.ne.s32.totalorder %s16729_s15, 0 }
  0x85   : > { %s340_s21 = sand.u32 (!%p16733_p6), 1, %s14576_s10   ;;  %p16734_p13 = scmp.ne.s32.totalorder (!%p16733_p6), %s16728_s14, 0 }
  0x86   : > { %338 = sbr.rel (%p16733_p6) target bundleno = 2352 (0x930), region = 56  ;;  %s341_s27 = scalar_lea.sflag (!%p16733_p6), [#allocation4], %s340_s21 }
  0x87   : > { %s12336_s24 = smul.u32 (!%p16733_p6), 10240, %s340_s21 }
  0x89   : > { %s14845_s23 = scalar_lea.vmem (!%p16733_p6), [#allocation3], %s12336_s24 }
  0x8d   : > { %14555 = dma.done.wait (%p16734_p13), %s341_s27, 163840  }
  0x8e   : > { %14557 = vsyncadd (%p16734_p13), %s341_s27, 4294803456  ;;  %p16735_p3 = scmp.eq.s32.totalorder %s14669_s13, 0 }
  0x90   : > { %14559 = dma.done.wait (%p16735_p3), [#allocation7], 48   ;;  %p16736_p5 = pmov %p16735_p3 }
  0x91   : > { %p16737_p7 = pmov %p16735_p3 }
  0x92   : > { %14561 = vsyncadd (%p16736_p5), [#allocation7], 4294967248 }
  0x93   : > { %14563 = dma.done.wait (%p16737_p7), [#allocation10], 32   ;;  %p16738_p10 = pmov %p16735_p3 }
  0x94   : > { %p16739_p9 = scmp.ne.s32.totalorder %s14669_s13, 0 }
  0x95   : > { %14565 = vsyncadd (%p16738_p10), [#allocation10], 4294967264  ;;  %v14593_v0 = vmov (!%p16739_p9), 0.0  }
  0x96   : > { %394 = sbr.rel (%p16739_p9) target bundleno = 157 (0x9d), region = 80  ;;  %395 = vst [vmem:[#allocation2] sm:$0xf] (!%p16739_p9), %v14593_v0 }
  0x9d PF: > { %v12432_v1 = vld [vmem:[%s14845_s23 + $0x4] ss:$8 sps:$4 sm:$0xff]   ;;  %v12436_v3 = vld [vmem:[%s14845_s23] ss:$8 sps:$4 sm:$0xff]   ;;  %v12438_v5 = vld [vmem:[%s14845_s23 + $0x14] ss:$8 sps:$4 sm:$0xff]   ;;  %v1705_v39 = vlaneseq }
  0x9e   : > { %v12434_v2 = vld [vmem:[%s14845_s23 + $0x1404] ss:$8 sps:$4 sm:$0xff]   ;;  %8671 = vmatprep.subr.bf16.mxu1 %v12432_v1  ;;  %v12437_v4 = vld [vmem:[%s14845_s23 + $0x1400] ss:$8 sps:$4 sm:$0xff]   ;;  %v12440_v6 = vld [vmem:[%s14845_s23 + $0x1414] ss:$8 sps:$4 sm:$0xff]  }
  0x9f   : > { %9491 = vmatprep.subr.bf16.mxu0 %v12434_v2  ;;  %8672 = vmatpush1.bf16.msra.mxu1 %v12436_v3  ;;  %v12442_v7 = vld [vmem:[%s14845_s23 + $0x10] ss:$8 sps:$4 sm:$0xff]   ;;  %v12444_v9 = vld [vmem:[%s14845_s23 + $0x24] ss:$8 sps:$4 sm:$0xff]   ;;  %v12448_v11 = vld [vmem:[%s14845_s23 + $0x20] ss:$8 sps:$4 sm:$0xff]  }
  0xa0   : > { %9492 = vmatpush1.bf16.msra.mxu0 %v12437_v4  ;;  %8673 = vmatprep.subr.bf16.mxu1 %v12438_v5  ;;  %v12443_v8 = vld [vmem:[%s14845_s23 + $0x1410] ss:$8 sps:$4 sm:$0xff]   ;;  %v12446_v10 = vld [vmem:[%s14845_s23 + $0x1424] ss:$8 sps:$4 sm:$0xff]   ;;  %v12449_v12 = vld [vmem:[%s14845_s23 + $0x1420] ss:$8 sps:$4 sm:$0xff]  }
  0xa1   : > { %9493 = vmatprep.subr.bf16.mxu0 %v12440_v6  ;;  %v12450_v13 = vld [vmem:[%s14845_s23 + $0x34] ss:$8 sps:$4 sm:$0xff]   ;;  %v12454_v15 = vld [vmem:[%s14845_s23 + $0x30] ss:$8 sps:$4 sm:$0xff]   ;;  %v12456_v17 = vld [vmem:[%s14845_s23 + $0x44] ss:$8 sps:$4 sm:$0xff]  }
  0xa2   : > { %v12452_v14 = vld [vmem:[%s14845_s23 + $0x1434] ss:$8 sps:$4 sm:$0xff]   ;;  %v12455_v16 = vld [vmem:[%s14845_s23 + $0x1430] ss:$8 sps:$4 sm:$0xff]   ;;  %v12458_v18 = vld [vmem:[%s14845_s23 + $0x1444] ss:$8 sps:$4 sm:$0xff]  }
  0xa3   : > { %8674 = vmatpush1.bf16.msra.mxu1 %v12442_v7  ;;  %v12460_v19 = vld [vmem:[%s14845_s23 + $0x40] ss:$8 sps:$4 sm:$0xff]   ;;  %v12462_v21 = vld [vmem:[%s14845_s23 + $0x54] ss:$8 sps:$4 sm:$0xff]   ;;  %v12466_v23 = vld [vmem:[%s14845_s23 + $0x50] ss:$8 sps:$4 sm:$0xff]  }
  0xa4   : > { %9494 = vmatpush1.bf16.msra.mxu0 %v12443_v8  ;;  %8675 = vmatprep.subr.bf16.mxu1 %v12444_v9  ;;  %v12461_v20 = vld [vmem:[%s14845_s23 + $0x1440] ss:$8 sps:$4 sm:$0xff]   ;;  %v12464_v22 = vld [vmem:[%s14845_s23 + $0x1454] ss:$8 sps:$4 sm:$0xff]   ;;  %v12467_v24 = vld [vmem:[%s14845_s23 + $0x1450] ss:$8 sps:$4 sm:$0xff]  }
  0xa5   : > { %9495 = vmatprep.subr.bf16.mxu0 %v12446_v10  ;;  %v12468_v25 = vld [vmem:[%s14845_s23 + $0x64] ss:$8 sps:$4 sm:$0xff]   ;;  %v12472_v27 = vld [vmem:[%s14845_s23 + $0x60] ss:$8 sps:$4 sm:$0xff]   ;;  %v12474_v29 = vld [vmem:[%s14845_s23 + $0x74] ss:$8 sps:$4 sm:$0xff]  }
  0xa6   : > { %v12470_v26 = vld [vmem:[%s14845_s23 + $0x1464] ss:$8 sps:$4 sm:$0xff]   ;;  %v12473_v28 = vld [vmem:[%s14845_s23 + $0x1460] ss:$8 sps:$4 sm:$0xff]   ;;  %v12476_v30 = vld [vmem:[%s14845_s23 + $0x1474] ss:$8 sps:$4 sm:$0xff]  }
  0xa7   : > { %8676 = vmatpush1.bf16.msra.mxu1 %v12448_v11  ;;  %v12478_v31 = vld [vmem:[%s14845_s23 + $0x70] ss:$8 sps:$4 sm:$0xff]   ;;  %v12480_v33 = vld [vmem:[%s14845_s23 + $0x84] ss:$8 sps:$4 sm:$0xff]   ;;  %v12484_v35 = vld [vmem:[%s14845_s23 + $0x80] ss:$8 sps:$4 sm:$0xff]  }
  0xa8   : > { %9496 = vmatpush1.bf16.msra.mxu0 %v12449_v12  ;;  %8677 = vmatprep.subr.bf16.mxu1 %v12450_v13  ;;  %v12479_v32 = vld [vmem:[%s14845_s23 + $0x1470] ss:$8 sps:$4 sm:$0xff]   ;;  %v12482_v34 = vld [vmem:[%s14845_s23 + $0x1484] ss:$8 sps:$4 sm:$0xff]   ;;  %v12485_v36 = vld [vmem:[%s14845_s23 + $0x1480] ss:$8 sps:$4 sm:$0xff]  }
  0xa9   : > { %9497 = vmatprep.subr.bf16.mxu0 %v12452_v14  ;;  %v14594_v37 = vmov 1966171168   ;;  %v12486_v40 = vld [vmem:[%s14845_s23 + $0x94] ss:$8 sps:$4 sm:$0xff]   ;;  %s396_s14 = smul.u32 10240, %s14669_s13  ;;  %v14901_v44 = vshrl.u32 %v1705_v39, 7 }
  0xaa   : > { %v1703_v38 = vunpack.c.l.s4 %v14594_v37  ;;  %v12488_v41 = vld [vmem:[%s14845_s23 + $0x1494] ss:$8 sps:$4 sm:$0xff]   ;;  %v12490_v42 = vld [vmem:[%s14845_s23 + $0x90] ss:$8 sps:$4 sm:$0xff]   ;;  %v12492_v46 = vld [vmem:[%s14845_s23 + $0xa4] ss:$8 sps:$4 sm:$0xff]  }
  0xab   : > { %8678 = vmatpush1.bf16.msra.mxu1 %v12454_v15  ;;  %v12491_v45 = vld [vmem:[%s14845_s23 + $0x1490] ss:$8 sps:$4 sm:$0xff]   ;;  %s397_s15 = sshra.s32 %s396_s14, 7  ;;  %v12494_v47 = vld [vmem:[%s14845_s23 + $0x14a4] ss:$8 sps:$4 sm:$0xff]   ;;  %p12039_p11 = scmp.ne.s32.totalorder %s14669_s13, 2 }
  0xac   : > { %9498 = vmatpush1.bf16.msra.mxu0 %v12455_v16  ;;  %8679 = vmatprep.subr.bf16.mxu1 %v12456_v17  ;;  %v1704_v43 = vunpack.c.0.s8 %v1703_v38  ;;  %v12496_v48 = vld [vmem:[%s14845_s23 + $0xa0] ss:$8 sps:$4 sm:$0xff]   ;;  %s14911_s17 = scalar_lea.vmem %s16715_s0, %s397_s15  ;;  %v12498_v51 = vld [vmem:[%s14845_s23 + $0xb4] ss:$8 sps:$4 sm:$0xff]   ;;  %v12502_v54 = vld [vmem:[%s14845_s23 + $0xb0] ss:$8 sps:$4 sm:$0xff]  }
  0xad   : > { %9499 = vmatprep.subr.bf16.mxu0 %v12458_v18  ;;  %v12497_v49 = vld [vmem:[%s14845_s23 + $0x14a0] ss:$8 sps:$4 sm:$0xff]   ;;  %v12500_v52 = vld [vmem:[%s14845_s23 + $0x14b4] ss:$8 sps:$4 sm:$0xff]   ;;  %v12503_v56 = vld [vmem:[%s14845_s23 + $0x14b0] ss:$8 sps:$4 sm:$0xff]  }
  0xae   : > { %v14914_v50 = vsub.s32 %v1704_v43, %v14901_v44  ;;  %v14919_v53 = vld [vmem:[%s14911_s17] sm:$0xff]  ;;  %v14926_v57 = vld [vmem:[%s14911_s17 + $0x28] sm:$0xff]  ;;  %v12514_v5 = vld [vmem:[%s14845_s23 + $0xd0] ss:$8 sps:$4 sm:$0xff]   ;;  %vm14597_vm0 = vmmov (!%p12039_p11), 0   ;;  %vm10486_vm1 = vcmask (!%p12039_p11), 523264  }
  0xaf   : > { %8680 = vmatpush1.bf16.msra.mxu1 %v12460_v19  ;;  %v12504_v58 = vld [vmem:[%s14845_s23 + $0xc4] ss:$8 sps:$4 sm:$0xff]   ;;  %v12508_v0 = vld [vmem:[%s14845_s23 + $0xc0] ss:$8 sps:$4 sm:$0xff]   ;;  %v12510_v2 = vld [vmem:[%s14845_s23 + $0xd4] ss:$8 sps:$4 sm:$0xff]  }
  0xb0   : > { %9500 = vmatpush1.bf16.msra.mxu0 %v12461_v20  ;;  %8681 = vmatprep.subr.bf16.mxu1 %v12462_v21  ;;  %v1708_v55 = vrot.slane %v14919_v53, %v14914_v50  ;;  %v12506_v59 = vld [vmem:[%s14845_s23 + $0x14c4] ss:$8 sps:$4 sm:$0xff]   ;;  %v1953_v61 = vrot.slane %v14926_v57, %v14914_v50  ;;  %v12509_v1 = vld [vmem:[%s14845_s23 + $0x14c0] ss:$8 sps:$4 sm:$0xff]   ;;  %v12512_v3 = vld [vmem:[%s14845_s23 + $0x14d4] ss:$8 sps:$4 sm:$0xff]  }
  0xb1   : > { %9501 = vmatprep.subr.bf16.mxu0 %v12464_v22  ;;  %v12515_v6 = vld [vmem:[%s14845_s23 + $0x14d0] ss:$8 sps:$4 sm:$0xff]   ;;  %v12516_v7 = vld [vmem:[%s14845_s23 + $0xe4] ss:$8 sps:$4 sm:$0xff]   ;;  %v12520_v9 = vld [vmem:[%s14845_s23 + $0xe0] ss:$8 sps:$4 sm:$0xff]  }
  0xb2   : > { %v1716_v60 = vcombine.high %v1708_v55, %v1708_v55  ;;  %v1961_v63 = vcombine.high %v1953_v61, %v1953_v61  ;;  %v12518_v8 = vld [vmem:[%s14845_s23 + $0x14e4] ss:$8 sps:$4 sm:$0xff]   ;;  %v12521_v10 = vld [vmem:[%s14845_s23 + $0x14e0] ss:$8 sps:$4 sm:$0xff]   ;;  %v12522_v11 = vld [vmem:[%s14845_s23 + $0xf4] ss:$8 sps:$4 sm:$0xff]   ;;  %v14951_v17 = vrot.slane %v1708_v55, %v14914_v50  ;;  %v14954_v18 = vrot.slane %v1953_v61, %v14914_v50 }
  0xb3   : > { %8682 = vmatpush1.bf16.msra.mxu1 %v12466_v23  ;;  %v12524_v12 = vld [vmem:[%s14845_s23 + $0x14f4] ss:$8 sps:$4 sm:$0xff]   ;;  %v12526_v13 = vld [vmem:[%s14845_s23 + $0xf0] ss:$8 sps:$4 sm:$0xff]   ;;  %v12531_v15 = vld [vmem:[%s14845_s23 + $0x104] ss:$8 sps:$4 sm:$0xff]  }
  0xb4   : > { %9502 = vmatpush1.bf16.msra.mxu0 %v12467_v24  ;;  %8683 = vmatprep.subr.bf16.mxu1 %v12468_v25  ;;  %v1738_v62 = vrot.slane %v1716_v60, %v14914_v50  ;;  %v1983_v4 = vrot.slane %v1961_v63, %v14914_v50  ;;  %v12527_v14 = vld [vmem:[%s14845_s23 + $0x14f0] ss:$8 sps:$4 sm:$0xff]   ;;  %v12535_v16 = vld [vmem:[%s14845_s23 + $0x1504] ss:$8 sps:$4 sm:$0xff]   ;;  %v12529_v19 = vld [vmem:[%s14845_s23 + $0x100] ss:$8 sps:$4 sm:$0xff]  }
  0xb5   : > { %9503 = vmatprep.subr.bf16.mxu0 %v12470_v26  ;;  %v12533_v20 = vld [vmem:[%s14845_s23 + $0x1500] ss:$8 sps:$4 sm:$0xff]   ;;  %v12538_v21 = vld [vmem:[%s14845_s23 + $0x114] ss:$8 sps:$4 sm:$0xff]   ;;  %v12536_v25 = vld [vmem:[%s14845_s23 + $0x110] ss:$8 sps:$4 sm:$0xff]  }
  0xb6   : > { %8703 = vmatprep.mubr.bf16.mxu1 %v1738_v62  ;;  %9523 = vmatprep.mubr.bf16.mxu0 %v1983_v4  ;;  %v12541_v22 = vld [vmem:[%s14845_s23 + $0x1514] ss:$8 sps:$4 sm:$0xff]   ;;  %v1748_v23 = vcombine.high %v1738_v62, %v1738_v62  ;;  %v1993_v24 = vcombine.high %v1983_v4, %v1983_v4  ;;  %v12539_v26 = vld [vmem:[%s14845_s23 + $0x1510] ss:$8 sps:$4 sm:$0xff]   ;;  %v12554_v37 = vld [vmem:[%s14845_s23 + $0x140] ss:$8 sps:$4 sm:$0xff]  }
  0xb7   : > { %8684 = vmatpush1.bf16.msra.mxu1 %v12472_v27  ;;  %v12544_v27 = vld [vmem:[%s14845_s23 + $0x124] ss:$8 sps:$4 sm:$0xff]   ;;  %v12557_v38 = vld [vmem:[%s14845_s23 + $0x1540] ss:$8 sps:$4 sm:$0xff]   ;;  %v12562_v39 = vld [vmem:[%s14845_s23 + $0x154] ss:$8 sps:$4 sm:$0xff]  }
  0xb8   : > { %9504 = vmatpush1.bf16.msra.mxu0 %v12473_v28  ;;  %8685 = vmatprep.subr.bf16.mxu1 %v12474_v29  ;;  %v12547_v28 = vld [vmem:[%s14845_s23 + $0x1524] ss:$8 sps:$4 sm:$0xff]   ;;  %v12542_v29 = vld [vmem:[%s14845_s23 + $0x120] ss:$8 sps:$4 sm:$0xff]   ;;  %v12589_v60 = vld [vmem:[%s14845_s23 + $0x1594] ss:$8 sps:$4 sm:$0xff]  }
  0xb9   : > { %9505 = vmatprep.subr.bf16.mxu0 %v12476_v30  ;;  %v12545_v30 = vld [vmem:[%s14845_s23 + $0x1520] ss:$8 sps:$4 sm:$0xff]   ;;  %v12568_v43 = vld [vmem:[%s14845_s23 + $0x164] ss:$8 sps:$4 sm:$0xff]   ;;  %v12584_v61 = vld [vmem:[%s14845_s23 + $0x190] ss:$8 sps:$4 sm:$0xff]  }
  0xba   : > { %v12583_v55 = vld [vmem:[%s14845_s23 + $0x1584] ss:$8 sps:$4 sm:$0xff]   ;;  %v12587_v62 = vld [vmem:[%s14845_s23 + $0x1590] ss:$8 sps:$4 sm:$0xff]   ;;  %v12601_v4 = vld [vmem:[%s14845_s23 + $0x15b4] ss:$8 sps:$4 sm:$0xff]  }
  0xbb   : > { %8686 = vmatpush1.bf16.msra.mxu1 %v12478_v31  ;;  %v12550_v31 = vld [vmem:[%s14845_s23 + $0x134] ss:$8 sps:$4 sm:$0xff]   ;;  %v12592_v63 = vld [vmem:[%s14845_s23 + $0x1a4] ss:$8 sps:$4 sm:$0xff]   ;;  %vm10572_vm2 = vcmask (!%p12039_p11), 261120   ;;  %vm10646_vm3 = vcmask (!%p12039_p11), 17408  }
  0xbc   : > { %9506 = vmatpush1.bf16.msra.mxu0 %v12479_v32  ;;  %8687 = vmatprep.subr.bf16.mxu1 %v12480_v33  ;;  %v12553_v32 = vld [vmem:[%s14845_s23 + $0x1534] ss:$8 sps:$4 sm:$0xff]   ;;  %v12548_v33 = vld [vmem:[%s14845_s23 + $0x130] ss:$8 sps:$4 sm:$0xff]  }
  0xbd   : > { %9507 = vmatprep.subr.bf16.mxu0 %v12482_v34  ;;  %v12551_v34 = vld [vmem:[%s14845_s23 + $0x1530] ss:$8 sps:$4 sm:$0xff]  }
  0xbf   : > { %8688 = vmatpush1.bf16.msra.mxu1 %v12484_v35  ;;  %v12556_v35 = vld [vmem:[%s14845_s23 + $0x144] ss:$8 sps:$4 sm:$0xff]  }
  0xc0   : > { %9508 = vmatpush1.bf16.msra.mxu0 %v12485_v36  ;;  %8689 = vmatprep.subr.bf16.mxu1 %v12486_v40  ;;  %v12559_v36 = vld [vmem:[%s14845_s23 + $0x1544] ss:$8 sps:$4 sm:$0xff]   ;;  %v12565_v40 = vld [vmem:[%s14845_s23 + $0x1554] ss:$8 sps:$4 sm:$0xff]  }
  0xc1   : > { %9509 = vmatprep.subr.bf16.mxu0 %v12488_v41  ;;  %v12560_v41 = vld [vmem:[%s14845_s23 + $0x150] ss:$8 sps:$4 sm:$0xff]  }
  0xc3   : > { %8690 = vmatpush1.bf16.msra.mxu1 %v12490_v42  ;;  %v12563_v42 = vld [vmem:[%s14845_s23 + $0x1550] ss:$8 sps:$4 sm:$0xff]  }
  0xc4   : > { %9510 = vmatpush1.bf16.msra.mxu0 %v12491_v45  ;;  %8691 = vmatprep.subr.bf16.mxu1 %v12492_v46  ;;  %v12571_v45 = vld [vmem:[%s14845_s23 + $0x1564] ss:$8 sps:$4 sm:$0xff]   ;;  %v12566_v46 = vld [vmem:[%s14845_s23 + $0x160] ss:$8 sps:$4 sm:$0xff]  }
  0xc5   : > { %9511 = vmatprep.subr.bf16.mxu0 %v12494_v47  ;;  %v12569_v47 = vld [vmem:[%s14845_s23 + $0x1560] ss:$8 sps:$4 sm:$0xff]  }
  0xc7   : > { %8692 = vmatpush1.bf16.msra.mxu1 %v12496_v48  ;;  %v12574_v48 = vld [vmem:[%s14845_s23 + $0x174] ss:$8 sps:$4 sm:$0xff]  }
  0xc8   : > { %9512 = vmatpush1.bf16.msra.mxu0 %v12497_v49  ;;  %8693 = vmatprep.subr.bf16.mxu1 %v12498_v51  ;;  %v12577_v49 = vld [vmem:[%s14845_s23 + $0x1574] ss:$8 sps:$4 sm:$0xff]   ;;  %v12572_v51 = vld [vmem:[%s14845_s23 + $0x170] ss:$8 sps:$4 sm:$0xff]  }
  0xc9   : > { %9513 = vmatprep.subr.bf16.mxu0 %v12500_v52  ;;  %v12575_v52 = vld [vmem:[%s14845_s23 + $0x1570] ss:$8 sps:$4 sm:$0xff]  }
  0xcb   : > { %8694 = vmatpush1.bf16.msra.mxu1 %v12502_v54  ;;  %v12580_v54 = vld [vmem:[%s14845_s23 + $0x184] ss:$8 sps:$4 sm:$0xff]  }
  0xcc   : > { %9514 = vmatpush1.bf16.msra.mxu0 %v12503_v56  ;;  %8695 = vmatprep.subr.bf16.mxu1 %v12504_v58  ;;  %v12578_v56 = vld [vmem:[%s14845_s23 + $0x180] ss:$8 sps:$4 sm:$0xff]  }
  0xcd   : > { %9515 = vmatprep.subr.bf16.mxu0 %v12506_v59  ;;  %v12581_v58 = vld [vmem:[%s14845_s23 + $0x1580] ss:$8 sps:$4 sm:$0xff]   ;;  %v12586_v59 = vld [vmem:[%s14845_s23 + $0x194] ss:$8 sps:$4 sm:$0xff]  }
  0xcf   : > { %8696 = vmatpush1.bf16.msra.mxu1 %v12508_v0  ;;  %v12595_v0 = vld [vmem:[%s14845_s23 + $0x15a4] ss:$8 sps:$4 sm:$0xff]  }
  0xd0   : > { %9516 = vmatpush1.bf16.msra.mxu0 %v12509_v1  ;;  %8697 = vmatprep.subr.bf16.mxu1 %v12510_v2  ;;  %v12590_v1 = vld [vmem:[%s14845_s23 + $0x1a0] ss:$8 sps:$4 sm:$0xff]  }
  0xd1   : > { %9517 = vmatprep.subr.bf16.mxu0 %v12512_v3  ;;  %v12593_v2 = vld [vmem:[%s14845_s23 + $0x15a0] ss:$8 sps:$4 sm:$0xff]   ;;  %v12598_v3 = vld [vmem:[%s14845_s23 + $0x1b4] ss:$8 sps:$4 sm:$0xff]  }
  0xd3   : > { %8698 = vmatpush1.bf16.msra.mxu1 %v12514_v5  ;;  %v12596_v5 = vld [vmem:[%s14845_s23 + $0x1b0] ss:$8 sps:$4 sm:$0xff]  }
  0xd4   : > { %9518 = vmatpush1.bf16.msra.mxu0 %v12515_v6  ;;  %8699 = vmatprep.subr.bf16.mxu1 %v12516_v7  ;;  %v12599_v6 = vld [vmem:[%s14845_s23 + $0x15b0] ss:$8 sps:$4 sm:$0xff]   ;;  %v12604_v7 = vld [vmem:[%s14845_s23 + $0x1c4] ss:$8 sps:$4 sm:$0xff]  }
  0xd5   : > { %9519 = vmatprep.subr.bf16.mxu0 %v12518_v8  ;;  %v12607_v8 = vld [vmem:[%s14845_s23 + $0x15c4] ss:$8 sps:$4 sm:$0xff]  }
  0xd7   : > { %8700 = vmatpush1.bf16.msra.mxu1 %v12520_v9  ;;  %v12602_v9 = vld [vmem:[%s14845_s23 + $0x1c0] ss:$8 sps:$4 sm:$0xff]  }
  0xd8   : > { %9520 = vmatpush1.bf16.msra.mxu0 %v12521_v10  ;;  %8701 = vmatprep.subr.bf16.mxu1 %v12522_v11  ;;  %v12605_v10 = vld [vmem:[%s14845_s23 + $0x15c0] ss:$8 sps:$4 sm:$0xff]   ;;  %v12610_v11 = vld [vmem:[%s14845_s23 + $0x1d4] ss:$8 sps:$4 sm:$0xff]  }
  0xd9   : > { %9521 = vmatprep.subr.bf16.mxu0 %v12524_v12  ;;  %v12613_v12 = vld [vmem:[%s14845_s23 + $0x15d4] ss:$8 sps:$4 sm:$0xff]  }
  0xdb   : > { %8702 = vmatpush1.bf16.msra.mxu1 %v12526_v13  ;;  %v12608_v13 = vld [vmem:[%s14845_s23 + $0x1d0] ss:$8 sps:$4 sm:$0xff]  }
  0xdc   : > { %9522 = vmatpush1.bf16.msra.mxu0 %v12527_v14  ;;  %8712 = vmatprep.subr.bf16.mxu1 %v12531_v15  ;;  %v12611_v14 = vld [vmem:[%s14845_s23 + $0x15d0] ss:$8 sps:$4 sm:$0xff]   ;;  %v12616_v15 = vld [vmem:[%s14845_s23 + $0x1e4] ss:$8 sps:$4 sm:$0xff]  }
  0xdd   : > { %9532 = vmatprep.subr.bf16.mxu0 %v12535_v16  ;;  %v12619_v16 = vld [vmem:[%s14845_s23 + $0x15e4] ss:$8 sps:$4 sm:$0xff]  }
  0xde   : > { %8704 = vmatmul.mubr.bf16.vlgmr.msra.gmra.mrb[0].mxu1 %v14951_v17 }
  0xdf   : > { %9524 = vmatmul.mubr.bf16.vlgmr.msra.gmra.mrb[0].mxu0 %v14954_v18  ;;  %8713 = vmatpush1.bf16.msra.mxu1 %v12529_v19  ;;  %v1701_v19 = vcombine.high %v14919_v53, %v14919_v53  ;;  %v12620_v53 = vld [vmem:[%s14845_s23 + $0x1f0] ss:$8 sps:$4 sm:$0xff]  }
  0xe0   : > { %9533 = vmatpush1.bf16.msra.mxu0 %v12533_v20  ;;  %8714 = vmatprep.subr.bf16.mxu1 %v12538_v21  ;;  %v1946_v20 = vcombine.high %v14926_v57, %v14926_v57  ;;  %v12614_v21 = vld [vmem:[%s14845_s23 + $0x1e0] ss:$8 sps:$4 sm:$0xff]   ;;  %v12623_v57 = vld [vmem:[%s14845_s23 + $0x15f0] ss:$8 sps:$4 sm:$0xff]  }
  0xe1   : > { %9534 = vmatprep.subr.bf16.mxu0 %v12541_v22  ;;  %8744 = vmatprep.mubr.bf16.mxu1 %v1748_v23  ;;  %v12617_v22 = vld [vmem:[%s14845_s23 + $0x15e0] ss:$8 sps:$4 sm:$0xff]   ;;  %v12622_v23 = vld [vmem:[%s14845_s23 + $0x1f4] ss:$8 sps:$4 sm:$0xff]  }
  0xe2   : > { %9564 = vmatprep.mubr.bf16.mxu0 %v1993_v24  ;;  %v12625_v24 = vld [vmem:[%s14845_s23 + $0x15f4] ss:$8 sps:$4 sm:$0xff]  }
  0xe3   : > { %8715 = vmatpush1.bf16.msra.mxu1 %v12536_v25  ;;  %v15023_v25 = vrot.slane %v1701_v19, %v14914_v50  ;;  %v12692_v19 = vld [vmem:[%s14845_s23 + $0x2b0] ss:$8 sps:$4 sm:$0xff]  }
  0xe4   : > { %9535 = vmatpush1.bf16.msra.mxu0 %v12539_v26  ;;  %8716 = vmatprep.subr.bf16.mxu1 %v12544_v27  ;;  %v15026_v26 = vrot.slane %v1946_v20, %v14914_v50  ;;  %v12628_v27 = vld [vmem:[%s14845_s23 + $0x204] ss:$8 sps:$4 sm:$0xff]   ;;  %v12695_v20 = vld [vmem:[%s14845_s23 + $0x16b0] ss:$8 sps:$4 sm:$0xff]  }
  0xe5   : > { %9536 = vmatprep.subr.bf16.mxu0 %v12547_v28  ;;  %v12631_v28 = vld [vmem:[%s14845_s23 + $0x1604] ss:$8 sps:$4 sm:$0xff]  }
  0xe7   : > { %8717 = vmatpush1.bf16.msra.mxu1 %v12542_v29  ;;  %v1717_v29 = vcombine.high %v15023_v25, %v15023_v25 }
  0xe8   : > { %9537 = vmatpush1.bf16.msra.mxu0 %v12545_v30  ;;  %8718 = vmatprep.subr.bf16.mxu1 %v12550_v31  ;;  %v1962_v30 = vcombine.high %v15026_v26, %v15026_v26  ;;  %v1746_v31 = vcombine.high %v14951_v17, %v14951_v17 }
  0xe9   : > { %9538 = vmatprep.subr.bf16.mxu0 %v12553_v32  ;;  %v1991_v32 = vcombine.high %v14954_v18, %v14954_v18  ;;  %v12632_v18 = vld [vmem:[%s14845_s23 + $0x210] ss:$8 sps:$4 sm:$0xff]  }
  0xea   : > { %v15048_v17 = vrot.slane %v1962_v30, %v14914_v50  ;;  %v12715_v30 = vld [vmem:[%s14845_s23 + $0x16e4] ss:$8 sps:$4 sm:$0xff]  }
  0xeb   : > { %8719 = vmatpush1.bf16.msra.mxu1 %v12548_v33  ;;  %v12626_v33 = vld [vmem:[%s14845_s23 + $0x200] ss:$8 sps:$4 sm:$0xff]  }
  0xec   : > { %9539 = vmatpush1.bf16.msra.mxu0 %v12551_v34  ;;  %8720 = vmatprep.subr.bf16.mxu1 %v12556_v35  ;;  %v12629_v34 = vld [vmem:[%s14845_s23 + $0x1600] ss:$8 sps:$4 sm:$0xff]   ;;  %v12634_v35 = vld [vmem:[%s14845_s23 + $0x214] ss:$8 sps:$4 sm:$0xff]  }
  0xed   : > { %9540 = vmatprep.subr.bf16.mxu0 %v12559_v36  ;;  %v12637_v36 = vld [vmem:[%s14845_s23 + $0x1614] ss:$8 sps:$4 sm:$0xff]  }
  0xef   : > { %8721 = vmatpush1.bf16.msra.mxu1 %v12554_v37  ;;  %v15045_v37 = vrot.slane %v1717_v29, %v14914_v50  ;;  %v12712_v29 = vld [vmem:[%s14845_s23 + $0x2e4] ss:$8 sps:$4 sm:$0xff]  }
  0xf0   : > { %9541 = vmatpush1.bf16.msra.mxu0 %v12557_v38  ;;  %8722 = vmatprep.subr.bf16.mxu1 %v12562_v39  ;;  %v12635_v38 = vld [vmem:[%s14845_s23 + $0x1610] ss:$8 sps:$4 sm:$0xff]   ;;  %v12640_v39 = vld [vmem:[%s14845_s23 + $0x224] ss:$8 sps:$4 sm:$0xff]  }
  0xf1   : > { %9542 = vmatprep.subr.bf16.mxu0 %v12565_v40  ;;  %v12643_v40 = vld [vmem:[%s14845_s23 + $0x1624] ss:$8 sps:$4 sm:$0xff]  }
  0xf3   : > { %8723 = vmatpush1.bf16.msra.mxu1 %v12560_v41  ;;  %v12638_v41 = vld [vmem:[%s14845_s23 + $0x220] ss:$8 sps:$4 sm:$0xff]  }
  0xf4   : > { %9543 = vmatpush1.bf16.msra.mxu0 %v12563_v42  ;;  %8724 = vmatprep.subr.bf16.mxu1 %v12568_v43  ;;  %v12641_v42 = vld [vmem:[%s14845_s23 + $0x1620] ss:$8 sps:$4 sm:$0xff]   ;;  %v12646_v43 = vld [vmem:[%s14845_s23 + $0x234] ss:$8 sps:$4 sm:$0xff]  }
  0xf5   : > { %9544 = vmatprep.subr.bf16.mxu0 %v12571_v45  ;;  %v12649_v45 = vld [vmem:[%s14845_s23 + $0x1634] ss:$8 sps:$4 sm:$0xff]  }
  0xf7   : > { %8725 = vmatpush1.bf16.msra.mxu1 %v12566_v46  ;;  %v12644_v46 = vld [vmem:[%s14845_s23 + $0x230] ss:$8 sps:$4 sm:$0xff]  }
  0xf8   : > { %9545 = vmatpush1.bf16.msra.mxu0 %v12569_v47  ;;  %8726 = vmatprep.subr.bf16.mxu1 %v12574_v48  ;;  %v12647_v47 = vld [vmem:[%s14845_s23 + $0x1630] ss:$8 sps:$4 sm:$0xff]   ;;  %v12652_v48 = vld [vmem:[%s14845_s23 + $0x244] ss:$8 sps:$4 sm:$0xff]  }
  0xf9   : > { %9546 = vmatprep.subr.bf16.mxu0 %v12577_v49  ;;  %v12655_v49 = vld [vmem:[%s14845_s23 + $0x1644] ss:$8 sps:$4 sm:$0xff]  }
  0xfb   : > { %8727 = vmatpush1.bf16.msra.mxu1 %v12572_v51  ;;  %v12650_v51 = vld [vmem:[%s14845_s23 + $0x240] ss:$8 sps:$4 sm:$0xff]  }
  0xfc   : > { %9547 = vmatpush1.bf16.msra.mxu0 %v12575_v52  ;;  %8728 = vmatprep.subr.bf16.mxu1 %v12580_v54  ;;  %v12653_v52 = vld [vmem:[%s14845_s23 + $0x1640] ss:$8 sps:$4 sm:$0xff]   ;;  %v12658_v54 = vld [vmem:[%s14845_s23 + $0x254] ss:$8 sps:$4 sm:$0xff]  }
  0xfd   : > { %9548 = vmatprep.subr.bf16.mxu0 %v12583_v55  ;;  %v12661_v55 = vld [vmem:[%s14845_s23 + $0x1654] ss:$8 sps:$4 sm:$0xff]  }
  0xff   : > { %8729 = vmatpush1.bf16.msra.mxu1 %v12578_v56  ;;  %v12656_v56 = vld [vmem:[%s14845_s23 + $0x250] ss:$8 sps:$4 sm:$0xff]  }
 0x100   : > { %9549 = vmatpush1.bf16.msra.mxu0 %v12581_v58  ;;  %8730 = vmatprep.subr.bf16.mxu1 %v12586_v59  ;;  %v12659_v58 = vld [vmem:[%s14845_s23 + $0x1650] ss:$8 sps:$4 sm:$0xff]   ;;  %v12664_v59 = vld [vmem:[%s14845_s23 + $0x264] ss:$8 sps:$4 sm:$0xff]  }
 0x101   : > { %9550 = vmatprep.subr.bf16.mxu0 %v12589_v60  ;;  %v12667_v60 = vld [vmem:[%s14845_s23 + $0x1664] ss:$8 sps:$4 sm:$0xff]  }
 0x103   : > { %8731 = vmatpush1.bf16.msra.mxu1 %v12584_v61  ;;  %v12662_v61 = vld [vmem:[%s14845_s23 + $0x260] ss:$8 sps:$4 sm:$0xff]  }
 0x104   : > { %9551 = vmatpush1.bf16.msra.mxu0 %v12587_v62  ;;  %8732 = vmatprep.subr.bf16.mxu1 %v12592_v63  ;;  %v12665_v62 = vld [vmem:[%s14845_s23 + $0x1660] ss:$8 sps:$4 sm:$0xff]   ;;  %v12670_v63 = vld [vmem:[%s14845_s23 + $0x274] ss:$8 sps:$4 sm:$0xff]  }
 0x105   : > { %9552 = vmatprep.subr.bf16.mxu0 %v12595_v0  ;;  %v12673_v0 = vld [vmem:[%s14845_s23 + $0x1674] ss:$8 sps:$4 sm:$0xff]  }
 0x107   : > { %8733 = vmatpush1.bf16.msra.mxu1 %v12590_v1  ;;  %v12668_v1 = vld [vmem:[%s14845_s23 + $0x270] ss:$8 sps:$4 sm:$0xff]  }
 0x108   : > { %9553 = vmatpush1.bf16.msra.mxu0 %v12593_v2  ;;  %8734 = vmatprep.subr.bf16.mxu1 %v12598_v3  ;;  %v12671_v2 = vld [vmem:[%s14845_s23 + $0x1670] ss:$8 sps:$4 sm:$0xff]   ;;  %v12676_v3 = vld [vmem:[%s14845_s23 + $0x284] ss:$8 sps:$4 sm:$0xff]  }
 0x109   : > { %9554 = vmatprep.subr.bf16.mxu0 %v12601_v4  ;;  %v12679_v4 = vld [vmem:[%s14845_s23 + $0x1684] ss:$8 sps:$4 sm:$0xff]  }
 0x10b   : > { %8735 = vmatpush1.bf16.msra.mxu1 %v12596_v5  ;;  %v12674_v5 = vld [vmem:[%s14845_s23 + $0x280] ss:$8 sps:$4 sm:$0xff]  }
 0x10c   : > { %9555 = vmatpush1.bf16.msra.mxu0 %v12599_v6  ;;  %8736 = vmatprep.subr.bf16.mxu1 %v12604_v7  ;;  %v12677_v6 = vld [vmem:[%s14845_s23 + $0x1680] ss:$8 sps:$4 sm:$0xff]   ;;  %v12682_v7 = vld [vmem:[%s14845_s23 + $0x294] ss:$8 sps:$4 sm:$0xff]  }
 0x10d   : > { %9556 = vmatprep.subr.bf16.mxu0 %v12607_v8  ;;  %v12685_v8 = vld [vmem:[%s14845_s23 + $0x1694] ss:$8 sps:$4 sm:$0xff]  }
 0x10f   : > { %8737 = vmatpush1.bf16.msra.mxu1 %v12602_v9  ;;  %v12680_v9 = vld [vmem:[%s14845_s23 + $0x290] ss:$8 sps:$4 sm:$0xff]  }
 0x110   : > { %9557 = vmatpush1.bf16.msra.mxu0 %v12605_v10  ;;  %8738 = vmatprep.subr.bf16.mxu1 %v12610_v11  ;;  %v12683_v10 = vld [vmem:[%s14845_s23 + $0x1690] ss:$8 sps:$4 sm:$0xff]   ;;  %v12688_v11 = vld [vmem:[%s14845_s23 + $0x2a4] ss:$8 sps:$4 sm:$0xff]  }
 0x111   : > { %9558 = vmatprep.subr.bf16.mxu0 %v12613_v12  ;;  %v12691_v12 = vld [vmem:[%s14845_s23 + $0x16a4] ss:$8 sps:$4 sm:$0xff]  }
 0x113   : > { %8739 = vmatpush1.bf16.msra.mxu1 %v12608_v13  ;;  %v12686_v13 = vld [vmem:[%s14845_s23 + $0x2a0] ss:$8 sps:$4 sm:$0xff]  }
 0x114   : > { %9559 = vmatpush1.bf16.msra.mxu0 %v12611_v14  ;;  %8740 = vmatprep.subr.bf16.mxu1 %v12616_v15  ;;  %v12689_v14 = vld [vmem:[%s14845_s23 + $0x16a0] ss:$8 sps:$4 sm:$0xff]   ;;  %v12694_v15 = vld [vmem:[%s14845_s23 + $0x2b4] ss:$8 sps:$4 sm:$0xff]  }
 0x115   : > { %9560 = vmatprep.subr.bf16.mxu0 %v12619_v16  ;;  %v12697_v16 = vld [vmem:[%s14845_s23 + $0x16b4] ss:$8 sps:$4 sm:$0xff]  }
 0x117   : > { %8741 = vmatpush1.bf16.msra.mxu1 %v12614_v21  ;;  %v12700_v21 = vld [vmem:[%s14845_s23 + $0x2c4] ss:$8 sps:$4 sm:$0xff]  }
 0x118   : > { %9561 = vmatpush1.bf16.msra.mxu0 %v12617_v22  ;;  %8742 = vmatprep.subr.bf16.mxu1 %v12622_v23  ;;  %v12703_v22 = vld [vmem:[%s14845_s23 + $0x16c4] ss:$8 sps:$4 sm:$0xff]   ;;  %v12698_v23 = vld [vmem:[%s14845_s23 + $0x2c0] ss:$8 sps:$4 sm:$0xff]  }
 0x119   : > { %9562 = vmatprep.subr.bf16.mxu0 %v12625_v24  ;;  %v12701_v24 = vld [vmem:[%s14845_s23 + $0x16c0] ss:$8 sps:$4 sm:$0xff]  }
 0x11b   : > { %8743 = vmatpush1.bf16.msra.mxu1 %v12620_v53  ;;  %v12706_v53 = vld [vmem:[%s14845_s23 + $0x2d4] ss:$8 sps:$4 sm:$0xff]  }
 0x11c   : > { %9563 = vmatpush1.bf16.msra.mxu0 %v12623_v57  ;;  %8753 = vmatprep.subr.bf16.mxu1 %v12628_v27  ;;  %v12709_v57 = vld [vmem:[%s14845_s23 + $0x16d4] ss:$8 sps:$4 sm:$0xff]   ;;  %v12704_v27 = vld [vmem:[%s14845_s23 + $0x2d0] ss:$8 sps:$4 sm:$0xff]  }
 0x11d   : > { %9573 = vmatprep.subr.bf16.mxu0 %v12631_v28  ;;  %v12707_v28 = vld [vmem:[%s14845_s23 + $0x16d0] ss:$8 sps:$4 sm:$0xff]  }
 0x11e   : > { %8745 = vmatmul.mubr.bf16.vlgmr.msra.gmra.mrb[0].mxu1 %v1746_v31  ;;  %v12710_v31 = vld [vmem:[%s14845_s23 + $0x2e0] ss:$8 sps:$4 sm:$0xff]  }
 0x11f   : > { %9565 = vmatmul.mubr.bf16.vlgmr.msra.gmra.mrb[0].mxu0 %v1991_v32  ;;  %8754 = vmatpush1.bf16.msra.mxu1 %v12626_v33  ;;  %v12713_v32 = vld [vmem:[%s14845_s23 + $0x16e0] ss:$8 sps:$4 sm:$0xff]   ;;  %v12718_v33 = vld [vmem:[%s14845_s23 + $0x2f4] ss:$8 sps:$4 sm:$0xff]  }
 0x120   : > { %9574 = vmatpush1.bf16.msra.mxu0 %v12629_v34  ;;  %8755 = vmatprep.subr.bf16.mxu1 %v12634_v35  ;;  %v12721_v34 = vld [vmem:[%s14845_s23 + $0x16f4] ss:$8 sps:$4 sm:$0xff]   ;;  %v12716_v35 = vld [vmem:[%s14845_s23 + $0x2f0] ss:$8 sps:$4 sm:$0xff]  }
 0x121   : > { %9575 = vmatprep.subr.bf16.mxu0 %v12637_v36  ;;  %8785 = vmatprep.mubr.bf16.mxu1 %v15045_v37  ;;  %v12719_v36 = vld [vmem:[%s14845_s23 + $0x16f0] ss:$8 sps:$4 sm:$0xff]  }
 0x122   : > { %9605 = vmatprep.mubr.bf16.mxu0 %v15048_v17 }
 0x123   : > { %8756 = vmatpush1.bf16.msra.mxu1 %v12632_v18  ;;  %v12724_v18 = vld [vmem:[%s14845_s23 + $0x304] ss:$8 sps:$4 sm:$0xff]  }
 0x124   : > { %9576 = vmatpush1.bf16.msra.mxu0 %v12635_v38  ;;  %8757 = vmatprep.subr.bf16.mxu1 %v12640_v39  ;;  %v12727_v38 = vld [vmem:[%s14845_s23 + $0x1704] ss:$8 sps:$4 sm:$0xff]   ;;  %v15114_v39 = vrot.slane %v15023_v25, %v14914_v50  ;;  %v1749_v25 = vcombine.high %v15045_v37, %v15045_v37 }
 0x125   : > { %9577 = vmatprep.subr.bf16.mxu0 %v12643_v40  ;;  %v15118_v40 = vrot.slane %v15026_v26, %v14914_v50  ;;  %v12728_v26 = vld [vmem:[%s14845_s23 + $0x310] ss:$8 sps:$4 sm:$0xff]   ;;  %v12736_v37 = vld [vmem:[%s14845_s23 + $0x324] ss:$8 sps:$4 sm:$0xff]  }
 0x127   : > { %8758 = vmatpush1.bf16.msra.mxu1 %v12638_v41  ;;  %v12722_v41 = vld [vmem:[%s14845_s23 + $0x300] ss:$8 sps:$4 sm:$0xff]  }
 0x128   : > { %9578 = vmatpush1.bf16.msra.mxu0 %v12641_v42  ;;  %8759 = vmatprep.subr.bf16.mxu1 %v12646_v43  ;;  %v12725_v42 = vld [vmem:[%s14845_s23 + $0x1700] ss:$8 sps:$4 sm:$0xff]   ;;  %v12730_v43 = vld [vmem:[%s14845_s23 + $0x314] ss:$8 sps:$4 sm:$0xff]  }
 0x129   : > { %9579 = vmatprep.subr.bf16.mxu0 %v12649_v45  ;;  %v12733_v45 = vld [vmem:[%s14845_s23 + $0x1714] ss:$8 sps:$4 sm:$0xff]  }
 0x12b   : > { %8760 = vmatpush1.bf16.msra.mxu1 %v12644_v46  ;;  %v1994_v46 = vcombine.high %v15048_v17, %v15048_v17  ;;  %v12734_v17 = vld [vmem:[%s14845_s23 + $0x320] ss:$8 sps:$4 sm:$0xff]  }
 0x12c   : > { %9580 = vmatpush1.bf16.msra.mxu0 %v12647_v47  ;;  %8761 = vmatprep.subr.bf16.mxu1 %v12652_v48  ;;  %v12731_v47 = vld [vmem:[%s14845_s23 + $0x1710] ss:$8 sps:$4 sm:$0xff]   ;;  %v12739_v48 = vld [vmem:[%s14845_s23 + $0x1724] ss:$8 sps:$4 sm:$0xff]  }
 0x12d   : > { %9581 = vmatprep.subr.bf16.mxu0 %v12655_v49  ;;  %v12737_v49 = vld [vmem:[%s14845_s23 + $0x1720] ss:$8 sps:$4 sm:$0xff]  }
 0x12f   : > { %8762 = vmatpush1.bf16.msra.mxu1 %v12650_v51  ;;  %v12742_v51 = vld [vmem:[%s14845_s23 + $0x334] ss:$8 sps:$4 sm:$0xff]  }
 0x130   : > { %9582 = vmatpush1.bf16.msra.mxu0 %v12653_v52  ;;  %8763 = vmatprep.subr.bf16.mxu1 %v12658_v54  ;;  %v12745_v52 = vld [vmem:[%s14845_s23 + $0x1734] ss:$8 sps:$4 sm:$0xff]   ;;  %v12740_v54 = vld [vmem:[%s14845_s23 + $0x330] ss:$8 sps:$4 sm:$0xff]  }
 0x131   : > { %9583 = vmatprep.subr.bf16.mxu0 %v12661_v55  ;;  %v12743_v55 = vld [vmem:[%s14845_s23 + $0x1730] ss:$8 sps:$4 sm:$0xff]  }
 0x133   : > { %8764 = vmatpush1.bf16.msra.mxu1 %v12656_v56  ;;  %v12748_v56 = vld [vmem:[%s14845_s23 + $0x344] ss:$8 sps:$4 sm:$0xff]  }
 0x134   : > { %9584 = vmatpush1.bf16.msra.mxu0 %v12659_v58  ;;  %8765 = vmatprep.subr.bf16.mxu1 %v12664_v59  ;;  %v12751_v58 = vld [vmem:[%s14845_s23 + $0x1744] ss:$8 sps:$4 sm:$0xff]   ;;  %v12746_v59 = vld [vmem:[%s14845_s23 + $0x340] ss:$8 sps:$4 sm:$0xff]  }
 0x135   : > { %9585 = vmatprep.subr.bf16.mxu0 %v12667_v60  ;;  %v12749_v60 = vld [vmem:[%s14845_s23 + $0x1740] ss:$8 sps:$4 sm:$0xff]  }
 0x137   : > { %8766 = vmatpush1.bf16.msra.mxu1 %v12662_v61  ;;  %v12754_v61 = vld [vmem:[%s14845_s23 + $0x354] ss:$8 sps:$4 sm:$0xff]  }
 0x138   : > { %9586 = vmatpush1.bf16.msra.mxu0 %v12665_v62  ;;  %8767 = vmatprep.subr.bf16.mxu1 %v12670_v63  ;;  %v12757_v62 = vld [vmem:[%s14845_s23 + $0x1754] ss:$8 sps:$4 sm:$0xff]   ;;  %v12752_v63 = vld [vmem:[%s14845_s23 + $0x350] ss:$8 sps:$4 sm:$0xff]  }
 0x139   : > { %9587 = vmatprep.subr.bf16.mxu0 %v12673_v0  ;;  %v12755_v0 = vld [vmem:[%s14845_s23 + $0x1750] ss:$8 sps:$4 sm:$0xff]  }
 0x13b   : > { %8768 = vmatpush1.bf16.msra.mxu1 %v12668_v1  ;;  %v12760_v1 = vld [vmem:[%s14845_s23 + $0x364] ss:$8 sps:$4 sm:$0xff]  }
 0x13c   : > { %9588 = vmatpush1.bf16.msra.mxu0 %v12671_v2  ;;  %8769 = vmatprep.subr.bf16.mxu1 %v12676_v3  ;;  %v12763_v2 = vld [vmem:[%s14845_s23 + $0x1764] ss:$8 sps:$4 sm:$0xff]   ;;  %v12758_v3 = vld [vmem:[%s14845_s23 + $0x360] ss:$8 sps:$4 sm:$0xff]  }
 0x13d   : > { %9589 = vmatprep.subr.bf16.mxu0 %v12679_v4  ;;  %v12761_v4 = vld [vmem:[%s14845_s23 + $0x1760] ss:$8 sps:$4 sm:$0xff]  }
 0x13f   : > { %8770 = vmatpush1.bf16.msra.mxu1 %v12674_v5  ;;  %v12766_v5 = vld [vmem:[%s14845_s23 + $0x374] ss:$8 sps:$4 sm:$0xff]  }
 0x140   : > { %9590 = vmatpush1.bf16.msra.mxu0 %v12677_v6  ;;  %8771 = vmatprep.subr.bf16.mxu1 %v12682_v7  ;;  %v12769_v6 = vld [vmem:[%s14845_s23 + $0x1774] ss:$8 sps:$4 sm:$0xff]   ;;  %v12764_v7 = vld [vmem:[%s14845_s23 + $0x370] ss:$8 sps:$4 sm:$0xff]  }
 0x141   : > { %9591 = vmatprep.subr.bf16.mxu0 %v12685_v8  ;;  %v12767_v8 = vld [vmem:[%s14845_s23 + $0x1770] ss:$8 sps:$4 sm:$0xff]  }
 0x143   : > { %8772 = vmatpush1.bf16.msra.mxu1 %v12680_v9  ;;  %v12772_v9 = vld [vmem:[%s14845_s23 + $0x384] ss:$8 sps:$4 sm:$0xff]  }
 0x144   : > { %9592 = vmatpush1.bf16.msra.mxu0 %v12683_v10  ;;  %8773 = vmatprep.subr.bf16.mxu1 %v12688_v11  ;;  %v12775_v10 = vld [vmem:[%s14845_s23 + $0x1784] ss:$8 sps:$4 sm:$0xff]   ;;  %v12770_v11 = vld [vmem:[%s14845_s23 + $0x380] ss:$8 sps:$4 sm:$0xff]  }
 0x145   : > { %9593 = vmatprep.subr.bf16.mxu0 %v12691_v12  ;;  %v12773_v12 = vld [vmem:[%s14845_s23 + $0x1780] ss:$8 sps:$4 sm:$0xff]  }
 0x147   : > { %8774 = vmatpush1.bf16.msra.mxu1 %v12686_v13  ;;  %v12778_v13 = vld [vmem:[%s14845_s23 + $0x394] ss:$8 sps:$4 sm:$0xff]  }
 0x148   : > { %9594 = vmatpush1.bf16.msra.mxu0 %v12689_v14  ;;  %8775 = vmatprep.subr.bf16.mxu1 %v12694_v15  ;;  %v12781_v14 = vld [vmem:[%s14845_s23 + $0x1794] ss:$8 sps:$4 sm:$0xff]   ;;  %v12776_v15 = vld [vmem:[%s14845_s23 + $0x390] ss:$8 sps:$4 sm:$0xff]  }
 0x149   : > { %9595 = vmatprep.subr.bf16.mxu0 %v12697_v16  ;;  %v12779_v16 = vld [vmem:[%s14845_s23 + $0x1790] ss:$8 sps:$4 sm:$0xff]  }
 0x14b   : > { %8776 = vmatpush1.bf16.msra.mxu1 %v12692_v19  ;;  %v12784_v19 = vld [vmem:[%s14845_s23 + $0x3a4] ss:$8 sps:$4 sm:$0xff]  }
 0x14c   : > { %9596 = vmatpush1.bf16.msra.mxu0 %v12695_v20  ;;  %8777 = vmatprep.subr.bf16.mxu1 %v12700_v21  ;;  %v12787_v20 = vld [vmem:[%s14845_s23 + $0x17a4] ss:$8 sps:$4 sm:$0xff]   ;;  %v12782_v21 = vld [vmem:[%s14845_s23 + $0x3a0] ss:$8 sps:$4 sm:$0xff]  }
 0x14d   : > { %9597 = vmatprep.subr.bf16.mxu0 %v12703_v22  ;;  %v12785_v22 = vld [vmem:[%s14845_s23 + $0x17a0] ss:$8 sps:$4 sm:$0xff]  }
 0x14f   : > { %8778 = vmatpush1.bf16.msra.mxu1 %v12698_v23  ;;  %v12790_v23 = vld [vmem:[%s14845_s23 + $0x3b4] ss:$8 sps:$4 sm:$0xff]  }
 0x150   : > { %9598 = vmatpush1.bf16.msra.mxu0 %v12701_v24  ;;  %8779 = vmatprep.subr.bf16.mxu1 %v12706_v53  ;;  %v12793_v24 = vld [vmem:[%s14845_s23 + $0x17b4] ss:$8 sps:$4 sm:$0xff]   ;;  %v12788_v53 = vld [vmem:[%s14845_s23 + $0x3b0] ss:$8 sps:$4 sm:$0xff]  }
 0x151   : > { %9599 = vmatprep.subr.bf16.mxu0 %v12709_v57  ;;  %v12791_v57 = vld [vmem:[%s14845_s23 + $0x17b0] ss:$8 sps:$4 sm:$0xff]  }
 0x153   : > { %8780 = vmatpush1.bf16.msra.mxu1 %v12704_v27  ;;  %v12796_v27 = vld [vmem:[%s14845_s23 + $0x3c4] ss:$8 sps:$4 sm:$0xff]  }
 0x154   : > { %9600 = vmatpush1.bf16.msra.mxu0 %v12707_v28  ;;  %8781 = vmatprep.subr.bf16.mxu1 %v12712_v29  ;;  %v12799_v28 = vld [vmem:[%s14845_s23 + $0x17c4] ss:$8 sps:$4 sm:$0xff]   ;;  %v12794_v29 = vld [vmem:[%s14845_s23 + $0x3c0] ss:$8 sps:$4 sm:$0xff]  }
 0x155   : > { %9601 = vmatprep.subr.bf16.mxu0 %v12715_v30  ;;  %v12797_v30 = vld [vmem:[%s14845_s23 + $0x17c0] ss:$8 sps:$4 sm:$0xff]  }
 0x157   : > { %8782 = vmatpush1.bf16.msra.mxu1 %v12710_v31  ;;  %v12802_v31 = vld [vmem:[%s14845_s23 + $0x3d4] ss:$8 sps:$4 sm:$0xff]  }
 0x158   : > { %9602 = vmatpush1.bf16.msra.mxu0 %v12713_v32  ;;  %8783 = vmatprep.subr.bf16.mxu1 %v12718_v33  ;;  %v12805_v32 = vld [vmem:[%s14845_s23 + $0x17d4] ss:$8 sps:$4 sm:$0xff]   ;;  %v12800_v33 = vld [vmem:[%s14845_s23 + $0x3d0] ss:$8 sps:$4 sm:$0xff]  }
 0x159   : > { %9603 = vmatprep.subr.bf16.mxu0 %v12721_v34  ;;  %v12803_v34 = vld [vmem:[%s14845_s23 + $0x17d0] ss:$8 sps:$4 sm:$0xff]  }
 0x15b   : > { %8784 = vmatpush1.bf16.msra.mxu1 %v12716_v35  ;;  %v12808_v35 = vld [vmem:[%s14845_s23 + $0x3e4] ss:$8 sps:$4 sm:$0xff]  }
 0x15c   : > { %9604 = vmatpush1.bf16.msra.mxu0 %v12719_v36  ;;  %8794 = vmatprep.subr.bf16.mxu1 %v12724_v18  ;;  %v12811_v36 = vld [vmem:[%s14845_s23 + $0x17e4] ss:$8 sps:$4 sm:$0xff]   ;;  %v12806_v18 = vld [vmem:[%s14845_s23 + $0x3e0] ss:$8 sps:$4 sm:$0xff]  }
 0x15d   : > { %9614 = vmatprep.subr.bf16.mxu0 %v12727_v38  ;;  %v12809_v38 = vld [vmem:[%s14845_s23 + $0x17e0] ss:$8 sps:$4 sm:$0xff]  }
 0x15e   : > { %8786 = vmatmul.mubr.bf16.vlgmr.msra.gmra.mrb[0].mxu1 %v15114_v39 }
 0x15f   : > { %9606 = vmatmul.mubr.bf16.vlgmr.msra.gmra.mrb[0].mxu0 %v15118_v40  ;;  %8795 = vmatpush1.bf16.msra.mxu1 %v12722_v41  ;;  %v15185_v41 = vld.sshfl [vmem:[%s14911_s17 + $0x8] sm:$0xff pattern:$0x75316420] }
 0x160   : > { %9615 = vmatpush1.bf16.msra.mxu0 %v12725_v42  ;;  %8796 = vmatprep.subr.bf16.mxu1 %v12730_v43  ;;  %v15188_v42 = vld.sshfl [vmem:[%s14911_s17 + $0x30] sm:$0xff pattern:$0x75316420]  ;;  %v12814_v43 = vld [vmem:[%s14845_s23 + $0x3f4] ss:$8 sps:$4 sm:$0xff]  }
 0x161   : > { %9616 = vmatprep.subr.bf16.mxu0 %v12733_v45  ;;  %8826 = vmatprep.mubr.bf16.mxu1 %v1749_v25  ;;  %v12817_v45 = vld [vmem:[%s14845_s23 + $0x17f4] ss:$8 sps:$4 sm:$0xff]   ;;  %v12812_v25 = vld [vmem:[%s14845_s23 + $0x3f0] ss:$8 sps:$4 sm:$0xff]  }
 0x162   : > { %9646 = vmatprep.mubr.bf16.mxu0 %v1994_v46  ;;  %v12815_v46 = vld [vmem:[%s14845_s23 + $0x17f0] ss:$8 sps:$4 sm:$0xff]  }
 0x163   : > { %8797 = vmatpush1.bf16.msra.mxu1 %v12728_v26  ;;  %v12820_v26 = vld [vmem:[%s14845_s23 + $0x404] ss:$8 sps:$4 sm:$0xff]  }
 0x164   : > { %9617 = vmatpush1.bf16.msra.mxu0 %v12731_v47  ;;  %8798 = vmatprep.subr.bf16.mxu1 %v12736_v37  ;;  %v12823_v47 = vld [vmem:[%s14845_s23 + $0x1804] ss:$8 sps:$4 sm:$0xff]   ;;  %v1765_v37 = vcombine.high %v15185_v41, %v15185_v41 }
 0x165   : > { %9618 = vmatprep.subr.bf16.mxu0 %v12739_v48  ;;  %v2010_v48 = vcombine.high %v15188_v42, %v15188_v42 }
 0x167   : > { %8799 = vmatpush1.bf16.msra.mxu1 %v12734_v17  ;;  %v12818_v17 = vld [vmem:[%s14845_s23 + $0x400] ss:$8 sps:$4 sm:$0xff]  }
 0x168   : > { %9619 = vmatpush1.bf16.msra.mxu0 %v12737_v49  ;;  %8800 = vmatprep.subr.bf16.mxu1 %v12742_v51  ;;  %v12821_v49 = vld [vmem:[%s14845_s23 + $0x1800] ss:$8 sps:$4 sm:$0xff]   ;;  %v1747_v51 = vcombine.high %v15114_v39, %v15114_v39  ;;  %v12824_v39 = vld [vmem:[%s14845_s23 + $0x410] ss:$8 sps:$4 sm:$0xff]  }
 0x169   : > { %9620 = vmatprep.subr.bf16.mxu0 %v12745_v52  ;;  %v1992_v52 = vcombine.high %v15118_v40, %v15118_v40  ;;  %v12827_v40 = vld [vmem:[%s14845_s23 + $0x1810] ss:$8 sps:$4 sm:$0xff]  }
 0x16b   : > { %8801 = vmatpush1.bf16.msra.mxu1 %v12740_v54  ;;  %v12826_v54 = vld [vmem:[%s14845_s23 + $0x414] ss:$8 sps:$4 sm:$0xff]  }
 0x16c   : > { %9621 = vmatpush1.bf16.msra.mxu0 %v12743_v55  ;;  %8802 = vmatprep.subr.bf16.mxu1 %v12748_v56  ;;  %v12829_v55 = vld [vmem:[%s14845_s23 + $0x1814] ss:$8 sps:$4 sm:$0xff]   ;;  %v15209_v56 = vrot.slane %v1765_v37, %v14914_v50  ;;  %v12904_v37 = vld [vmem:[%s14845_s23 + $0x4e4] ss:$8 sps:$4 sm:$0xff]  }
 0x16d   : > { %9622 = vmatprep.subr.bf16.mxu0 %v12751_v58  ;;  %v15212_v58 = vrot.slane %v2010_v48, %v14914_v50  ;;  %v12907_v48 = vld [vmem:[%s14845_s23 + $0x18e4] ss:$8 sps:$4 sm:$0xff]  }
 0x16f   : > { %8803 = vmatpush1.bf16.msra.mxu1 %v12746_v59  ;;  %v12832_v59 = vld [vmem:[%s14845_s23 + $0x424] ss:$8 sps:$4 sm:$0xff]  }
 0x170   : > { %9623 = vmatpush1.bf16.msra.mxu0 %v12749_v60  ;;  %8804 = vmatprep.subr.bf16.mxu1 %v12754_v61  ;;  %v12835_v60 = vld [vmem:[%s14845_s23 + $0x1824] ss:$8 sps:$4 sm:$0xff]   ;;  %v12830_v61 = vld [vmem:[%s14845_s23 + $0x420] ss:$8 sps:$4 sm:$0xff]  }
 0x171   : > { %9624 = vmatprep.subr.bf16.mxu0 %v12757_v62  ;;  %v12833_v62 = vld [vmem:[%s14845_s23 + $0x1820] ss:$8 sps:$4 sm:$0xff]  }
 0x173   : > { %8805 = vmatpush1.bf16.msra.mxu1 %v12752_v63  ;;  %v12838_v63 = vld [vmem:[%s14845_s23 + $0x434] ss:$8 sps:$4 sm:$0xff]  }
 0x174   : > { %9625 = vmatpush1.bf16.msra.mxu0 %v12755_v0  ;;  %8806 = vmatprep.subr.bf16.mxu1 %v12760_v1  ;;  %v12841_v0 = vld [vmem:[%s14845_s23 + $0x1834] ss:$8 sps:$4 sm:$0xff]   ;;  %v12836_v1 = vld [vmem:[%s14845_s23 + $0x430] ss:$8 sps:$4 sm:$0xff]  }
 0x175   : > { %9626 = vmatprep.subr.bf16.mxu0 %v12763_v2  ;;  %v12839_v2 = vld [vmem:[%s14845_s23 + $0x1830] ss:$8 sps:$4 sm:$0xff]  }
 0x177   : > { %8807 = vmatpush1.bf16.msra.mxu1 %v12758_v3  ;;  %v12844_v3 = vld [vmem:[%s14845_s23 + $0x444] ss:$8 sps:$4 sm:$0xff]  }
 0x178   : > { %9627 = vmatpush1.bf16.msra.mxu0 %v12761_v4  ;;  %8808 = vmatprep.subr.bf16.mxu1 %v12766_v5  ;;  %v12847_v4 = vld [vmem:[%s14845_s23 + $0x1844] ss:$8 sps:$4 sm:$0xff]   ;;  %v12842_v5 = vld [vmem:[%s14845_s23 + $0x440] ss:$8 sps:$4 sm:$0xff]  }
 0x179   : > { %9628 = vmatprep.subr.bf16.mxu0 %v12769_v6  ;;  %v12845_v6 = vld [vmem:[%s14845_s23 + $0x1840] ss:$8 sps:$4 sm:$0xff]  }
 0x17b   : > { %8809 = vmatpush1.bf16.msra.mxu1 %v12764_v7  ;;  %v12850_v7 = vld [vmem:[%s14845_s23 + $0x454] ss:$8 sps:$4 sm:$0xff]  }
 0x17c   : > { %9629 = vmatpush1.bf16.msra.mxu0 %v12767_v8  ;;  %8810 = vmatprep.subr.bf16.mxu1 %v12772_v9  ;;  %v12853_v8 = vld [vmem:[%s14845_s23 + $0x1854] ss:$8 sps:$4 sm:$0xff]   ;;  %v12848_v9 = vld [vmem:[%s14845_s23 + $0x450] ss:$8 sps:$4 sm:$0xff]  }
 0x17d   : > { %9630 = vmatprep.subr.bf16.mxu0 %v12775_v10  ;;  %v12851_v10 = vld [vmem:[%s14845_s23 + $0x1850] ss:$8 sps:$4 sm:$0xff]  }
 0x17f   : > { %8811 = vmatpush1.bf16.msra.mxu1 %v12770_v11  ;;  %v12856_v11 = vld [vmem:[%s14845_s23 + $0x464] ss:$8 sps:$4 sm:$0xff]  }
 0x180   : > { %9631 = vmatpush1.bf16.msra.mxu0 %v12773_v12  ;;  %8812 = vmatprep.subr.bf16.mxu1 %v12778_v13  ;;  %v12859_v12 = vld [vmem:[%s14845_s23 + $0x1864] ss:$8 sps:$4 sm:$0xff]   ;;  %v12854_v13 = vld [vmem:[%s14845_s23 + $0x460] ss:$8 sps:$4 sm:$0xff]  }
 0x181   : > { %9632 = vmatprep.subr.bf16.mxu0 %v12781_v14  ;;  %v12857_v14 = vld [vmem:[%s14845_s23 + $0x1860] ss:$8 sps:$4 sm:$0xff]  }
 0x183   : > { %8813 = vmatpush1.bf16.msra.mxu1 %v12776_v15  ;;  %v12862_v15 = vld [vmem:[%s14845_s23 + $0x474] ss:$8 sps:$4 sm:$0xff]  }
 0x184   : > { %9633 = vmatpush1.bf16.msra.mxu0 %v12779_v16  ;;  %8814 = vmatprep.subr.bf16.mxu1 %v12784_v19  ;;  %v12865_v16 = vld [vmem:[%s14845_s23 + $0x1874] ss:$8 sps:$4 sm:$0xff]   ;;  %v12860_v19 = vld [vmem:[%s14845_s23 + $0x470] ss:$8 sps:$4 sm:$0xff]  }
 0x185   : > { %9634 = vmatprep.subr.bf16.mxu0 %v12787_v20  ;;  %v12863_v20 = vld [vmem:[%s14845_s23 + $0x1870] ss:$8 sps:$4 sm:$0xff]  }
 0x187   : > { %8815 = vmatpush1.bf16.msra.mxu1 %v12782_v21  ;;  %v12868_v21 = vld [vmem:[%s14845_s23 + $0x484] ss:$8 sps:$4 sm:$0xff]  }
 0x188   : > { %9635 = vmatpush1.bf16.msra.mxu0 %v12785_v22  ;;  %8816 = vmatprep.subr.bf16.mxu1 %v12790_v23  ;;  %v12871_v22 = vld [vmem:[%s14845_s23 + $0x1884] ss:$8 sps:$4 sm:$0xff]   ;;  %v12866_v23 = vld [vmem:[%s14845_s23 + $0x480] ss:$8 sps:$4 sm:$0xff]  }
 0x189   : > { %9636 = vmatprep.subr.bf16.mxu0 %v12793_v24  ;;  %v12869_v24 = vld [vmem:[%s14845_s23 + $0x1880] ss:$8 sps:$4 sm:$0xff]  }
 0x18b   : > { %8817 = vmatpush1.bf16.msra.mxu1 %v12788_v53  ;;  %v12874_v53 = vld [vmem:[%s14845_s23 + $0x494] ss:$8 sps:$4 sm:$0xff]  }
 0x18c   : > { %9637 = vmatpush1.bf16.msra.mxu0 %v12791_v57  ;;  %8818 = vmatprep.subr.bf16.mxu1 %v12796_v27  ;;  %v12877_v57 = vld [vmem:[%s14845_s23 + $0x1894] ss:$8 sps:$4 sm:$0xff]   ;;  %v12872_v27 = vld [vmem:[%s14845_s23 + $0x490] ss:$8 sps:$4 sm:$0xff]  }
 0x18d   : > { %9638 = vmatprep.subr.bf16.mxu0 %v12799_v28  ;;  %v12875_v28 = vld [vmem:[%s14845_s23 + $0x1890] ss:$8 sps:$4 sm:$0xff]  }
 0x18f   : > { %8819 = vmatpush1.bf16.msra.mxu1 %v12794_v29  ;;  %v12880_v29 = vld [vmem:[%s14845_s23 + $0x4a4] ss:$8 sps:$4 sm:$0xff]  }
 0x190   : > { %9639 = vmatpush1.bf16.msra.mxu0 %v12797_v30  ;;  %8820 = vmatprep.subr.bf16.mxu1 %v12802_v31  ;;  %v12883_v30 = vld [vmem:[%s14845_s23 + $0x18a4] ss:$8 sps:$4 sm:$0xff]   ;;  %v12878_v31 = vld [vmem:[%s14845_s23 + $0x4a0] ss:$8 sps:$4 sm:$0xff]  }
 0x191   : > { %9640 = vmatprep.subr.bf16.mxu0 %v12805_v32  ;;  %v12881_v32 = vld [vmem:[%s14845_s23 + $0x18a0] ss:$8 sps:$4 sm:$0xff]  }
 0x193   : > { %8821 = vmatpush1.bf16.msra.mxu1 %v12800_v33  ;;  %v12886_v33 = vld [vmem:[%s14845_s23 + $0x4b4] ss:$8 sps:$4 sm:$0xff]  }
 0x194   : > { %9641 = vmatpush1.bf16.msra.mxu0 %v12803_v34  ;;  %8822 = vmatprep.subr.bf16.mxu1 %v12808_v35  ;;  %v12889_v34 = vld [vmem:[%s14845_s23 + $0x18b4] ss:$8 sps:$4 sm:$0xff]   ;;  %v12884_v35 = vld [vmem:[%s14845_s23 + $0x4b0] ss:$8 sps:$4 sm:$0xff]  }
 0x195   : > { %9642 = vmatprep.subr.bf16.mxu0 %v12811_v36  ;;  %v12887_v36 = vld [vmem:[%s14845_s23 + $0x18b0] ss:$8 sps:$4 sm:$0xff]  }
 0x197   : > { %8823 = vmatpush1.bf16.msra.mxu1 %v12806_v18  ;;  %v12892_v18 = vld [vmem:[%s14845_s23 + $0x4c4] ss:$8 sps:$4 sm:$0xff]  }
 0x198   : > { %9643 = vmatpush1.bf16.msra.mxu0 %v12809_v38  ;;  %8824 = vmatprep.subr.bf16.mxu1 %v12814_v43  ;;  %v12895_v38 = vld [vmem:[%s14845_s23 + $0x18c4] ss:$8 sps:$4 sm:$0xff]   ;;  %v12890_v43 = vld [vmem:[%s14845_s23 + $0x4c0] ss:$8 sps:$4 sm:$0xff]  }
 0x199   : > { %9644 = vmatprep.subr.bf16.mxu0 %v12817_v45  ;;  %v12893_v45 = vld [vmem:[%s14845_s23 + $0x18c0] ss:$8 sps:$4 sm:$0xff]  }
 0x19b   : > { %8825 = vmatpush1.bf16.msra.mxu1 %v12812_v25  ;;  %v12898_v25 = vld [vmem:[%s14845_s23 + $0x4d4] ss:$8 sps:$4 sm:$0xff]  }
 0x19c   : > { %9645 = vmatpush1.bf16.msra.mxu0 %v12815_v46  ;;  %8835 = vmatprep.subr.bf16.mxu1 %v12820_v26  ;;  %v12901_v46 = vld [vmem:[%s14845_s23 + $0x18d4] ss:$8 sps:$4 sm:$0xff]   ;;  %v12896_v26 = vld [vmem:[%s14845_s23 + $0x4d0] ss:$8 sps:$4 sm:$0xff]  }
 0x19d   : > { %9655 = vmatprep.subr.bf16.mxu0 %v12823_v47  ;;  %v12899_v47 = vld [vmem:[%s14845_s23 + $0x18d0] ss:$8 sps:$4 sm:$0xff]  }
 0x19e   : > { %8827 = vmatmul.mubr.bf16.vlgmr.msra.gmra.mrb[0].mxu1 %v1747_v51  ;;  %v12910_v51 = vld [vmem:[%s14845_s23 + $0x4f4] ss:$8 sps:$4 sm:$0xff]  }
 0x19f   : > { %9647 = vmatmul.mubr.bf16.vlgmr.msra.gmra.mrb[0].mxu0 %v1992_v52  ;;  %8836 = vmatpush1.bf16.msra.mxu1 %v12818_v17  ;;  %v12902_v17 = vld [vmem:[%s14845_s23 + $0x4e0] ss:$8 sps:$4 sm:$0xff]   ;;  %v12913_v52 = vld [vmem:[%s14845_s23 + $0x18f4] ss:$8 sps:$4 sm:$0xff]  }
 0x1a0   : > { %9656 = vmatpush1.bf16.msra.mxu0 %v12821_v49  ;;  %8837 = vmatprep.subr.bf16.mxu1 %v12826_v54  ;;  %v12905_v49 = vld [vmem:[%s14845_s23 + $0x18e0] ss:$8 sps:$4 sm:$0xff]   ;;  %v12908_v54 = vld [vmem:[%s14845_s23 + $0x4f0] ss:$8 sps:$4 sm:$0xff]  }
 0x1a1   : > { %9657 = vmatprep.subr.bf16.mxu0 %v12829_v55  ;;  %8867 = vmatprep.mubr.bf16.mxu1 %v15209_v56  ;;  %v12911_v55 = vld [vmem:[%s14845_s23 + $0x18f0] ss:$8 sps:$4 sm:$0xff]  }
 0x1a2   : > { %9687 = vmatprep.mubr.bf16.mxu0 %v15212_v58 }
 0x1a3   : > { %8838 = vmatpush1.bf16.msra.mxu1 %v12824_v39  ;;  %v12916_v39 = vld [vmem:[%s14845_s23 + $0x504] ss:$8 sps:$4 sm:$0xff]  }
 0x1a4   : > { %9658 = vmatpush1.bf16.msra.mxu0 %v12827_v40  ;;  %8839 = vmatprep.subr.bf16.mxu1 %v12832_v59  ;;  %v12919_v40 = vld [vmem:[%s14845_s23 + $0x1904] ss:$8 sps:$4 sm:$0xff]   ;;  %v15278_v59 = vrot.slane %v15185_v41, %v14914_v50  ;;  %v1797_v41 = vcombine.high %v15209_v56, %v15209_v56 }
 0x1a5   : > { %9659 = vmatprep.subr.bf16.mxu0 %v12835_v60  ;;  %v15282_v60 = vrot.slane %v15188_v42, %v14914_v50  ;;  %v12920_v42 = vld [vmem:[%s14845_s23 + $0x510] ss:$8 sps:$4 sm:$0xff]   ;;  %v12928_v56 = vld [vmem:[%s14845_s23 + $0x524] ss:$8 sps:$4 sm:$0xff]  }
 0x1a7   : > { %8840 = vmatpush1.bf16.msra.mxu1 %v12830_v61  ;;  %v12914_v61 = vld [vmem:[%s14845_s23 + $0x500] ss:$8 sps:$4 sm:$0xff]  }
 0x1a8   : > { %9660 = vmatpush1.bf16.msra.mxu0 %v12833_v62  ;;  %8841 = vmatprep.subr.bf16.mxu1 %v12838_v63  ;;  %v12917_v62 = vld [vmem:[%s14845_s23 + $0x1900] ss:$8 sps:$4 sm:$0xff]   ;;  %v12922_v63 = vld [vmem:[%s14845_s23 + $0x514] ss:$8 sps:$4 sm:$0xff]  }
 0x1a9   : > { %9661 = vmatprep.subr.bf16.mxu0 %v12841_v0  ;;  %v12925_v0 = vld [vmem:[%s14845_s23 + $0x1914] ss:$8 sps:$4 sm:$0xff]  }
 0x1ab   : > { %8842 = vmatpush1.bf16.msra.mxu1 %v12836_v1  ;;  %v2042_v1 = vcombine.high %v15212_v58, %v15212_v58  ;;  %v12926_v58 = vld [vmem:[%s14845_s23 + $0x520] ss:$8 sps:$4 sm:$0xff]  }
 0x1ac   : > { %9662 = vmatpush1.bf16.msra.mxu0 %v12839_v2  ;;  %8843 = vmatprep.subr.bf16.mxu1 %v12844_v3  ;;  %v12923_v2 = vld [vmem:[%s14845_s23 + $0x1910] ss:$8 sps:$4 sm:$0xff]   ;;  %v12931_v3 = vld [vmem:[%s14845_s23 + $0x1924] ss:$8 sps:$4 sm:$0xff]  }
 0x1ad   : > { %9663 = vmatprep.subr.bf16.mxu0 %v12847_v4  ;;  %v12929_v4 = vld [vmem:[%s14845_s23 + $0x1920] ss:$8 sps:$4 sm:$0xff]  }
 0x1af   : > { %8844 = vmatpush1.bf16.msra.mxu1 %v12842_v5  ;;  %v12934_v5 = vld [vmem:[%s14845_s23 + $0x534] ss:$8 sps:$4 sm:$0xff]  }
 0x1b0   : > { %9664 = vmatpush1.bf16.msra.mxu0 %v12845_v6  ;;  %8845 = vmatprep.subr.bf16.mxu1 %v12850_v7  ;;  %v12937_v6 = vld [vmem:[%s14845_s23 + $0x1934] ss:$8 sps:$4 sm:$0xff]   ;;  %v12932_v7 = vld [vmem:[%s14845_s23 + $0x530] ss:$8 sps:$4 sm:$0xff]  }
 0x1b1   : > { %9665 = vmatprep.subr.bf16.mxu0 %v12853_v8  ;;  %v12935_v8 = vld [vmem:[%s14845_s23 + $0x1930] ss:$8 sps:$4 sm:$0xff]  }
 0x1b3   : > { %8846 = vmatpush1.bf16.msra.mxu1 %v12848_v9  ;;  %v12940_v9 = vld [vmem:[%s14845_s23 + $0x544] ss:$8 sps:$4 sm:$0xff]  }
 0x1b4   : > { %9666 = vmatpush1.bf16.msra.mxu0 %v12851_v10  ;;  %8847 = vmatprep.subr.bf16.mxu1 %v12856_v11  ;;  %v12943_v10 = vld [vmem:[%s14845_s23 + $0x1944] ss:$8 sps:$4 sm:$0xff]   ;;  %v12938_v11 = vld [vmem:[%s14845_s23 + $0x540] ss:$8 sps:$4 sm:$0xff]  }
 0x1b5   : > { %9667 = vmatprep.subr.bf16.mxu0 %v12859_v12  ;;  %v12941_v12 = vld [vmem:[%s14845_s23 + $0x1940] ss:$8 sps:$4 sm:$0xff]  }
 0x1b7   : > { %8848 = vmatpush1.bf16.msra.mxu1 %v12854_v13  ;;  %v12946_v13 = vld [vmem:[%s14845_s23 + $0x554] ss:$8 sps:$4 sm:$0xff]  }
 0x1b8   : > { %9668 = vmatpush1.bf16.msra.mxu0 %v12857_v14  ;;  %8849 = vmatprep.subr.bf16.mxu1 %v12862_v15  ;;  %v12949_v14 = vld [vmem:[%s14845_s23 + $0x1954] ss:$8 sps:$4 sm:$0xff]   ;;  %v12944_v15 = vld [vmem:[%s14845_s23 + $0x550] ss:$8 sps:$4 sm:$0xff]  }
 0x1b9   : > { %9669 = vmatprep.subr.bf16.mxu0 %v12865_v16  ;;  %v12947_v16 = vld [vmem:[%s14845_s23 + $0x1950] ss:$8 sps:$4 sm:$0xff]  }
 0x1bb   : > { %8850 = vmatpush1.bf16.msra.mxu1 %v12860_v19  ;;  %v12952_v19 = vld [vmem:[%s14845_s23 + $0x564] ss:$8 sps:$4 sm:$0xff]  }
 0x1bc   : > { %9670 = vmatpush1.bf16.msra.mxu0 %v12863_v20  ;;  %8851 = vmatprep.subr.bf16.mxu1 %v12868_v21  ;;  %v12955_v20 = vld [vmem:[%s14845_s23 + $0x1964] ss:$8 sps:$4 sm:$0xff]   ;;  %v12950_v21 = vld [vmem:[%s14845_s23 + $0x560] ss:$8 sps:$4 sm:$0xff]  }
 0x1bd   : > { %9671 = vmatprep.subr.bf16.mxu0 %v12871_v22  ;;  %v12953_v22 = vld [vmem:[%s14845_s23 + $0x1960] ss:$8 sps:$4 sm:$0xff]  }
 0x1bf   : > { %8852 = vmatpush1.bf16.msra.mxu1 %v12866_v23  ;;  %v12958_v23 = vld [vmem:[%s14845_s23 + $0x574] ss:$8 sps:$4 sm:$0xff]  }
 0x1c0   : > { %9672 = vmatpush1.bf16.msra.mxu0 %v12869_v24  ;;  %8853 = vmatprep.subr.bf16.mxu1 %v12874_v53  ;;  %v12961_v24 = vld [vmem:[%s14845_s23 + $0x1974] ss:$8 sps:$4 sm:$0xff]   ;;  %v12956_v53 = vld [vmem:[%s14845_s23 + $0x570] ss:$8 sps:$4 sm:$0xff]  }
 0x1c1   : > { %9673 = vmatprep.subr.bf16.mxu0 %v12877_v57  ;;  %v12959_v57 = vld [vmem:[%s14845_s23 + $0x1970] ss:$8 sps:$4 sm:$0xff]  }
 0x1c3   : > { %8854 = vmatpush1.bf16.msra.mxu1 %v12872_v27  ;;  %v12964_v27 = vld [vmem:[%s14845_s23 + $0x584] ss:$8 sps:$4 sm:$0xff]  }
 0x1c4   : > { %9674 = vmatpush1.bf16.msra.mxu0 %v12875_v28  ;;  %8855 = vmatprep.subr.bf16.mxu1 %v12880_v29  ;;  %v12967_v28 = vld [vmem:[%s14845_s23 + $0x1984] ss:$8 sps:$4 sm:$0xff]   ;;  %v12962_v29 = vld [vmem:[%s14845_s23 + $0x580] ss:$8 sps:$4 sm:$0xff]  }
 0x1c5   : > { %9675 = vmatprep.subr.bf16.mxu0 %v12883_v30  ;;  %v12965_v30 = vld [vmem:[%s14845_s23 + $0x1980] ss:$8 sps:$4 sm:$0xff]  }
 0x1c7   : > { %8856 = vmatpush1.bf16.msra.mxu1 %v12878_v31  ;;  %v12970_v31 = vld [vmem:[%s14845_s23 + $0x594] ss:$8 sps:$4 sm:$0xff]  }
 0x1c8   : > { %9676 = vmatpush1.bf16.msra.mxu0 %v12881_v32  ;;  %8857 = vmatprep.subr.bf16.mxu1 %v12886_v33  ;;  %v12973_v32 = vld [vmem:[%s14845_s23 + $0x1994] ss:$8 sps:$4 sm:$0xff]   ;;  %v12968_v33 = vld [vmem:[%s14845_s23 + $0x590] ss:$8 sps:$4 sm:$0xff]  }
 0x1c9   : > { %9677 = vmatprep.subr.bf16.mxu0 %v12889_v34  ;;  %v12971_v34 = vld [vmem:[%s14845_s23 + $0x1990] ss:$8 sps:$4 sm:$0xff]  }
 0x1cb   : > { %8858 = vmatpush1.bf16.msra.mxu1 %v12884_v35  ;;  %v12976_v35 = vld [vmem:[%s14845_s23 + $0x5a4] ss:$8 sps:$4 sm:$0xff]  }
 0x1cc   : > { %9678 = vmatpush1.bf16.msra.mxu0 %v12887_v36  ;;  %8859 = vmatprep.subr.bf16.mxu1 %v12892_v18  ;;  %v12979_v36 = vld [vmem:[%s14845_s23 + $0x19a4] ss:$8 sps:$4 sm:$0xff]   ;;  %v12974_v18 = vld [vmem:[%s14845_s23 + $0x5a0] ss:$8 sps:$4 sm:$0xff]  }
 0x1cd   : > { %9679 = vmatprep.subr.bf16.mxu0 %v12895_v38  ;;  %v12977_v38 = vld [vmem:[%s14845_s23 + $0x19a0] ss:$8 sps:$4 sm:$0xff]  }
 0x1cf   : > { %8860 = vmatpush1.bf16.msra.mxu1 %v12890_v43  ;;  %v12982_v43 = vld [vmem:[%s14845_s23 + $0x5b4] ss:$8 sps:$4 sm:$0xff]  }
 0x1d0   : > { %9680 = vmatpush1.bf16.msra.mxu0 %v12893_v45  ;;  %8861 = vmatprep.subr.bf16.mxu1 %v12898_v25  ;;  %v12985_v45 = vld [vmem:[%s14845_s23 + $0x19b4] ss:$8 sps:$4 sm:$0xff]   ;;  %v12980_v25 = vld [vmem:[%s14845_s23 + $0x5b0] ss:$8 sps:$4 sm:$0xff]  }
 0x1d1   : > { %9681 = vmatprep.subr.bf16.mxu0 %v12901_v46  ;;  %v12983_v46 = vld [vmem:[%s14845_s23 + $0x19b0] ss:$8 sps:$4 sm:$0xff]  }
 0x1d3   : > { %8862 = vmatpush1.bf16.msra.mxu1 %v12896_v26  ;;  %v12988_v26 = vld [vmem:[%s14845_s23 + $0x5c4] ss:$8 sps:$4 sm:$0xff]  }
 0x1d4   : > { %9682 = vmatpush1.bf16.msra.mxu0 %v12899_v47  ;;  %8863 = vmatprep.subr.bf16.mxu1 %v12904_v37  ;;  %v12991_v47 = vld [vmem:[%s14845_s23 + $0x19c4] ss:$8 sps:$4 sm:$0xff]   ;;  %v12986_v37 = vld [vmem:[%s14845_s23 + $0x5c0] ss:$8 sps:$4 sm:$0xff]  }
 0x1d5   : > { %9683 = vmatprep.subr.bf16.mxu0 %v12907_v48  ;;  %v12989_v48 = vld [vmem:[%s14845_s23 + $0x19c0] ss:$8 sps:$4 sm:$0xff]  }
 0x1d7   : > { %8864 = vmatpush1.bf16.msra.mxu1 %v12902_v17  ;;  %v12994_v17 = vld [vmem:[%s14845_s23 + $0x5d4] ss:$8 sps:$4 sm:$0xff]  }
 0x1d8   : > { %9684 = vmatpush1.bf16.msra.mxu0 %v12905_v49  ;;  %8865 = vmatprep.subr.bf16.mxu1 %v12910_v51  ;;  %v12997_v49 = vld [vmem:[%s14845_s23 + $0x19d4] ss:$8 sps:$4 sm:$0xff]   ;;  %v12992_v51 = vld [vmem:[%s14845_s23 + $0x5d0] ss:$8 sps:$4 sm:$0xff]  }
 0x1d9   : > { %9685 = vmatprep.subr.bf16.mxu0 %v12913_v52  ;;  %v12995_v52 = vld [vmem:[%s14845_s23 + $0x19d0] ss:$8 sps:$4 sm:$0xff]  }
 0x1db   : > { %8866 = vmatpush1.bf16.msra.mxu1 %v12908_v54  ;;  %v13000_v54 = vld [vmem:[%s14845_s23 + $0x5e4] ss:$8 sps:$4 sm:$0xff]  }
 0x1dc   : > { %9686 = vmatpush1.bf16.msra.mxu0 %v12911_v55  ;;  %8876 = vmatprep.subr.bf16.mxu1 %v12916_v39  ;;  %v13003_v55 = vld [vmem:[%s14845_s23 + $0x19e4] ss:$8 sps:$4 sm:$0xff]  }
 0x1dd   : > { %9696 = vmatprep.subr.bf16.mxu0 %v12919_v40  ;;  %v14362_v39 = vld [vmem:[%s14911_s17 + $0x8] sm:$0xff] }
 0x1de   : > { %8868 = vmatmul.mubr.bf16.vlgmr.msra.gmra.mrb[0].mxu1 %v15278_v59  ;;  %v1750_v40 = vcombine.high %v14362_v39, %v14362_v39  ;;  %v13078_v39 = vld [vmem:[%s14845_s23 + $0x6b4] ss:$8 sps:$4 sm:$0xff]  }
 0x1df   : > { %9688 = vmatmul.mubr.bf16.vlgmr.msra.gmra.mrb[0].mxu0 %v15282_v60  ;;  %8877 = vmatpush1.bf16.msra.mxu1 %v12914_v61  ;;  %v14363_v61 = vld [vmem:[%s14911_s17 + $0x30] sm:$0xff] }
 0x1e0   : > { %9697 = vmatpush1.bf16.msra.mxu0 %v12917_v62  ;;  %8878 = vmatprep.subr.bf16.mxu1 %v12922_v63  ;;  %v1995_v62 = vcombine.high %v14363_v61, %v14363_v61  ;;  %v12998_v63 = vld [vmem:[%s14845_s23 + $0x5e0] ss:$8 sps:$4 sm:$0xff]   ;;  %v13076_v61 = vld [vmem:[%s14845_s23 + $0x6b0] ss:$8 sps:$4 sm:$0xff]  }
 0x1e1   : > { %9698 = vmatprep.subr.bf16.mxu0 %v12925_v0  ;;  %8908 = vmatprep.mubr.bf16.mxu1 %v1797_v41  ;;  %v13001_v0 = vld [vmem:[%s14845_s23 + $0x19e0] ss:$8 sps:$4 sm:$0xff]   ;;  %v13006_v41 = vld [vmem:[%s14845_s23 + $0x5f4] ss:$8 sps:$4 sm:$0xff]  }
 0x1e2   : > { %9728 = vmatprep.mubr.bf16.mxu0 %v2042_v1  ;;  %v13009_v1 = vld [vmem:[%s14845_s23 + $0x19f4] ss:$8 sps:$4 sm:$0xff]  }
 0x1e3   : > { %8879 = vmatpush1.bf16.msra.mxu1 %v12920_v42  ;;  %v15353_v42 = vrot.slane %v1750_v40, %v14914_v50  ;;  %v13081_v40 = vld [vmem:[%s14845_s23 + $0x1ab4] ss:$8 sps:$4 sm:$0xff]  }
 0x1e4   : > { %9699 = vmatpush1.bf16.msra.mxu0 %v12923_v2  ;;  %8880 = vmatprep.subr.bf16.mxu1 %v12928_v56  ;;  %v15356_v2 = vrot.slane %v1995_v62, %v14914_v50  ;;  %v13004_v56 = vld [vmem:[%s14845_s23 + $0x5f0] ss:$8 sps:$4 sm:$0xff]  }
 0x1e5   : > { %9700 = vmatprep.subr.bf16.mxu0 %v12931_v3  ;;  %v13007_v3 = vld [vmem:[%s14845_s23 + $0x19f0] ss:$8 sps:$4 sm:$0xff]  }
 0x1e6   : > { %v13079_v62 = vld [vmem:[%s14845_s23 + $0x1ab0] ss:$8 sps:$4 sm:$0xff]  }
 0x1e7   : > { %8881 = vmatpush1.bf16.msra.mxu1 %v12926_v58  ;;  %v13012_v58 = vld [vmem:[%s14845_s23 + $0x604] ss:$8 sps:$4 sm:$0xff]  }
 0x1e8   : > { %9701 = vmatpush1.bf16.msra.mxu0 %v12929_v4  ;;  %8882 = vmatprep.subr.bf16.mxu1 %v12934_v5  ;;  %v13015_v4 = vld [vmem:[%s14845_s23 + $0x1a04] ss:$8 sps:$4 sm:$0xff]   ;;  %v1766_v5 = vcombine.high %v15353_v42, %v15353_v42 }
 0x1e9   : > { %9702 = vmatprep.subr.bf16.mxu0 %v12937_v6  ;;  %v2011_v6 = vcombine.high %v15356_v2, %v15356_v2 }
 0x1eb   : > { %8883 = vmatpush1.bf16.msra.mxu1 %v12932_v7  ;;  %v1795_v7 = vcombine.high %v15278_v59, %v15278_v59  ;;  %v15378_v59 = vrot.slane %v2011_v6, %v14914_v50  ;;  %v13099_v6 = vld [vmem:[%s14845_s23 + $0x1ae4] ss:$8 sps:$4 sm:$0xff]  }
 0x1ec   : > { %9703 = vmatpush1.bf16.msra.mxu0 %v12935_v8  ;;  %8884 = vmatprep.subr.bf16.mxu1 %v12940_v9  ;;  %v2040_v8 = vcombine.high %v15282_v60, %v15282_v60  ;;  %v13010_v9 = vld [vmem:[%s14845_s23 + $0x600] ss:$8 sps:$4 sm:$0xff]   ;;  %v13016_v60 = vld [vmem:[%s14845_s23 + $0x610] ss:$8 sps:$4 sm:$0xff]  }
 0x1ed   : > { %9704 = vmatprep.subr.bf16.mxu0 %v12943_v10  ;;  %v13013_v10 = vld [vmem:[%s14845_s23 + $0x1a00] ss:$8 sps:$4 sm:$0xff]  }
 0x1ef   : > { %8885 = vmatpush1.bf16.msra.mxu1 %v12938_v11  ;;  %v13018_v11 = vld [vmem:[%s14845_s23 + $0x614] ss:$8 sps:$4 sm:$0xff]  }
 0x1f0   : > { %9705 = vmatpush1.bf16.msra.mxu0 %v12941_v12  ;;  %8886 = vmatprep.subr.bf16.mxu1 %v12946_v13  ;;  %v13021_v12 = vld [vmem:[%s14845_s23 + $0x1a14] ss:$8 sps:$4 sm:$0xff]   ;;  %v15375_v13 = vrot.slane %v1766_v5, %v14914_v50  ;;  %v13096_v5 = vld [vmem:[%s14845_s23 + $0x6e4] ss:$8 sps:$4 sm:$0xff]  }
 0x1f1   : > { %9706 = vmatprep.subr.bf16.mxu0 %v12949_v14  ;;  %v13019_v14 = vld [vmem:[%s14845_s23 + $0x1a10] ss:$8 sps:$4 sm:$0xff]  }
 0x1f3   : > { %8887 = vmatpush1.bf16.msra.mxu1 %v12944_v15  ;;  %v13024_v15 = vld [vmem:[%s14845_s23 + $0x624] ss:$8 sps:$4 sm:$0xff]  }
 0x1f4   : > { %9707 = vmatpush1.bf16.msra.mxu0 %v12947_v16  ;;  %8888 = vmatprep.subr.bf16.mxu1 %v12952_v19  ;;  %v13027_v16 = vld [vmem:[%s14845_s23 + $0x1a24] ss:$8 sps:$4 sm:$0xff]   ;;  %v13022_v19 = vld [vmem:[%s14845_s23 + $0x620] ss:$8 sps:$4 sm:$0xff]  }
 0x1f5   : > { %9708 = vmatprep.subr.bf16.mxu0 %v12955_v20  ;;  %v13025_v20 = vld [vmem:[%s14845_s23 + $0x1a20] ss:$8 sps:$4 sm:$0xff]  }
 0x1f7   : > { %8889 = vmatpush1.bf16.msra.mxu1 %v12950_v21  ;;  %v13030_v21 = vld [vmem:[%s14845_s23 + $0x634] ss:$8 sps:$4 sm:$0xff]  }
 0x1f8   : > { %9709 = vmatpush1.bf16.msra.mxu0 %v12953_v22  ;;  %8890 = vmatprep.subr.bf16.mxu1 %v12958_v23  ;;  %v13033_v22 = vld [vmem:[%s14845_s23 + $0x1a34] ss:$8 sps:$4 sm:$0xff]   ;;  %v13028_v23 = vld [vmem:[%s14845_s23 + $0x630] ss:$8 sps:$4 sm:$0xff]  }
 0x1f9   : > { %9710 = vmatprep.subr.bf16.mxu0 %v12961_v24  ;;  %v13031_v24 = vld [vmem:[%s14845_s23 + $0x1a30] ss:$8 sps:$4 sm:$0xff]  }
 0x1fb   : > { %8891 = vmatpush1.bf16.msra.mxu1 %v12956_v53  ;;  %v13036_v53 = vld [vmem:[%s14845_s23 + $0x644] ss:$8 sps:$4 sm:$0xff]  }
 0x1fc   : > { %9711 = vmatpush1.bf16.msra.mxu0 %v12959_v57  ;;  %8892 = vmatprep.subr.bf16.mxu1 %v12964_v27  ;;  %v13039_v57 = vld [vmem:[%s14845_s23 + $0x1a44] ss:$8 sps:$4 sm:$0xff]   ;;  %v13034_v27 = vld [vmem:[%s14845_s23 + $0x640] ss:$8 sps:$4 sm:$0xff]  }
 0x1fd   : > { %9712 = vmatprep.subr.bf16.mxu0 %v12967_v28  ;;  %v13037_v28 = vld [vmem:[%s14845_s23 + $0x1a40] ss:$8 sps:$4 sm:$0xff]  }
 0x1ff   : > { %8893 = vmatpush1.bf16.msra.mxu1 %v12962_v29  ;;  %v13042_v29 = vld [vmem:[%s14845_s23 + $0x654] ss:$8 sps:$4 sm:$0xff]  }
 0x200   : > { %9713 = vmatpush1.bf16.msra.mxu0 %v12965_v30  ;;  %8894 = vmatprep.subr.bf16.mxu1 %v12970_v31  ;;  %v13045_v30 = vld [vmem:[%s14845_s23 + $0x1a54] ss:$8 sps:$4 sm:$0xff]   ;;  %v13040_v31 = vld [vmem:[%s14845_s23 + $0x650] ss:$8 sps:$4 sm:$0xff]  }
 0x201   : > { %9714 = vmatprep.subr.bf16.mxu0 %v12973_v32  ;;  %v13043_v32 = vld [vmem:[%s14845_s23 + $0x1a50] ss:$8 sps:$4 sm:$0xff]  }
 0x203   : > { %8895 = vmatpush1.bf16.msra.mxu1 %v12968_v33  ;;  %v13048_v33 = vld [vmem:[%s14845_s23 + $0x664] ss:$8 sps:$4 sm:$0xff]  }
 0x204   : > { %9715 = vmatpush1.bf16.msra.mxu0 %v12971_v34  ;;  %8896 = vmatprep.subr.bf16.mxu1 %v12976_v35  ;;  %v13051_v34 = vld [vmem:[%s14845_s23 + $0x1a64] ss:$8 sps:$4 sm:$0xff]   ;;  %v13046_v35 = vld [vmem:[%s14845_s23 + $0x660] ss:$8 sps:$4 sm:$0xff]  }
 0x205   : > { %9716 = vmatprep.subr.bf16.mxu0 %v12979_v36  ;;  %v13049_v36 = vld [vmem:[%s14845_s23 + $0x1a60] ss:$8 sps:$4 sm:$0xff]  }
 0x207   : > { %8897 = vmatpush1.bf16.msra.mxu1 %v12974_v18  ;;  %v13054_v18 = vld [vmem:[%s14845_s23 + $0x674] ss:$8 sps:$4 sm:$0xff]  }
 0x208   : > { %9717 = vmatpush1.bf16.msra.mxu0 %v12977_v38  ;;  %8898 = vmatprep.subr.bf16.mxu1 %v12982_v43  ;;  %v13057_v38 = vld [vmem:[%s14845_s23 + $0x1a74] ss:$8 sps:$4 sm:$0xff]   ;;  %v13052_v43 = vld [vmem:[%s14845_s23 + $0x670] ss:$8 sps:$4 sm:$0xff]  }
 0x209   : > { %9718 = vmatprep.subr.bf16.mxu0 %v12985_v45  ;;  %v13055_v45 = vld [vmem:[%s14845_s23 + $0x1a70] ss:$8 sps:$4 sm:$0xff]  }
 0x20b   : > { %8899 = vmatpush1.bf16.msra.mxu1 %v12980_v25  ;;  %v13060_v25 = vld [vmem:[%s14845_s23 + $0x684] ss:$8 sps:$4 sm:$0xff]  }
 0x20c   : > { %9719 = vmatpush1.bf16.msra.mxu0 %v12983_v46  ;;  %8900 = vmatprep.subr.bf16.mxu1 %v12988_v26  ;;  %v13063_v46 = vld [vmem:[%s14845_s23 + $0x1a84] ss:$8 sps:$4 sm:$0xff]   ;;  %v13058_v26 = vld [vmem:[%s14845_s23 + $0x680] ss:$8 sps:$4 sm:$0xff]  }
 0x20d   : > { %9720 = vmatprep.subr.bf16.mxu0 %v12991_v47  ;;  %v13061_v47 = vld [vmem:[%s14845_s23 + $0x1a80] ss:$8 sps:$4 sm:$0xff]  }
 0x20f   : > { %8901 = vmatpush1.bf16.msra.mxu1 %v12986_v37  ;;  %v13066_v37 = vld [vmem:[%s14845_s23 + $0x694] ss:$8 sps:$4 sm:$0xff]  }
 0x210   : > { %9721 = vmatpush1.bf16.msra.mxu0 %v12989_v48  ;;  %8902 = vmatprep.subr.bf16.mxu1 %v12994_v17  ;;  %v13069_v48 = vld [vmem:[%s14845_s23 + $0x1a94] ss:$8 sps:$4 sm:$0xff]   ;;  %v13064_v17 = vld [vmem:[%s14845_s23 + $0x690] ss:$8 sps:$4 sm:$0xff]  }
 0x211   : > { %9722 = vmatprep.subr.bf16.mxu0 %v12997_v49  ;;  %v13067_v49 = vld [vmem:[%s14845_s23 + $0x1a90] ss:$8 sps:$4 sm:$0xff]  }
 0x213   : > { %8903 = vmatpush1.bf16.msra.mxu1 %v12992_v51  ;;  %v13072_v51 = vld [vmem:[%s14845_s23 + $0x6a4] ss:$8 sps:$4 sm:$0xff]  }
 0x214   : > { %9723 = vmatpush1.bf16.msra.mxu0 %v12995_v52  ;;  %8904 = vmatprep.subr.bf16.mxu1 %v13000_v54  ;;  %v13075_v52 = vld [vmem:[%s14845_s23 + $0x1aa4] ss:$8 sps:$4 sm:$0xff]   ;;  %v13070_v54 = vld [vmem:[%s14845_s23 + $0x6a0] ss:$8 sps:$4 sm:$0xff]  }
 0x215   : > { %9724 = vmatprep.subr.bf16.mxu0 %v13003_v55  ;;  %v13073_v55 = vld [vmem:[%s14845_s23 + $0x1aa0] ss:$8 sps:$4 sm:$0xff]  }
 0x217   : > { %8905 = vmatpush1.bf16.msra.mxu1 %v12998_v63  ;;  %v13084_v63 = vld [vmem:[%s14845_s23 + $0x6c4] ss:$8 sps:$4 sm:$0xff]  }
 0x218   : > { %9725 = vmatpush1.bf16.msra.mxu0 %v13001_v0  ;;  %8906 = vmatprep.subr.bf16.mxu1 %v13006_v41  ;;  %v13087_v0 = vld [vmem:[%s14845_s23 + $0x1ac4] ss:$8 sps:$4 sm:$0xff]   ;;  %v13082_v41 = vld [vmem:[%s14845_s23 + $0x6c0] ss:$8 sps:$4 sm:$0xff]  }
 0x219   : > { %9726 = vmatprep.subr.bf16.mxu0 %v13009_v1  ;;  %v13085_v1 = vld [vmem:[%s14845_s23 + $0x1ac0] ss:$8 sps:$4 sm:$0xff]  }
 0x21b   : > { %8907 = vmatpush1.bf16.msra.mxu1 %v13004_v56  ;;  %v13090_v56 = vld [vmem:[%s14845_s23 + $0x6d4] ss:$8 sps:$4 sm:$0xff]  }
 0x21c   : > { %9727 = vmatpush1.bf16.msra.mxu0 %v13007_v3  ;;  %8917 = vmatprep.subr.bf16.mxu1 %v13012_v58  ;;  %v13093_v3 = vld [vmem:[%s14845_s23 + $0x1ad4] ss:$8 sps:$4 sm:$0xff]   ;;  %v13088_v58 = vld [vmem:[%s14845_s23 + $0x6d0] ss:$8 sps:$4 sm:$0xff]  }
 0x21d   : > { %9737 = vmatprep.subr.bf16.mxu0 %v13015_v4  ;;  %v13091_v4 = vld [vmem:[%s14845_s23 + $0x1ad0] ss:$8 sps:$4 sm:$0xff]  }
 0x21e   : > { %8909 = vmatmul.mubr.bf16.vlgmr.msra.gmra.mrb[0].mxu1 %v1795_v7  ;;  %v13094_v7 = vld [vmem:[%s14845_s23 + $0x6e0] ss:$8 sps:$4 sm:$0xff]  }
 0x21f   : > { %9729 = vmatmul.mubr.bf16.vlgmr.msra.gmra.mrb[0].mxu0 %v2040_v8  ;;  %8918 = vmatpush1.bf16.msra.mxu1 %v13010_v9  ;;  %v13097_v8 = vld [vmem:[%s14845_s23 + $0x1ae0] ss:$8 sps:$4 sm:$0xff]   ;;  %v13102_v9 = vld [vmem:[%s14845_s23 + $0x6f4] ss:$8 sps:$4 sm:$0xff]  }
 0x220   : > { %9738 = vmatpush1.bf16.msra.mxu0 %v13013_v10  ;;  %8919 = vmatprep.subr.bf16.mxu1 %v13018_v11  ;;  %v13105_v10 = vld [vmem:[%s14845_s23 + $0x1af4] ss:$8 sps:$4 sm:$0xff]   ;;  %v13100_v11 = vld [vmem:[%s14845_s23 + $0x6f0] ss:$8 sps:$4 sm:$0xff]  }
 0x221   : > { %9739 = vmatprep.subr.bf16.mxu0 %v13021_v12  ;;  %8949 = vmatprep.mubr.bf16.mxu1 %v15375_v13  ;;  %v13103_v12 = vld [vmem:[%s14845_s23 + $0x1af0] ss:$8 sps:$4 sm:$0xff]  }
 0x222   : > { %9769 = vmatprep.mubr.bf16.mxu0 %v15378_v59 }
 0x223   : > { %8920 = vmatpush1.bf16.msra.mxu1 %v13016_v60  ;;  %v13109_v60 = vld [vmem:[%s14845_s23 + $0x704] ss:$8 sps:$4 sm:$0xff]  }
 0x224   : > { %9740 = vmatpush1.bf16.msra.mxu0 %v13019_v14  ;;  %8921 = vmatprep.subr.bf16.mxu1 %v13024_v15  ;;  %v13113_v14 = vld [vmem:[%s14845_s23 + $0x1b04] ss:$8 sps:$4 sm:$0xff]   ;;  %v15444_v15 = vrot.slane %v15353_v42, %v14914_v50  ;;  %v1798_v42 = vcombine.high %v15375_v13, %v15375_v13 }
 0x225   : > { %9741 = vmatprep.subr.bf16.mxu0 %v13027_v16  ;;  %v15448_v16 = vrot.slane %v15356_v2, %v14914_v50  ;;  %v13114_v2 = vld [vmem:[%s14845_s23 + $0x710] ss:$8 sps:$4 sm:$0xff]   ;;  %v13122_v13 = vld [vmem:[%s14845_s23 + $0x724] ss:$8 sps:$4 sm:$0xff]  }
 0x227   : > { %8922 = vmatpush1.bf16.msra.mxu1 %v13022_v19  ;;  %v13107_v19 = vld [vmem:[%s14845_s23 + $0x700] ss:$8 sps:$4 sm:$0xff]  }
 0x228   : > { %9742 = vmatpush1.bf16.msra.mxu0 %v13025_v20  ;;  %8923 = vmatprep.subr.bf16.mxu1 %v13030_v21  ;;  %v13111_v20 = vld [vmem:[%s14845_s23 + $0x1b00] ss:$8 sps:$4 sm:$0xff]   ;;  %v13116_v21 = vld [vmem:[%s14845_s23 + $0x714] ss:$8 sps:$4 sm:$0xff]  }
 0x229   : > { %9743 = vmatprep.subr.bf16.mxu0 %v13033_v22  ;;  %v13119_v22 = vld [vmem:[%s14845_s23 + $0x1b14] ss:$8 sps:$4 sm:$0xff]  }
 0x22b   : > { %8924 = vmatpush1.bf16.msra.mxu1 %v13028_v23  ;;  %v2043_v23 = vcombine.high %v15378_v59, %v15378_v59  ;;  %v13120_v59 = vld [vmem:[%s14845_s23 + $0x720] ss:$8 sps:$4 sm:$0xff]  }
 0x22c   : > { %9744 = vmatpush1.bf16.msra.mxu0 %v13031_v24  ;;  %8925 = vmatprep.subr.bf16.mxu1 %v13036_v53  ;;  %v13117_v24 = vld [vmem:[%s14845_s23 + $0x1b10] ss:$8 sps:$4 sm:$0xff]   ;;  %v13125_v53 = vld [vmem:[%s14845_s23 + $0x1b24] ss:$8 sps:$4 sm:$0xff]  }
 0x22d   : > { %9745 = vmatprep.subr.bf16.mxu0 %v13039_v57  ;;  %v13123_v57 = vld [vmem:[%s14845_s23 + $0x1b20] ss:$8 sps:$4 sm:$0xff]  }
 0x22f   : > { %8926 = vmatpush1.bf16.msra.mxu1 %v13034_v27  ;;  %v13128_v27 = vld [vmem:[%s14845_s23 + $0x734] ss:$8 sps:$4 sm:$0xff]  }
 0x230   : > { %9746 = vmatpush1.bf16.msra.mxu0 %v13037_v28  ;;  %8927 = vmatprep.subr.bf16.mxu1 %v13042_v29  ;;  %v13131_v28 = vld [vmem:[%s14845_s23 + $0x1b34] ss:$8 sps:$4 sm:$0xff]   ;;  %v13126_v29 = vld [vmem:[%s14845_s23 + $0x730] ss:$8 sps:$4 sm:$0xff]  }
 0x231   : > { %9747 = vmatprep.subr.bf16.mxu0 %v13045_v30  ;;  %v13129_v30 = vld [vmem:[%s14845_s23 + $0x1b30] ss:$8 sps:$4 sm:$0xff]  }
 0x233   : > { %8928 = vmatpush1.bf16.msra.mxu1 %v13040_v31  ;;  %v13134_v31 = vld [vmem:[%s14845_s23 + $0x744] ss:$8 sps:$4 sm:$0xff]  }
 0x234   : > { %9748 = vmatpush1.bf16.msra.mxu0 %v13043_v32  ;;  %8929 = vmatprep.subr.bf16.mxu1 %v13048_v33  ;;  %v13137_v32 = vld [vmem:[%s14845_s23 + $0x1b44] ss:$8 sps:$4 sm:$0xff]   ;;  %v13132_v33 = vld [vmem:[%s14845_s23 + $0x740] ss:$8 sps:$4 sm:$0xff]  }
 0x235   : > { %9749 = vmatprep.subr.bf16.mxu0 %v13051_v34  ;;  %v13135_v34 = vld [vmem:[%s14845_s23 + $0x1b40] ss:$8 sps:$4 sm:$0xff]  }
 0x237   : > { %8930 = vmatpush1.bf16.msra.mxu1 %v13046_v35  ;;  %v13140_v35 = vld [vmem:[%s14845_s23 + $0x754] ss:$8 sps:$4 sm:$0xff]  }
 0x238   : > { %9750 = vmatpush1.bf16.msra.mxu0 %v13049_v36  ;;  %8931 = vmatprep.subr.bf16.mxu1 %v13054_v18  ;;  %v13143_v36 = vld [vmem:[%s14845_s23 + $0x1b54] ss:$8 sps:$4 sm:$0xff]   ;;  %v13138_v18 = vld [vmem:[%s14845_s23 + $0x750] ss:$8 sps:$4 sm:$0xff]  }
 0x239   : > { %9751 = vmatprep.subr.bf16.mxu0 %v13057_v38  ;;  %v13141_v38 = vld [vmem:[%s14845_s23 + $0x1b50] ss:$8 sps:$4 sm:$0xff]  }
 0x23b   : > { %8932 = vmatpush1.bf16.msra.mxu1 %v13052_v43  ;;  %v13146_v43 = vld [vmem:[%s14845_s23 + $0x764] ss:$8 sps:$4 sm:$0xff]  }
 0x23c   : > { %9752 = vmatpush1.bf16.msra.mxu0 %v13055_v45  ;;  %8933 = vmatprep.subr.bf16.mxu1 %v13060_v25  ;;  %v13149_v45 = vld [vmem:[%s14845_s23 + $0x1b64] ss:$8 sps:$4 sm:$0xff]   ;;  %v13144_v25 = vld [vmem:[%s14845_s23 + $0x760] ss:$8 sps:$4 sm:$0xff]  }
 0x23d   : > { %9753 = vmatprep.subr.bf16.mxu0 %v13063_v46  ;;  %v13147_v46 = vld [vmem:[%s14845_s23 + $0x1b60] ss:$8 sps:$4 sm:$0xff]  }
 0x23f   : > { %8934 = vmatpush1.bf16.msra.mxu1 %v13058_v26  ;;  %v13152_v26 = vld [vmem:[%s14845_s23 + $0x774] ss:$8 sps:$4 sm:$0xff]  }
 0x240   : > { %9754 = vmatpush1.bf16.msra.mxu0 %v13061_v47  ;;  %8935 = vmatprep.subr.bf16.mxu1 %v13066_v37  ;;  %v13155_v47 = vld [vmem:[%s14845_s23 + $0x1b74] ss:$8 sps:$4 sm:$0xff]   ;;  %v13150_v37 = vld [vmem:[%s14845_s23 + $0x770] ss:$8 sps:$4 sm:$0xff]  }
 0x241   : > { %9755 = vmatprep.subr.bf16.mxu0 %v13069_v48  ;;  %v13153_v48 = vld [vmem:[%s14845_s23 + $0x1b70] ss:$8 sps:$4 sm:$0xff]  }
 0x243   : > { %8936 = vmatpush1.bf16.msra.mxu1 %v13064_v17  ;;  %v13158_v17 = vld [vmem:[%s14845_s23 + $0x784] ss:$8 sps:$4 sm:$0xff]  }
 0x244   : > { %9756 = vmatpush1.bf16.msra.mxu0 %v13067_v49  ;;  %8937 = vmatprep.subr.bf16.mxu1 %v13072_v51  ;;  %v13161_v49 = vld [vmem:[%s14845_s23 + $0x1b84] ss:$8 sps:$4 sm:$0xff]   ;;  %v13156_v51 = vld [vmem:[%s14845_s23 + $0x780] ss:$8 sps:$4 sm:$0xff]  }
 0x245   : > { %9757 = vmatprep.subr.bf16.mxu0 %v13075_v52  ;;  %v13159_v52 = vld [vmem:[%s14845_s23 + $0x1b80] ss:$8 sps:$4 sm:$0xff]  }
 0x247   : > { %8938 = vmatpush1.bf16.msra.mxu1 %v13070_v54  ;;  %v13164_v54 = vld [vmem:[%s14845_s23 + $0x794] ss:$8 sps:$4 sm:$0xff]  }
 0x248   : > { %9758 = vmatpush1.bf16.msra.mxu0 %v13073_v55  ;;  %8939 = vmatprep.subr.bf16.mxu1 %v13078_v39  ;;  %v13167_v55 = vld [vmem:[%s14845_s23 + $0x1b94] ss:$8 sps:$4 sm:$0xff]   ;;  %v13162_v39 = vld [vmem:[%s14845_s23 + $0x790] ss:$8 sps:$4 sm:$0xff]  }
 0x249   : > { %9759 = vmatprep.subr.bf16.mxu0 %v13081_v40  ;;  %v13165_v40 = vld [vmem:[%s14845_s23 + $0x1b90] ss:$8 sps:$4 sm:$0xff]  }
 0x24b   : > { %8940 = vmatpush1.bf16.msra.mxu1 %v13076_v61  ;;  %v13170_v61 = vld [vmem:[%s14845_s23 + $0x7a4] ss:$8 sps:$4 sm:$0xff]  }
 0x24c   : > { %9760 = vmatpush1.bf16.msra.mxu0 %v13079_v62  ;;  %8941 = vmatprep.subr.bf16.mxu1 %v13084_v63  ;;  %v13173_v62 = vld [vmem:[%s14845_s23 + $0x1ba4] ss:$8 sps:$4 sm:$0xff]   ;;  %v13168_v63 = vld [vmem:[%s14845_s23 + $0x7a0] ss:$8 sps:$4 sm:$0xff]  }
 0x24d   : > { %9761 = vmatprep.subr.bf16.mxu0 %v13087_v0  ;;  %v13171_v0 = vld [vmem:[%s14845_s23 + $0x1ba0] ss:$8 sps:$4 sm:$0xff]  }
 0x24f   : > { %8942 = vmatpush1.bf16.msra.mxu1 %v13082_v41  ;;  %v13176_v41 = vld [vmem:[%s14845_s23 + $0x7b4] ss:$8 sps:$4 sm:$0xff]  }
 0x250   : > { %9762 = vmatpush1.bf16.msra.mxu0 %v13085_v1  ;;  %8943 = vmatprep.subr.bf16.mxu1 %v13090_v56  ;;  %v13179_v1 = vld [vmem:[%s14845_s23 + $0x1bb4] ss:$8 sps:$4 sm:$0xff]   ;;  %v13174_v56 = vld [vmem:[%s14845_s23 + $0x7b0] ss:$8 sps:$4 sm:$0xff]  }
 0x251   : > { %9763 = vmatprep.subr.bf16.mxu0 %v13093_v3  ;;  %v13177_v3 = vld [vmem:[%s14845_s23 + $0x1bb0] ss:$8 sps:$4 sm:$0xff]  }
 0x253   : > { %8944 = vmatpush1.bf16.msra.mxu1 %v13088_v58  ;;  %v13182_v58 = vld [vmem:[%s14845_s23 + $0x7c4] ss:$8 sps:$4 sm:$0xff]  }
 0x254   : > { %9764 = vmatpush1.bf16.msra.mxu0 %v13091_v4  ;;  %8945 = vmatprep.subr.bf16.mxu1 %v13096_v5  ;;  %v13185_v4 = vld [vmem:[%s14845_s23 + $0x1bc4] ss:$8 sps:$4 sm:$0xff]   ;;  %v13180_v5 = vld [vmem:[%s14845_s23 + $0x7c0] ss:$8 sps:$4 sm:$0xff]  }
 0x255   : > { %9765 = vmatprep.subr.bf16.mxu0 %v13099_v6  ;;  %v13183_v6 = vld [vmem:[%s14845_s23 + $0x1bc0] ss:$8 sps:$4 sm:$0xff]  }
 0x257   : > { %8946 = vmatpush1.bf16.msra.mxu1 %v13094_v7  ;;  %v13188_v7 = vld [vmem:[%s14845_s23 + $0x7d4] ss:$8 sps:$4 sm:$0xff]  }
 0x258   : > { %9766 = vmatpush1.bf16.msra.mxu0 %v13097_v8  ;;  %8947 = vmatprep.subr.bf16.mxu1 %v13102_v9  ;;  %v13191_v8 = vld [vmem:[%s14845_s23 + $0x1bd4] ss:$8 sps:$4 sm:$0xff]   ;;  %v13186_v9 = vld [vmem:[%s14845_s23 + $0x7d0] ss:$8 sps:$4 sm:$0xff]  }
 0x259   : > { %9767 = vmatprep.subr.bf16.mxu0 %v13105_v10  ;;  %v13189_v10 = vld [vmem:[%s14845_s23 + $0x1bd0] ss:$8 sps:$4 sm:$0xff]  }
 0x25b   : > { %8948 = vmatpush1.bf16.msra.mxu1 %v13100_v11  ;;  %v13194_v11 = vld [vmem:[%s14845_s23 + $0x7e4] ss:$8 sps:$4 sm:$0xff]  }
 0x25c   : > { %9768 = vmatpush1.bf16.msra.mxu0 %v13103_v12  ;;  %8958 = vmatprep.subr.bf16.mxu1 %v13109_v60  ;;  %v13197_v12 = vld [vmem:[%s14845_s23 + $0x1be4] ss:$8 sps:$4 sm:$0xff]  }
 0x25d   : > { %9778 = vmatprep.subr.bf16.mxu0 %v13113_v14  ;;  %v15513_v60 = vld.sshfl [vmem:[%s14911_s17 + $0x10] sm:$0xff pattern:$0x75316420]  ;;  %v15516_v14 = vld.sshfl [vmem:[%s14911_s17 + $0x38] sm:$0xff pattern:$0x75316420] }
 0x25e   : > { %8950 = vmatmul.mubr.bf16.vlgmr.msra.gmra.mrb[0].mxu1 %v15444_v15 }
 0x25f   : > { %9770 = vmatmul.mubr.bf16.vlgmr.msra.gmra.mrb[0].mxu0 %v15448_v16  ;;  %8959 = vmatpush1.bf16.msra.mxu1 %v13107_v19  ;;  %v13192_v19 = vld [vmem:[%s14845_s23 + $0x7e0] ss:$8 sps:$4 sm:$0xff]  }
 0x260   : > { %9779 = vmatpush1.bf16.msra.mxu0 %v13111_v20  ;;  %8960 = vmatprep.subr.bf16.mxu1 %v13116_v21  ;;  %v13195_v20 = vld [vmem:[%s14845_s23 + $0x1be0] ss:$8 sps:$4 sm:$0xff]   ;;  %v13200_v21 = vld [vmem:[%s14845_s23 + $0x7f4] ss:$8 sps:$4 sm:$0xff]  }
 0x261   : > { %9780 = vmatprep.subr.bf16.mxu0 %v13119_v22  ;;  %8990 = vmatprep.mubr.bf16.mxu1 %v1798_v42  ;;  %v13203_v22 = vld [vmem:[%s14845_s23 + $0x1bf4] ss:$8 sps:$4 sm:$0xff]   ;;  %v13198_v42 = vld [vmem:[%s14845_s23 + $0x7f0] ss:$8 sps:$4 sm:$0xff]  }
 0x262   : > { %9810 = vmatprep.mubr.bf16.mxu0 %v2043_v23  ;;  %v13201_v23 = vld [vmem:[%s14845_s23 + $0x1bf0] ss:$8 sps:$4 sm:$0xff]  }
 0x263   : > { %8961 = vmatpush1.bf16.msra.mxu1 %v13114_v2  ;;  %v13206_v2 = vld [vmem:[%s14845_s23 + $0x804] ss:$8 sps:$4 sm:$0xff]  }
 0x264   : > { %9781 = vmatpush1.bf16.msra.mxu0 %v13117_v24  ;;  %8962 = vmatprep.subr.bf16.mxu1 %v13122_v13  ;;  %v13209_v24 = vld [vmem:[%s14845_s23 + $0x1c04] ss:$8 sps:$4 sm:$0xff]   ;;  %v1814_v13 = vcombine.high %v15513_v60, %v15513_v60 }
 0x265   : > { %9782 = vmatprep.subr.bf16.mxu0 %v13125_v53  ;;  %v2059_v53 = vcombine.high %v15516_v14, %v15516_v14 }
 0x267   : > { %8963 = vmatpush1.bf16.msra.mxu1 %v13120_v59  ;;  %v1796_v59 = vcombine.high %v15444_v15, %v15444_v15  ;;  %v15542_v15 = vrot.slane %v2059_v53, %v14914_v50  ;;  %v13293_v53 = vld [vmem:[%s14845_s23 + $0x1ce4] ss:$8 sps:$4 sm:$0xff]  }
 0x268   : > { %9783 = vmatpush1.bf16.msra.mxu0 %v13123_v57  ;;  %8964 = vmatprep.subr.bf16.mxu1 %v13128_v27  ;;  %v2041_v57 = vcombine.high %v15448_v16, %v15448_v16  ;;  %v13204_v27 = vld [vmem:[%s14845_s23 + $0x800] ss:$8 sps:$4 sm:$0xff]   ;;  %v13210_v16 = vld [vmem:[%s14845_s23 + $0x810] ss:$8 sps:$4 sm:$0xff]  }
 0x269   : > { %9784 = vmatprep.subr.bf16.mxu0 %v13131_v28  ;;  %v13207_v28 = vld [vmem:[%s14845_s23 + $0x1c00] ss:$8 sps:$4 sm:$0xff]  }
 0x26b   : > { %8965 = vmatpush1.bf16.msra.mxu1 %v13126_v29  ;;  %v13212_v29 = vld [vmem:[%s14845_s23 + $0x814] ss:$8 sps:$4 sm:$0xff]  }
 0x26c   : > { %9785 = vmatpush1.bf16.msra.mxu0 %v13129_v30  ;;  %8966 = vmatprep.subr.bf16.mxu1 %v13134_v31  ;;  %v13215_v30 = vld [vmem:[%s14845_s23 + $0x1c14] ss:$8 sps:$4 sm:$0xff]   ;;  %v15539_v31 = vrot.slane %v1814_v13, %v14914_v50  ;;  %v13290_v13 = vld [vmem:[%s14845_s23 + $0x8e4] ss:$8 sps:$4 sm:$0xff]  }
 0x26d   : > { %9786 = vmatprep.subr.bf16.mxu0 %v13137_v32  ;;  %v13213_v32 = vld [vmem:[%s14845_s23 + $0x1c10] ss:$8 sps:$4 sm:$0xff]  }
 0x26f   : > { %8967 = vmatpush1.bf16.msra.mxu1 %v13132_v33  ;;  %v13218_v33 = vld [vmem:[%s14845_s23 + $0x824] ss:$8 sps:$4 sm:$0xff]  }
 0x270   : > { %9787 = vmatpush1.bf16.msra.mxu0 %v13135_v34  ;;  %8968 = vmatprep.subr.bf16.mxu1 %v13140_v35  ;;  %v13221_v34 = vld [vmem:[%s14845_s23 + $0x1c24] ss:$8 sps:$4 sm:$0xff]   ;;  %v13216_v35 = vld [vmem:[%s14845_s23 + $0x820] ss:$8 sps:$4 sm:$0xff]  }
 0x271   : > { %9788 = vmatprep.subr.bf16.mxu0 %v13143_v36  ;;  %v13219_v36 = vld [vmem:[%s14845_s23 + $0x1c20] ss:$8 sps:$4 sm:$0xff]  }
 0x273   : > { %8969 = vmatpush1.bf16.msra.mxu1 %v13138_v18  ;;  %v13224_v18 = vld [vmem:[%s14845_s23 + $0x834] ss:$8 sps:$4 sm:$0xff]  }
 0x274   : > { %9789 = vmatpush1.bf16.msra.mxu0 %v13141_v38  ;;  %8970 = vmatprep.subr.bf16.mxu1 %v13146_v43  ;;  %v13227_v38 = vld [vmem:[%s14845_s23 + $0x1c34] ss:$8 sps:$4 sm:$0xff]   ;;  %v13222_v43 = vld [vmem:[%s14845_s23 + $0x830] ss:$8 sps:$4 sm:$0xff]  }
 0x275   : > { %9790 = vmatprep.subr.bf16.mxu0 %v13149_v45  ;;  %v13225_v45 = vld [vmem:[%s14845_s23 + $0x1c30] ss:$8 sps:$4 sm:$0xff]  }
 0x277   : > { %8971 = vmatpush1.bf16.msra.mxu1 %v13144_v25  ;;  %v13230_v25 = vld [vmem:[%s14845_s23 + $0x844] ss:$8 sps:$4 sm:$0xff]  }
 0x278   : > { %9791 = vmatpush1.bf16.msra.mxu0 %v13147_v46  ;;  %8972 = vmatprep.subr.bf16.mxu1 %v13152_v26  ;;  %v13233_v46 = vld [vmem:[%s14845_s23 + $0x1c44] ss:$8 sps:$4 sm:$0xff]   ;;  %v13228_v26 = vld [vmem:[%s14845_s23 + $0x840] ss:$8 sps:$4 sm:$0xff]  }
 0x279   : > { %9792 = vmatprep.subr.bf16.mxu0 %v13155_v47  ;;  %v13231_v47 = vld [vmem:[%s14845_s23 + $0x1c40] ss:$8 sps:$4 sm:$0xff]  }
 0x27b   : > { %8973 = vmatpush1.bf16.msra.mxu1 %v13150_v37  ;;  %v13236_v37 = vld [vmem:[%s14845_s23 + $0x854] ss:$8 sps:$4 sm:$0xff]  }
 0x27c   : > { %9793 = vmatpush1.bf16.msra.mxu0 %v13153_v48  ;;  %8974 = vmatprep.subr.bf16.mxu1 %v13158_v17  ;;  %v13239_v48 = vld [vmem:[%s14845_s23 + $0x1c54] ss:$8 sps:$4 sm:$0xff]   ;;  %v13234_v17 = vld [vmem:[%s14845_s23 + $0x850] ss:$8 sps:$4 sm:$0xff]  }
 0x27d   : > { %9794 = vmatprep.subr.bf16.mxu0 %v13161_v49  ;;  %v13237_v49 = vld [vmem:[%s14845_s23 + $0x1c50] ss:$8 sps:$4 sm:$0xff]  }
 0x27f   : > { %8975 = vmatpush1.bf16.msra.mxu1 %v13156_v51  ;;  %v13242_v51 = vld [vmem:[%s14845_s23 + $0x864] ss:$8 sps:$4 sm:$0xff]  }
 0x280   : > { %9795 = vmatpush1.bf16.msra.mxu0 %v13159_v52  ;;  %8976 = vmatprep.subr.bf16.mxu1 %v13164_v54  ;;  %v13245_v52 = vld [vmem:[%s14845_s23 + $0x1c64] ss:$8 sps:$4 sm:$0xff]   ;;  %v13240_v54 = vld [vmem:[%s14845_s23 + $0x860] ss:$8 sps:$4 sm:$0xff]  }
 0x281   : > { %9796 = vmatprep.subr.bf16.mxu0 %v13167_v55  ;;  %v13243_v55 = vld [vmem:[%s14845_s23 + $0x1c60] ss:$8 sps:$4 sm:$0xff]  }
 0x283   : > { %8977 = vmatpush1.bf16.msra.mxu1 %v13162_v39  ;;  %v13248_v39 = vld [vmem:[%s14845_s23 + $0x874] ss:$8 sps:$4 sm:$0xff]  }
 0x284   : > { %9797 = vmatpush1.bf16.msra.mxu0 %v13165_v40  ;;  %8978 = vmatprep.subr.bf16.mxu1 %v13170_v61  ;;  %v13251_v40 = vld [vmem:[%s14845_s23 + $0x1c74] ss:$8 sps:$4 sm:$0xff]   ;;  %v13246_v61 = vld [vmem:[%s14845_s23 + $0x870] ss:$8 sps:$4 sm:$0xff]  }
 0x285   : > { %9798 = vmatprep.subr.bf16.mxu0 %v13173_v62  ;;  %v13249_v62 = vld [vmem:[%s14845_s23 + $0x1c70] ss:$8 sps:$4 sm:$0xff]  }
 0x287   : > { %8979 = vmatpush1.bf16.msra.mxu1 %v13168_v63  ;;  %v13254_v63 = vld [vmem:[%s14845_s23 + $0x884] ss:$8 sps:$4 sm:$0xff]  }
 0x288   : > { %9799 = vmatpush1.bf16.msra.mxu0 %v13171_v0  ;;  %8980 = vmatprep.subr.bf16.mxu1 %v13176_v41  ;;  %v13257_v0 = vld [vmem:[%s14845_s23 + $0x1c84] ss:$8 sps:$4 sm:$0xff]   ;;  %v13252_v41 = vld [vmem:[%s14845_s23 + $0x880] ss:$8 sps:$4 sm:$0xff]  }
 0x289   : > { %9800 = vmatprep.subr.bf16.mxu0 %v13179_v1  ;;  %v13255_v1 = vld [vmem:[%s14845_s23 + $0x1c80] ss:$8 sps:$4 sm:$0xff]  }
 0x28b   : > { %8981 = vmatpush1.bf16.msra.mxu1 %v13174_v56  ;;  %v13260_v56 = vld [vmem:[%s14845_s23 + $0x894] ss:$8 sps:$4 sm:$0xff]  }
 0x28c   : > { %9801 = vmatpush1.bf16.msra.mxu0 %v13177_v3  ;;  %8982 = vmatprep.subr.bf16.mxu1 %v13182_v58  ;;  %v13263_v3 = vld [vmem:[%s14845_s23 + $0x1c94] ss:$8 sps:$4 sm:$0xff]   ;;  %v13258_v58 = vld [vmem:[%s14845_s23 + $0x890] ss:$8 sps:$4 sm:$0xff]  }
 0x28d   : > { %9802 = vmatprep.subr.bf16.mxu0 %v13185_v4  ;;  %v13261_v4 = vld [vmem:[%s14845_s23 + $0x1c90] ss:$8 sps:$4 sm:$0xff]  }
 0x28f   : > { %8983 = vmatpush1.bf16.msra.mxu1 %v13180_v5  ;;  %v13266_v5 = vld [vmem:[%s14845_s23 + $0x8a4] ss:$8 sps:$4 sm:$0xff]  }
 0x290   : > { %9803 = vmatpush1.bf16.msra.mxu0 %v13183_v6  ;;  %8984 = vmatprep.subr.bf16.mxu1 %v13188_v7  ;;  %v13269_v6 = vld [vmem:[%s14845_s23 + $0x1ca4] ss:$8 sps:$4 sm:$0xff]   ;;  %v13264_v7 = vld [vmem:[%s14845_s23 + $0x8a0] ss:$8 sps:$4 sm:$0xff]  }
 0x291   : > { %9804 = vmatprep.subr.bf16.mxu0 %v13191_v8  ;;  %v13267_v8 = vld [vmem:[%s14845_s23 + $0x1ca0] ss:$8 sps:$4 sm:$0xff]  }
 0x293   : > { %8985 = vmatpush1.bf16.msra.mxu1 %v13186_v9  ;;  %v13272_v9 = vld [vmem:[%s14845_s23 + $0x8b4] ss:$8 sps:$4 sm:$0xff]  }
 0x294   : > { %9805 = vmatpush1.bf16.msra.mxu0 %v13189_v10  ;;  %8986 = vmatprep.subr.bf16.mxu1 %v13194_v11  ;;  %v13275_v10 = vld [vmem:[%s14845_s23 + $0x1cb4] ss:$8 sps:$4 sm:$0xff]   ;;  %v13270_v11 = vld [vmem:[%s14845_s23 + $0x8b0] ss:$8 sps:$4 sm:$0xff]  }
 0x295   : > { %9806 = vmatprep.subr.bf16.mxu0 %v13197_v12  ;;  %v13273_v12 = vld [vmem:[%s14845_s23 + $0x1cb0] ss:$8 sps:$4 sm:$0xff]  }
 0x297   : > { %8987 = vmatpush1.bf16.msra.mxu1 %v13192_v19  ;;  %v13278_v19 = vld [vmem:[%s14845_s23 + $0x8c4] ss:$8 sps:$4 sm:$0xff]  }
 0x298   : > { %9807 = vmatpush1.bf16.msra.mxu0 %v13195_v20  ;;  %8988 = vmatprep.subr.bf16.mxu1 %v13200_v21  ;;  %v13281_v20 = vld [vmem:[%s14845_s23 + $0x1cc4] ss:$8 sps:$4 sm:$0xff]   ;;  %v13276_v21 = vld [vmem:[%s14845_s23 + $0x8c0] ss:$8 sps:$4 sm:$0xff]  }
 0x299   : > { %9808 = vmatprep.subr.bf16.mxu0 %v13203_v22  ;;  %v13279_v22 = vld [vmem:[%s14845_s23 + $0x1cc0] ss:$8 sps:$4 sm:$0xff]  }
 0x29b   : > { %8989 = vmatpush1.bf16.msra.mxu1 %v13198_v42  ;;  %v13284_v42 = vld [vmem:[%s14845_s23 + $0x8d4] ss:$8 sps:$4 sm:$0xff]  }
 0x29c   : > { %9809 = vmatpush1.bf16.msra.mxu0 %v13201_v23  ;;  %8999 = vmatprep.subr.bf16.mxu1 %v13206_v2  ;;  %v13287_v23 = vld [vmem:[%s14845_s23 + $0x1cd4] ss:$8 sps:$4 sm:$0xff]   ;;  %v13282_v2 = vld [vmem:[%s14845_s23 + $0x8d0] ss:$8 sps:$4 sm:$0xff]  }
 0x29d   : > { %9819 = vmatprep.subr.bf16.mxu0 %v13209_v24  ;;  %v13285_v24 = vld [vmem:[%s14845_s23 + $0x1cd0] ss:$8 sps:$4 sm:$0xff]  }
 0x29e   : > { %8991 = vmatmul.mubr.bf16.vlgmr.msra.gmra.mrb[0].mxu1 %v1796_v59  ;;  %v13288_v59 = vld [vmem:[%s14845_s23 + $0x8e0] ss:$8 sps:$4 sm:$0xff]  }
 0x29f   : > { %9811 = vmatmul.mubr.bf16.vlgmr.msra.gmra.mrb[0].mxu0 %v2041_v57  ;;  %9000 = vmatpush1.bf16.msra.mxu1 %v13204_v27  ;;  %v13291_v57 = vld [vmem:[%s14845_s23 + $0x1ce0] ss:$8 sps:$4 sm:$0xff]   ;;  %v13296_v27 = vld [vmem:[%s14845_s23 + $0x8f4] ss:$8 sps:$4 sm:$0xff]  }
 0x2a0   : > { %9820 = vmatpush1.bf16.msra.mxu0 %v13207_v28  ;;  %9001 = vmatprep.subr.bf16.mxu1 %v13212_v29  ;;  %v13299_v28 = vld [vmem:[%s14845_s23 + $0x1cf4] ss:$8 sps:$4 sm:$0xff]   ;;  %v13294_v29 = vld [vmem:[%s14845_s23 + $0x8f0] ss:$8 sps:$4 sm:$0xff]  }
 0x2a1   : > { %9821 = vmatprep.subr.bf16.mxu0 %v13215_v30  ;;  %9031 = vmatprep.mubr.bf16.mxu1 %v15539_v31  ;;  %v13297_v30 = vld [vmem:[%s14845_s23 + $0x1cf0] ss:$8 sps:$4 sm:$0xff]  }
 0x2a2   : > { %9851 = vmatprep.mubr.bf16.mxu0 %v15542_v15 }
 0x2a3   : > { %9002 = vmatpush1.bf16.msra.mxu1 %v13210_v16  ;;  %v13302_v16 = vld [vmem:[%s14845_s23 + $0x904] ss:$8 sps:$4 sm:$0xff]  }
 0x2a4   : > { %9822 = vmatpush1.bf16.msra.mxu0 %v13213_v32  ;;  %9003 = vmatprep.subr.bf16.mxu1 %v13218_v33  ;;  %v13305_v32 = vld [vmem:[%s14845_s23 + $0x1d04] ss:$8 sps:$4 sm:$0xff]   ;;  %v15608_v33 = vrot.slane %v15513_v60, %v14914_v50  ;;  %v1846_v60 = vcombine.high %v15539_v31, %v15539_v31 }
 0x2a5   : > { %9823 = vmatprep.subr.bf16.mxu0 %v13221_v34  ;;  %v15612_v34 = vrot.slane %v15516_v14, %v14914_v50  ;;  %v13306_v14 = vld [vmem:[%s14845_s23 + $0x910] ss:$8 sps:$4 sm:$0xff]   ;;  %v13314_v31 = vld [vmem:[%s14845_s23 + $0x924] ss:$8 sps:$4 sm:$0xff]  }
 0x2a7   : > { %9004 = vmatpush1.bf16.msra.mxu1 %v13216_v35  ;;  %v13300_v35 = vld [vmem:[%s14845_s23 + $0x900] ss:$8 sps:$4 sm:$0xff]  }
 0x2a8   : > { %9824 = vmatpush1.bf16.msra.mxu0 %v13219_v36  ;;  %9005 = vmatprep.subr.bf16.mxu1 %v13224_v18  ;;  %v13303_v36 = vld [vmem:[%s14845_s23 + $0x1d00] ss:$8 sps:$4 sm:$0xff]   ;;  %v13308_v18 = vld [vmem:[%s14845_s23 + $0x914] ss:$8 sps:$4 sm:$0xff]  }
 0x2a9   : > { %9825 = vmatprep.subr.bf16.mxu0 %v13227_v38  ;;  %v13311_v38 = vld [vmem:[%s14845_s23 + $0x1d14] ss:$8 sps:$4 sm:$0xff]  }
 0x2ab   : > { %9006 = vmatpush1.bf16.msra.mxu1 %v13222_v43  ;;  %v2091_v43 = vcombine.high %v15542_v15, %v15542_v15  ;;  %v13312_v15 = vld [vmem:[%s14845_s23 + $0x920] ss:$8 sps:$4 sm:$0xff]  }
 0x2ac   : > { %9826 = vmatpush1.bf16.msra.mxu0 %v13225_v45  ;;  %9007 = vmatprep.subr.bf16.mxu1 %v13230_v25  ;;  %v13309_v45 = vld [vmem:[%s14845_s23 + $0x1d10] ss:$8 sps:$4 sm:$0xff]   ;;  %v13317_v25 = vld [vmem:[%s14845_s23 + $0x1d24] ss:$8 sps:$4 sm:$0xff]  }
 0x2ad   : > { %9827 = vmatprep.subr.bf16.mxu0 %v13233_v46  ;;  %v13315_v46 = vld [vmem:[%s14845_s23 + $0x1d20] ss:$8 sps:$4 sm:$0xff]  }
 0x2af   : > { %9008 = vmatpush1.bf16.msra.mxu1 %v13228_v26  ;;  %v13320_v26 = vld [vmem:[%s14845_s23 + $0x934] ss:$8 sps:$4 sm:$0xff]  }
 0x2b0   : > { %9828 = vmatpush1.bf16.msra.mxu0 %v13231_v47  ;;  %9009 = vmatprep.subr.bf16.mxu1 %v13236_v37  ;;  %v13323_v47 = vld [vmem:[%s14845_s23 + $0x1d34] ss:$8 sps:$4 sm:$0xff]   ;;  %v13318_v37 = vld [vmem:[%s14845_s23 + $0x930] ss:$8 sps:$4 sm:$0xff]  }
 0x2b1   : > { %9829 = vmatprep.subr.bf16.mxu0 %v13239_v48  ;;  %v13321_v48 = vld [vmem:[%s14845_s23 + $0x1d30] ss:$8 sps:$4 sm:$0xff]  }
 0x2b3   : > { %9010 = vmatpush1.bf16.msra.mxu1 %v13234_v17  ;;  %v13326_v17 = vld [vmem:[%s14845_s23 + $0x944] ss:$8 sps:$4 sm:$0xff]  }
 0x2b4   : > { %9830 = vmatpush1.bf16.msra.mxu0 %v13237_v49  ;;  %9011 = vmatprep.subr.bf16.mxu1 %v13242_v51  ;;  %v13329_v49 = vld [vmem:[%s14845_s23 + $0x1d44] ss:$8 sps:$4 sm:$0xff]   ;;  %v13324_v51 = vld [vmem:[%s14845_s23 + $0x940] ss:$8 sps:$4 sm:$0xff]  }
 0x2b5   : > { %9831 = vmatprep.subr.bf16.mxu0 %v13245_v52  ;;  %v13327_v52 = vld [vmem:[%s14845_s23 + $0x1d40] ss:$8 sps:$4 sm:$0xff]  }
 0x2b7   : > { %9012 = vmatpush1.bf16.msra.mxu1 %v13240_v54  ;;  %v13332_v54 = vld [vmem:[%s14845_s23 + $0x954] ss:$8 sps:$4 sm:$0xff]  }
 0x2b8   : > { %9832 = vmatpush1.bf16.msra.mxu0 %v13243_v55  ;;  %9013 = vmatprep.subr.bf16.mxu1 %v13248_v39  ;;  %v13335_v55 = vld [vmem:[%s14845_s23 + $0x1d54] ss:$8 sps:$4 sm:$0xff]   ;;  %v13330_v39 = vld [vmem:[%s14845_s23 + $0x950] ss:$8 sps:$4 sm:$0xff]  }
 0x2b9   : > { %9833 = vmatprep.subr.bf16.mxu0 %v13251_v40  ;;  %v13333_v40 = vld [vmem:[%s14845_s23 + $0x1d50] ss:$8 sps:$4 sm:$0xff]  }
 0x2bb   : > { %9014 = vmatpush1.bf16.msra.mxu1 %v13246_v61  ;;  %v13338_v61 = vld [vmem:[%s14845_s23 + $0x964] ss:$8 sps:$4 sm:$0xff]  }
 0x2bc   : > { %9834 = vmatpush1.bf16.msra.mxu0 %v13249_v62  ;;  %9015 = vmatprep.subr.bf16.mxu1 %v13254_v63  ;;  %v13341_v62 = vld [vmem:[%s14845_s23 + $0x1d64] ss:$8 sps:$4 sm:$0xff]   ;;  %v13336_v63 = vld [vmem:[%s14845_s23 + $0x960] ss:$8 sps:$4 sm:$0xff]  }
 0x2bd   : > { %9835 = vmatprep.subr.bf16.mxu0 %v13257_v0  ;;  %v13339_v0 = vld [vmem:[%s14845_s23 + $0x1d60] ss:$8 sps:$4 sm:$0xff]  }
 0x2bf   : > { %9016 = vmatpush1.bf16.msra.mxu1 %v13252_v41  ;;  %v13344_v41 = vld [vmem:[%s14845_s23 + $0x974] ss:$8 sps:$4 sm:$0xff]  }
 0x2c0   : > { %9836 = vmatpush1.bf16.msra.mxu0 %v13255_v1  ;;  %9017 = vmatprep.subr.bf16.mxu1 %v13260_v56  ;;  %v13347_v1 = vld [vmem:[%s14845_s23 + $0x1d74] ss:$8 sps:$4 sm:$0xff]   ;;  %v13342_v56 = vld [vmem:[%s14845_s23 + $0x970] ss:$8 sps:$4 sm:$0xff]  }
 0x2c1   : > { %9837 = vmatprep.subr.bf16.mxu0 %v13263_v3  ;;  %v13345_v3 = vld [vmem:[%s14845_s23 + $0x1d70] ss:$8 sps:$4 sm:$0xff]  }
 0x2c3   : > { %9018 = vmatpush1.bf16.msra.mxu1 %v13258_v58  ;;  %v13350_v58 = vld [vmem:[%s14845_s23 + $0x984] ss:$8 sps:$4 sm:$0xff]  }
 0x2c4   : > { %9838 = vmatpush1.bf16.msra.mxu0 %v13261_v4  ;;  %9019 = vmatprep.subr.bf16.mxu1 %v13266_v5  ;;  %v13353_v4 = vld [vmem:[%s14845_s23 + $0x1d84] ss:$8 sps:$4 sm:$0xff]   ;;  %v13348_v5 = vld [vmem:[%s14845_s23 + $0x980] ss:$8 sps:$4 sm:$0xff]  }
 0x2c5   : > { %9839 = vmatprep.subr.bf16.mxu0 %v13269_v6  ;;  %v13351_v6 = vld [vmem:[%s14845_s23 + $0x1d80] ss:$8 sps:$4 sm:$0xff]  }
 0x2c7   : > { %9020 = vmatpush1.bf16.msra.mxu1 %v13264_v7  ;;  %v13356_v7 = vld [vmem:[%s14845_s23 + $0x994] ss:$8 sps:$4 sm:$0xff]  }
 0x2c8   : > { %9840 = vmatpush1.bf16.msra.mxu0 %v13267_v8  ;;  %9021 = vmatprep.subr.bf16.mxu1 %v13272_v9  ;;  %v13359_v8 = vld [vmem:[%s14845_s23 + $0x1d94] ss:$8 sps:$4 sm:$0xff]   ;;  %v13354_v9 = vld [vmem:[%s14845_s23 + $0x990] ss:$8 sps:$4 sm:$0xff]  }
 0x2c9   : > { %9841 = vmatprep.subr.bf16.mxu0 %v13275_v10  ;;  %v13357_v10 = vld [vmem:[%s14845_s23 + $0x1d90] ss:$8 sps:$4 sm:$0xff]  }
 0x2cb   : > { %9022 = vmatpush1.bf16.msra.mxu1 %v13270_v11  ;;  %v13362_v11 = vld [vmem:[%s14845_s23 + $0x9a4] ss:$8 sps:$4 sm:$0xff]  }
 0x2cc   : > { %9842 = vmatpush1.bf16.msra.mxu0 %v13273_v12  ;;  %9023 = vmatprep.subr.bf16.mxu1 %v13278_v19  ;;  %v13365_v12 = vld [vmem:[%s14845_s23 + $0x1da4] ss:$8 sps:$4 sm:$0xff]   ;;  %v13360_v19 = vld [vmem:[%s14845_s23 + $0x9a0] ss:$8 sps:$4 sm:$0xff]  }
 0x2cd   : > { %9843 = vmatprep.subr.bf16.mxu0 %v13281_v20  ;;  %v13363_v20 = vld [vmem:[%s14845_s23 + $0x1da0] ss:$8 sps:$4 sm:$0xff]  }
 0x2cf   : > { %9024 = vmatpush1.bf16.msra.mxu1 %v13276_v21  ;;  %v13368_v21 = vld [vmem:[%s14845_s23 + $0x9b4] ss:$8 sps:$4 sm:$0xff]  }
 0x2d0   : > { %9844 = vmatpush1.bf16.msra.mxu0 %v13279_v22  ;;  %9025 = vmatprep.subr.bf16.mxu1 %v13284_v42  ;;  %v13371_v22 = vld [vmem:[%s14845_s23 + $0x1db4] ss:$8 sps:$4 sm:$0xff]   ;;  %v13366_v42 = vld [vmem:[%s14845_s23 + $0x9b0] ss:$8 sps:$4 sm:$0xff]  }
 0x2d1   : > { %9845 = vmatprep.subr.bf16.mxu0 %v13287_v23  ;;  %v13369_v23 = vld [vmem:[%s14845_s23 + $0x1db0] ss:$8 sps:$4 sm:$0xff]  }
 0x2d3   : > { %9026 = vmatpush1.bf16.msra.mxu1 %v13282_v2  ;;  %v13374_v2 = vld [vmem:[%s14845_s23 + $0x9c4] ss:$8 sps:$4 sm:$0xff]  }
 0x2d4   : > { %9846 = vmatpush1.bf16.msra.mxu0 %v13285_v24  ;;  %9027 = vmatprep.subr.bf16.mxu1 %v13290_v13  ;;  %v13377_v24 = vld [vmem:[%s14845_s23 + $0x1dc4] ss:$8 sps:$4 sm:$0xff]   ;;  %v13372_v13 = vld [vmem:[%s14845_s23 + $0x9c0] ss:$8 sps:$4 sm:$0xff]  }
 0x2d5   : > { %9847 = vmatprep.subr.bf16.mxu0 %v13293_v53  ;;  %v13375_v53 = vld [vmem:[%s14845_s23 + $0x1dc0] ss:$8 sps:$4 sm:$0xff]  }
 0x2d7   : > { %9028 = vmatpush1.bf16.msra.mxu1 %v13288_v59  ;;  %v13380_v59 = vld [vmem:[%s14845_s23 + $0x9d4] ss:$8 sps:$4 sm:$0xff]  }
 0x2d8   : > { %9848 = vmatpush1.bf16.msra.mxu0 %v13291_v57  ;;  %9029 = vmatprep.subr.bf16.mxu1 %v13296_v27  ;;  %v13383_v57 = vld [vmem:[%s14845_s23 + $0x1dd4] ss:$8 sps:$4 sm:$0xff]   ;;  %v13378_v27 = vld [vmem:[%s14845_s23 + $0x9d0] ss:$8 sps:$4 sm:$0xff]  }
 0x2d9   : > { %9849 = vmatprep.subr.bf16.mxu0 %v13299_v28  ;;  %v13381_v28 = vld [vmem:[%s14845_s23 + $0x1dd0] ss:$8 sps:$4 sm:$0xff]  }
 0x2db   : > { %9030 = vmatpush1.bf16.msra.mxu1 %v13294_v29  ;;  %v13386_v29 = vld [vmem:[%s14845_s23 + $0x9e4] ss:$8 sps:$4 sm:$0xff]  }
 0x2dc   : > { %9850 = vmatpush1.bf16.msra.mxu0 %v13297_v30  ;;  %9040 = vmatprep.subr.bf16.mxu1 %v13302_v16  ;;  %v13389_v30 = vld [vmem:[%s14845_s23 + $0x1de4] ss:$8 sps:$4 sm:$0xff]  }
 0x2dd   : > { %9860 = vmatprep.subr.bf16.mxu0 %v13305_v32  ;;  %v14364_v16 = vld [vmem:[%s14911_s17 + $0x10] sm:$0xff] }
 0x2de   : > { %9032 = vmatmul.mubr.bf16.vlgmr.msra.gmra.mrb[0].mxu1 %v15608_v33  ;;  %v1799_v32 = vcombine.high %v14364_v16, %v14364_v16  ;;  %v13464_v16 = vld [vmem:[%s14845_s23 + $0xab4] ss:$8 sps:$4 sm:$0xff]  }
 0x2df   : > { %9852 = vmatmul.mubr.bf16.vlgmr.msra.gmra.mrb[0].mxu0 %v15612_v34  ;;  %9041 = vmatpush1.bf16.msra.mxu1 %v13300_v35  ;;  %v14365_v35 = vld [vmem:[%s14911_s17 + $0x38] sm:$0xff] }
 0x2e0   : > { %9861 = vmatpush1.bf16.msra.mxu0 %v13303_v36  ;;  %9042 = vmatprep.subr.bf16.mxu1 %v13308_v18  ;;  %v2044_v36 = vcombine.high %v14365_v35, %v14365_v35  ;;  %v13384_v18 = vld [vmem:[%s14845_s23 + $0x9e0] ss:$8 sps:$4 sm:$0xff]   ;;  %v13462_v35 = vld [vmem:[%s14845_s23 + $0xab0] ss:$8 sps:$4 sm:$0xff]  }
 0x2e1   : > { %9862 = vmatprep.subr.bf16.mxu0 %v13311_v38  ;;  %9072 = vmatprep.mubr.bf16.mxu1 %v1846_v60  ;;  %v13387_v38 = vld [vmem:[%s14845_s23 + $0x1de0] ss:$8 sps:$4 sm:$0xff]   ;;  %v13392_v60 = vld [vmem:[%s14845_s23 + $0x9f4] ss:$8 sps:$4 sm:$0xff]  }
 0x2e2   : > { %9892 = vmatprep.mubr.bf16.mxu0 %v2091_v43  ;;  %v13395_v43 = vld [vmem:[%s14845_s23 + $0x1df4] ss:$8 sps:$4 sm:$0xff]  }
 0x2e3   : > { %9043 = vmatpush1.bf16.msra.mxu1 %v13306_v14  ;;  %v15683_v14 = vrot.slane %v1799_v32, %v14914_v50  ;;  %v13467_v32 = vld [vmem:[%s14845_s23 + $0x1eb4] ss:$8 sps:$4 sm:$0xff]  }
 0x2e4   : > { %9863 = vmatpush1.bf16.msra.mxu0 %v13309_v45  ;;  %9044 = vmatprep.subr.bf16.mxu1 %v13314_v31  ;;  %v15686_v45 = vrot.slane %v2044_v36, %v14914_v50  ;;  %v13390_v31 = vld [vmem:[%s14845_s23 + $0x9f0] ss:$8 sps:$4 sm:$0xff]  }
 0x2e5   : > { %9864 = vmatprep.subr.bf16.mxu0 %v13317_v25  ;;  %v13393_v25 = vld [vmem:[%s14845_s23 + $0x1df0] ss:$8 sps:$4 sm:$0xff]  }
 0x2e6   : > { %v13465_v36 = vld [vmem:[%s14845_s23 + $0x1eb0] ss:$8 sps:$4 sm:$0xff]  }
 0x2e7   : > { %9045 = vmatpush1.bf16.msra.mxu1 %v13312_v15  ;;  %v13398_v15 = vld [vmem:[%s14845_s23 + $0xa04] ss:$8 sps:$4 sm:$0xff]  }
 0x2e8   : > { %9865 = vmatpush1.bf16.msra.mxu0 %v13315_v46  ;;  %9046 = vmatprep.subr.bf16.mxu1 %v13320_v26  ;;  %v13401_v46 = vld [vmem:[%s14845_s23 + $0x1e04] ss:$8 sps:$4 sm:$0xff]   ;;  %v1815_v26 = vcombine.high %v15683_v14, %v15683_v14 }
 0x2e9   : > { %9866 = vmatprep.subr.bf16.mxu0 %v13323_v47  ;;  %v2060_v47 = vcombine.high %v15686_v45, %v15686_v45 }
 0x2eb   : > { %9047 = vmatpush1.bf16.msra.mxu1 %v13318_v37  ;;  %v1844_v37 = vcombine.high %v15608_v33, %v15608_v33  ;;  %v15708_v33 = vrot.slane %v2060_v47, %v14914_v50  ;;  %v13485_v47 = vld [vmem:[%s14845_s23 + $0x1ee4] ss:$8 sps:$4 sm:$0xff]  }
 0x2ec   : > { %9867 = vmatpush1.bf16.msra.mxu0 %v13321_v48  ;;  %9048 = vmatprep.subr.bf16.mxu1 %v13326_v17  ;;  %v2089_v48 = vcombine.high %v15612_v34, %v15612_v34  ;;  %v13396_v17 = vld [vmem:[%s14845_s23 + $0xa00] ss:$8 sps:$4 sm:$0xff]   ;;  %v13402_v34 = vld [vmem:[%s14845_s23 + $0xa10] ss:$8 sps:$4 sm:$0xff]  }
 0x2ed   : > { %9868 = vmatprep.subr.bf16.mxu0 %v13329_v49  ;;  %v13399_v49 = vld [vmem:[%s14845_s23 + $0x1e00] ss:$8 sps:$4 sm:$0xff]  }
 0x2ef   : > { %9049 = vmatpush1.bf16.msra.mxu1 %v13324_v51  ;;  %v13404_v51 = vld [vmem:[%s14845_s23 + $0xa14] ss:$8 sps:$4 sm:$0xff]  }
 0x2f0   : > { %9869 = vmatpush1.bf16.msra.mxu0 %v13327_v52  ;;  %9050 = vmatprep.subr.bf16.mxu1 %v13332_v54  ;;  %v13407_v52 = vld [vmem:[%s14845_s23 + $0x1e14] ss:$8 sps:$4 sm:$0xff]   ;;  %v15705_v54 = vrot.slane %v1815_v26, %v14914_v50  ;;  %v13482_v26 = vld [vmem:[%s14845_s23 + $0xae4] ss:$8 sps:$4 sm:$0xff]  }
 0x2f1   : > { %9870 = vmatprep.subr.bf16.mxu0 %v13335_v55  ;;  %v13405_v55 = vld [vmem:[%s14845_s23 + $0x1e10] ss:$8 sps:$4 sm:$0xff]  }
 0x2f3   : > { %9051 = vmatpush1.bf16.msra.mxu1 %v13330_v39  ;;  %v13410_v39 = vld [vmem:[%s14845_s23 + $0xa24] ss:$8 sps:$4 sm:$0xff]  }
 0x2f4   : > { %9871 = vmatpush1.bf16.msra.mxu0 %v13333_v40  ;;  %9052 = vmatprep.subr.bf16.mxu1 %v13338_v61  ;;  %v13413_v40 = vld [vmem:[%s14845_s23 + $0x1e24] ss:$8 sps:$4 sm:$0xff]   ;;  %v13408_v61 = vld [vmem:[%s14845_s23 + $0xa20] ss:$8 sps:$4 sm:$0xff]  }
 0x2f5   : > { %9872 = vmatprep.subr.bf16.mxu0 %v13341_v62  ;;  %v13411_v62 = vld [vmem:[%s14845_s23 + $0x1e20] ss:$8 sps:$4 sm:$0xff]  }
 0x2f7   : > { %9053 = vmatpush1.bf16.msra.mxu1 %v13336_v63  ;;  %v13416_v63 = vld [vmem:[%s14845_s23 + $0xa34] ss:$8 sps:$4 sm:$0xff]  }
 0x2f8   : > { %9873 = vmatpush1.bf16.msra.mxu0 %v13339_v0  ;;  %9054 = vmatprep.subr.bf16.mxu1 %v13344_v41  ;;  %v13419_v0 = vld [vmem:[%s14845_s23 + $0x1e34] ss:$8 sps:$4 sm:$0xff]   ;;  %v13414_v41 = vld [vmem:[%s14845_s23 + $0xa30] ss:$8 sps:$4 sm:$0xff]  }
 0x2f9   : > { %9874 = vmatprep.subr.bf16.mxu0 %v13347_v1  ;;  %v13417_v1 = vld [vmem:[%s14845_s23 + $0x1e30] ss:$8 sps:$4 sm:$0xff]  }
 0x2fb   : > { %9055 = vmatpush1.bf16.msra.mxu1 %v13342_v56  ;;  %v13422_v56 = vld [vmem:[%s14845_s23 + $0xa44] ss:$8 sps:$4 sm:$0xff]  }
 0x2fc   : > { %9875 = vmatpush1.bf16.msra.mxu0 %v13345_v3  ;;  %9056 = vmatprep.subr.bf16.mxu1 %v13350_v58  ;;  %v13425_v3 = vld [vmem:[%s14845_s23 + $0x1e44] ss:$8 sps:$4 sm:$0xff]   ;;  %v13420_v58 = vld [vmem:[%s14845_s23 + $0xa40] ss:$8 sps:$4 sm:$0xff]  }
 0x2fd   : > { %9876 = vmatprep.subr.bf16.mxu0 %v13353_v4  ;;  %v13423_v4 = vld [vmem:[%s14845_s23 + $0x1e40] ss:$8 sps:$4 sm:$0xff]  }
 0x2ff   : > { %9057 = vmatpush1.bf16.msra.mxu1 %v13348_v5  ;;  %v13428_v5 = vld [vmem:[%s14845_s23 + $0xa54] ss:$8 sps:$4 sm:$0xff]  }
 0x300   : > { %9877 = vmatpush1.bf16.msra.mxu0 %v13351_v6  ;;  %9058 = vmatprep.subr.bf16.mxu1 %v13356_v7  ;;  %v13431_v6 = vld [vmem:[%s14845_s23 + $0x1e54] ss:$8 sps:$4 sm:$0xff]   ;;  %v13426_v7 = vld [vmem:[%s14845_s23 + $0xa50] ss:$8 sps:$4 sm:$0xff]  }
 0x301   : > { %9878 = vmatprep.subr.bf16.mxu0 %v13359_v8  ;;  %v13429_v8 = vld [vmem:[%s14845_s23 + $0x1e50] ss:$8 sps:$4 sm:$0xff]  }
 0x303   : > { %9059 = vmatpush1.bf16.msra.mxu1 %v13354_v9  ;;  %v13434_v9 = vld [vmem:[%s14845_s23 + $0xa64] ss:$8 sps:$4 sm:$0xff]  }
 0x304   : > { %9879 = vmatpush1.bf16.msra.mxu0 %v13357_v10  ;;  %9060 = vmatprep.subr.bf16.mxu1 %v13362_v11  ;;  %v13437_v10 = vld [vmem:[%s14845_s23 + $0x1e64] ss:$8 sps:$4 sm:$0xff]   ;;  %v13432_v11 = vld [vmem:[%s14845_s23 + $0xa60] ss:$8 sps:$4 sm:$0xff]  }
 0x305   : > { %9880 = vmatprep.subr.bf16.mxu0 %v13365_v12  ;;  %v13435_v12 = vld [vmem:[%s14845_s23 + $0x1e60] ss:$8 sps:$4 sm:$0xff]  }
 0x307   : > { %9061 = vmatpush1.bf16.msra.mxu1 %v13360_v19  ;;  %v13440_v19 = vld [vmem:[%s14845_s23 + $0xa74] ss:$8 sps:$4 sm:$0xff]  }
 0x308   : > { %9881 = vmatpush1.bf16.msra.mxu0 %v13363_v20  ;;  %9062 = vmatprep.subr.bf16.mxu1 %v13368_v21  ;;  %v13443_v20 = vld [vmem:[%s14845_s23 + $0x1e74] ss:$8 sps:$4 sm:$0xff]   ;;  %v13438_v21 = vld [vmem:[%s14845_s23 + $0xa70] ss:$8 sps:$4 sm:$0xff]  }
 0x309   : > { %9882 = vmatprep.subr.bf16.mxu0 %v13371_v22  ;;  %v13441_v22 = vld [vmem:[%s14845_s23 + $0x1e70] ss:$8 sps:$4 sm:$0xff]  }
 0x30b   : > { %9063 = vmatpush1.bf16.msra.mxu1 %v13366_v42  ;;  %v13446_v42 = vld [vmem:[%s14845_s23 + $0xa84] ss:$8 sps:$4 sm:$0xff]  }
 0x30c   : > { %9883 = vmatpush1.bf16.msra.mxu0 %v13369_v23  ;;  %9064 = vmatprep.subr.bf16.mxu1 %v13374_v2  ;;  %v13449_v23 = vld [vmem:[%s14845_s23 + $0x1e84] ss:$8 sps:$4 sm:$0xff]   ;;  %v13444_v2 = vld [vmem:[%s14845_s23 + $0xa80] ss:$8 sps:$4 sm:$0xff]  }
 0x30d   : > { %9884 = vmatprep.subr.bf16.mxu0 %v13377_v24  ;;  %v13447_v24 = vld [vmem:[%s14845_s23 + $0x1e80] ss:$8 sps:$4 sm:$0xff]  }
 0x30f   : > { %9065 = vmatpush1.bf16.msra.mxu1 %v13372_v13  ;;  %v13452_v13 = vld [vmem:[%s14845_s23 + $0xa94] ss:$8 sps:$4 sm:$0xff]  }
 0x310   : > { %9885 = vmatpush1.bf16.msra.mxu0 %v13375_v53  ;;  %9066 = vmatprep.subr.bf16.mxu1 %v13380_v59  ;;  %v13455_v53 = vld [vmem:[%s14845_s23 + $0x1e94] ss:$8 sps:$4 sm:$0xff]   ;;  %v13450_v59 = vld [vmem:[%s14845_s23 + $0xa90] ss:$8 sps:$4 sm:$0xff]  }
 0x311   : > { %9886 = vmatprep.subr.bf16.mxu0 %v13383_v57  ;;  %v13453_v57 = vld [vmem:[%s14845_s23 + $0x1e90] ss:$8 sps:$4 sm:$0xff]  }
 0x313   : > { %9067 = vmatpush1.bf16.msra.mxu1 %v13378_v27  ;;  %v13458_v27 = vld [vmem:[%s14845_s23 + $0xaa4] ss:$8 sps:$4 sm:$0xff]  }
 0x314   : > { %9887 = vmatpush1.bf16.msra.mxu0 %v13381_v28  ;;  %9068 = vmatprep.subr.bf16.mxu1 %v13386_v29  ;;  %v13461_v28 = vld [vmem:[%s14845_s23 + $0x1ea4] ss:$8 sps:$4 sm:$0xff]   ;;  %v13456_v29 = vld [vmem:[%s14845_s23 + $0xaa0] ss:$8 sps:$4 sm:$0xff]  }
 0x315   : > { %9888 = vmatprep.subr.bf16.mxu0 %v13389_v30  ;;  %v13459_v30 = vld [vmem:[%s14845_s23 + $0x1ea0] ss:$8 sps:$4 sm:$0xff]  }
 0x317   : > { %9069 = vmatpush1.bf16.msra.mxu1 %v13384_v18  ;;  %v13470_v18 = vld [vmem:[%s14845_s23 + $0xac4] ss:$8 sps:$4 sm:$0xff]  }
 0x318   : > { %9889 = vmatpush1.bf16.msra.mxu0 %v13387_v38  ;;  %9070 = vmatprep.subr.bf16.mxu1 %v13392_v60  ;;  %v13473_v38 = vld [vmem:[%s14845_s23 + $0x1ec4] ss:$8 sps:$4 sm:$0xff]   ;;  %v13468_v60 = vld [vmem:[%s14845_s23 + $0xac0] ss:$8 sps:$4 sm:$0xff]  }
 0x319   : > { %9890 = vmatprep.subr.bf16.mxu0 %v13395_v43  ;;  %v13471_v43 = vld [vmem:[%s14845_s23 + $0x1ec0] ss:$8 sps:$4 sm:$0xff]  }
 0x31b   : > { %9071 = vmatpush1.bf16.msra.mxu1 %v13390_v31  ;;  %v13476_v31 = vld [vmem:[%s14845_s23 + $0xad4] ss:$8 sps:$4 sm:$0xff]  }
 0x31c   : > { %9891 = vmatpush1.bf16.msra.mxu0 %v13393_v25  ;;  %9081 = vmatprep.subr.bf16.mxu1 %v13398_v15  ;;  %v13479_v25 = vld [vmem:[%s14845_s23 + $0x1ed4] ss:$8 sps:$4 sm:$0xff]   ;;  %v13474_v15 = vld [vmem:[%s14845_s23 + $0xad0] ss:$8 sps:$4 sm:$0xff]  }
 0x31d   : > { %9901 = vmatprep.subr.bf16.mxu0 %v13401_v46  ;;  %v13477_v46 = vld [vmem:[%s14845_s23 + $0x1ed0] ss:$8 sps:$4 sm:$0xff]  }
 0x31e   : > { %9073 = vmatmul.mubr.bf16.vlgmr.msra.gmra.mrb[0].mxu1 %v1844_v37  ;;  %v13480_v37 = vld [vmem:[%s14845_s23 + $0xae0] ss:$8 sps:$4 sm:$0xff]  }
 0x31f   : > { %9893 = vmatmul.mubr.bf16.vlgmr.msra.gmra.mrb[0].mxu0 %v2089_v48  ;;  %9082 = vmatpush1.bf16.msra.mxu1 %v13396_v17  ;;  %v13483_v48 = vld [vmem:[%s14845_s23 + $0x1ee0] ss:$8 sps:$4 sm:$0xff]   ;;  %v13488_v17 = vld [vmem:[%s14845_s23 + $0xaf4] ss:$8 sps:$4 sm:$0xff]  }
 0x320   : > { %9902 = vmatpush1.bf16.msra.mxu0 %v13399_v49  ;;  %9083 = vmatprep.subr.bf16.mxu1 %v13404_v51  ;;  %v13491_v49 = vld [vmem:[%s14845_s23 + $0x1ef4] ss:$8 sps:$4 sm:$0xff]   ;;  %v13486_v51 = vld [vmem:[%s14845_s23 + $0xaf0] ss:$8 sps:$4 sm:$0xff]  }
 0x321   : > { %9903 = vmatprep.subr.bf16.mxu0 %v13407_v52  ;;  %9113 = vmatprep.mubr.bf16.mxu1 %v15705_v54  ;;  %v13489_v52 = vld [vmem:[%s14845_s23 + $0x1ef0] ss:$8 sps:$4 sm:$0xff]  }
 0x322   : > { %9933 = vmatprep.mubr.bf16.mxu0 %v15708_v33 }
 0x323   : > { %9084 = vmatpush1.bf16.msra.mxu1 %v13402_v34  ;;  %v13495_v34 = vld [vmem:[%s14845_s23 + $0xb04] ss:$8 sps:$4 sm:$0xff]  }
 0x324   : > { %9904 = vmatpush1.bf16.msra.mxu0 %v13405_v55  ;;  %9085 = vmatprep.subr.bf16.mxu1 %v13410_v39  ;;  %v13499_v55 = vld [vmem:[%s14845_s23 + $0x1f04] ss:$8 sps:$4 sm:$0xff]   ;;  %v15774_v39 = vrot.slane %v15683_v14, %v14914_v50  ;;  %v1847_v14 = vcombine.high %v15705_v54, %v15705_v54 }
 0x325   : > { %9905 = vmatprep.subr.bf16.mxu0 %v13413_v40  ;;  %v15778_v40 = vrot.slane %v15686_v45, %v14914_v50  ;;  %v13500_v45 = vld [vmem:[%s14845_s23 + $0xb10] ss:$8 sps:$4 sm:$0xff]   ;;  %v13508_v54 = vld [vmem:[%s14845_s23 + $0xb24] ss:$8 sps:$4 sm:$0xff]  }
 0x327   : > { %9086 = vmatpush1.bf16.msra.mxu1 %v13408_v61  ;;  %v13493_v61 = vld [vmem:[%s14845_s23 + $0xb00] ss:$8 sps:$4 sm:$0xff]  }
 0x328   : > { %9906 = vmatpush1.bf16.msra.mxu0 %v13411_v62  ;;  %9087 = vmatprep.subr.bf16.mxu1 %v13416_v63  ;;  %v13497_v62 = vld [vmem:[%s14845_s23 + $0x1f00] ss:$8 sps:$4 sm:$0xff]   ;;  %v13502_v63 = vld [vmem:[%s14845_s23 + $0xb14] ss:$8 sps:$4 sm:$0xff]  }
 0x329   : > { %9907 = vmatprep.subr.bf16.mxu0 %v13419_v0  ;;  %v13505_v0 = vld [vmem:[%s14845_s23 + $0x1f14] ss:$8 sps:$4 sm:$0xff]  }
 0x32b   : > { %9088 = vmatpush1.bf16.msra.mxu1 %v13414_v41  ;;  %v2092_v41 = vcombine.high %v15708_v33, %v15708_v33  ;;  %v13506_v33 = vld [vmem:[%s14845_s23 + $0xb20] ss:$8 sps:$4 sm:$0xff]  }
 0x32c   : > { %9908 = vmatpush1.bf16.msra.mxu0 %v13417_v1  ;;  %9089 = vmatprep.subr.bf16.mxu1 %v13422_v56  ;;  %v13503_v1 = vld [vmem:[%s14845_s23 + $0x1f10] ss:$8 sps:$4 sm:$0xff]   ;;  %v13511_v56 = vld [vmem:[%s14845_s23 + $0x1f24] ss:$8 sps:$4 sm:$0xff]  }
 0x32d   : > { %9909 = vmatprep.subr.bf16.mxu0 %v13425_v3  ;;  %v13509_v3 = vld [vmem:[%s14845_s23 + $0x1f20] ss:$8 sps:$4 sm:$0xff]  }
 0x32f   : > { %9090 = vmatpush1.bf16.msra.mxu1 %v13420_v58  ;;  %v13514_v58 = vld [vmem:[%s14845_s23 + $0xb34] ss:$8 sps:$4 sm:$0xff]  }
 0x330   : > { %9910 = vmatpush1.bf16.msra.mxu0 %v13423_v4  ;;  %9091 = vmatprep.subr.bf16.mxu1 %v13428_v5  ;;  %v13517_v4 = vld [vmem:[%s14845_s23 + $0x1f34] ss:$8 sps:$4 sm:$0xff]   ;;  %v13512_v5 = vld [vmem:[%s14845_s23 + $0xb30] ss:$8 sps:$4 sm:$0xff]  }
 0x331   : > { %9911 = vmatprep.subr.bf16.mxu0 %v13431_v6  ;;  %v13515_v6 = vld [vmem:[%s14845_s23 + $0x1f30] ss:$8 sps:$4 sm:$0xff]  }
 0x333   : > { %9092 = vmatpush1.bf16.msra.mxu1 %v13426_v7  ;;  %v13520_v7 = vld [vmem:[%s14845_s23 + $0xb44] ss:$8 sps:$4 sm:$0xff]  }
 0x334   : > { %9912 = vmatpush1.bf16.msra.mxu0 %v13429_v8  ;;  %9093 = vmatprep.subr.bf16.mxu1 %v13434_v9  ;;  %v13523_v8 = vld [vmem:[%s14845_s23 + $0x1f44] ss:$8 sps:$4 sm:$0xff]   ;;  %v13518_v9 = vld [vmem:[%s14845_s23 + $0xb40] ss:$8 sps:$4 sm:$0xff]  }
 0x335   : > { %9913 = vmatprep.subr.bf16.mxu0 %v13437_v10  ;;  %v13521_v10 = vld [vmem:[%s14845_s23 + $0x1f40] ss:$8 sps:$4 sm:$0xff]  }
 0x337   : > { %9094 = vmatpush1.bf16.msra.mxu1 %v13432_v11  ;;  %v13526_v11 = vld [vmem:[%s14845_s23 + $0xb54] ss:$8 sps:$4 sm:$0xff]  }
 0x338   : > { %9914 = vmatpush1.bf16.msra.mxu0 %v13435_v12  ;;  %9095 = vmatprep.subr.bf16.mxu1 %v13440_v19  ;;  %v13529_v12 = vld [vmem:[%s14845_s23 + $0x1f54] ss:$8 sps:$4 sm:$0xff]   ;;  %v13524_v19 = vld [vmem:[%s14845_s23 + $0xb50] ss:$8 sps:$4 sm:$0xff]  }
 0x339   : > { %9915 = vmatprep.subr.bf16.mxu0 %v13443_v20  ;;  %v13527_v20 = vld [vmem:[%s14845_s23 + $0x1f50] ss:$8 sps:$4 sm:$0xff]  }
 0x33b   : > { %9096 = vmatpush1.bf16.msra.mxu1 %v13438_v21  ;;  %v13532_v21 = vld [vmem:[%s14845_s23 + $0xb64] ss:$8 sps:$4 sm:$0xff]  }
 0x33c   : > { %9916 = vmatpush1.bf16.msra.mxu0 %v13441_v22  ;;  %9097 = vmatprep.subr.bf16.mxu1 %v13446_v42  ;;  %v13535_v22 = vld [vmem:[%s14845_s23 + $0x1f64] ss:$8 sps:$4 sm:$0xff]   ;;  %v13530_v42 = vld [vmem:[%s14845_s23 + $0xb60] ss:$8 sps:$4 sm:$0xff]  }
 0x33d   : > { %9917 = vmatprep.subr.bf16.mxu0 %v13449_v23  ;;  %v13533_v23 = vld [vmem:[%s14845_s23 + $0x1f60] ss:$8 sps:$4 sm:$0xff]  }
 0x33f   : > { %9098 = vmatpush1.bf16.msra.mxu1 %v13444_v2  ;;  %v13538_v2 = vld [vmem:[%s14845_s23 + $0xb74] ss:$8 sps:$4 sm:$0xff]  }
 0x340   : > { %9918 = vmatpush1.bf16.msra.mxu0 %v13447_v24  ;;  %9099 = vmatprep.subr.bf16.mxu1 %v13452_v13  ;;  %v13541_v24 = vld [vmem:[%s14845_s23 + $0x1f74] ss:$8 sps:$4 sm:$0xff]   ;;  %v13536_v13 = vld [vmem:[%s14845_s23 + $0xb70] ss:$8 sps:$4 sm:$0xff]  }
 0x341   : > { %9919 = vmatprep.subr.bf16.mxu0 %v13455_v53  ;;  %v13539_v53 = vld [vmem:[%s14845_s23 + $0x1f70] ss:$8 sps:$4 sm:$0xff]  }
 0x343   : > { %9100 = vmatpush1.bf16.msra.mxu1 %v13450_v59  ;;  %v13544_v59 = vld [vmem:[%s14845_s23 + $0xb84] ss:$8 sps:$4 sm:$0xff]  }
 0x344   : > { %9920 = vmatpush1.bf16.msra.mxu0 %v13453_v57  ;;  %9101 = vmatprep.subr.bf16.mxu1 %v13458_v27  ;;  %v13547_v57 = vld [vmem:[%s14845_s23 + $0x1f84] ss:$8 sps:$4 sm:$0xff]   ;;  %v13542_v27 = vld [vmem:[%s14845_s23 + $0xb80] ss:$8 sps:$4 sm:$0xff]  }
 0x345   : > { %9921 = vmatprep.subr.bf16.mxu0 %v13461_v28  ;;  %v13545_v28 = vld [vmem:[%s14845_s23 + $0x1f80] ss:$8 sps:$4 sm:$0xff]  }
 0x347   : > { %9102 = vmatpush1.bf16.msra.mxu1 %v13456_v29  ;;  %v13550_v29 = vld [vmem:[%s14845_s23 + $0xb94] ss:$8 sps:$4 sm:$0xff]  }
 0x348   : > { %9922 = vmatpush1.bf16.msra.mxu0 %v13459_v30  ;;  %9103 = vmatprep.subr.bf16.mxu1 %v13464_v16  ;;  %v13553_v30 = vld [vmem:[%s14845_s23 + $0x1f94] ss:$8 sps:$4 sm:$0xff]   ;;  %v13548_v16 = vld [vmem:[%s14845_s23 + $0xb90] ss:$8 sps:$4 sm:$0xff]  }
 0x349   : > { %9923 = vmatprep.subr.bf16.mxu0 %v13467_v32  ;;  %v13551_v32 = vld [vmem:[%s14845_s23 + $0x1f90] ss:$8 sps:$4 sm:$0xff]  }
 0x34b   : > { %9104 = vmatpush1.bf16.msra.mxu1 %v13462_v35  ;;  %v13556_v35 = vld [vmem:[%s14845_s23 + $0xba4] ss:$8 sps:$4 sm:$0xff]  }
 0x34c   : > { %9924 = vmatpush1.bf16.msra.mxu0 %v13465_v36  ;;  %9105 = vmatprep.subr.bf16.mxu1 %v13470_v18  ;;  %v13559_v36 = vld [vmem:[%s14845_s23 + $0x1fa4] ss:$8 sps:$4 sm:$0xff]   ;;  %v13554_v18 = vld [vmem:[%s14845_s23 + $0xba0] ss:$8 sps:$4 sm:$0xff]  }
 0x34d   : > { %9925 = vmatprep.subr.bf16.mxu0 %v13473_v38  ;;  %v13557_v38 = vld [vmem:[%s14845_s23 + $0x1fa0] ss:$8 sps:$4 sm:$0xff]  }
 0x34f   : > { %9106 = vmatpush1.bf16.msra.mxu1 %v13468_v60  ;;  %v13562_v60 = vld [vmem:[%s14845_s23 + $0xbb4] ss:$8 sps:$4 sm:$0xff]  }
 0x350   : > { %9926 = vmatpush1.bf16.msra.mxu0 %v13471_v43  ;;  %9107 = vmatprep.subr.bf16.mxu1 %v13476_v31  ;;  %v13565_v43 = vld [vmem:[%s14845_s23 + $0x1fb4] ss:$8 sps:$4 sm:$0xff]   ;;  %v13560_v31 = vld [vmem:[%s14845_s23 + $0xbb0] ss:$8 sps:$4 sm:$0xff]  }
 0x351   : > { %9927 = vmatprep.subr.bf16.mxu0 %v13479_v25  ;;  %v13563_v25 = vld [vmem:[%s14845_s23 + $0x1fb0] ss:$8 sps:$4 sm:$0xff]  }
 0x353   : > { %9108 = vmatpush1.bf16.msra.mxu1 %v13474_v15  ;;  %v13568_v15 = vld [vmem:[%s14845_s23 + $0xbc4] ss:$8 sps:$4 sm:$0xff]  }
 0x354   : > { %9928 = vmatpush1.bf16.msra.mxu0 %v13477_v46  ;;  %9109 = vmatprep.subr.bf16.mxu1 %v13482_v26  ;;  %v13571_v46 = vld [vmem:[%s14845_s23 + $0x1fc4] ss:$8 sps:$4 sm:$0xff]   ;;  %v13566_v26 = vld [vmem:[%s14845_s23 + $0xbc0] ss:$8 sps:$4 sm:$0xff]  }
 0x355   : > { %9929 = vmatprep.subr.bf16.mxu0 %v13485_v47  ;;  %v13569_v47 = vld [vmem:[%s14845_s23 + $0x1fc0] ss:$8 sps:$4 sm:$0xff]  }
 0x357   : > { %9110 = vmatpush1.bf16.msra.mxu1 %v13480_v37  ;;  %v13574_v37 = vld [vmem:[%s14845_s23 + $0xbd4] ss:$8 sps:$4 sm:$0xff]  }
 0x358   : > { %9930 = vmatpush1.bf16.msra.mxu0 %v13483_v48  ;;  %9111 = vmatprep.subr.bf16.mxu1 %v13488_v17  ;;  %v13577_v48 = vld [vmem:[%s14845_s23 + $0x1fd4] ss:$8 sps:$4 sm:$0xff]   ;;  %v13572_v17 = vld [vmem:[%s14845_s23 + $0xbd0] ss:$8 sps:$4 sm:$0xff]  }
 0x359   : > { %9931 = vmatprep.subr.bf16.mxu0 %v13491_v49  ;;  %v13575_v49 = vld [vmem:[%s14845_s23 + $0x1fd0] ss:$8 sps:$4 sm:$0xff]  }
 0x35b   : > { %9112 = vmatpush1.bf16.msra.mxu1 %v13486_v51  ;;  %v13580_v51 = vld [vmem:[%s14845_s23 + $0xbe4] ss:$8 sps:$4 sm:$0xff]  }
 0x35c   : > { %9932 = vmatpush1.bf16.msra.mxu0 %v13489_v52  ;;  %9122 = vmatprep.subr.bf16.mxu1 %v13495_v34  ;;  %v13583_v52 = vld [vmem:[%s14845_s23 + $0x1fe4] ss:$8 sps:$4 sm:$0xff]   ;;  %v15843_v34 = vld [vmem:[%s14911_s17 + $0x18] sm:$0xff] }
 0x35d   : > { %9942 = vmatprep.subr.bf16.mxu0 %v13499_v55  ;;  %v15846_v55 = vld [vmem:[%s14911_s17 + $0x40] sm:$0xff] }
 0x35e   : > { %9114 = vmatmul.mubr.bf16.vlgmr.msra.gmra.mrb[0].mxu1 %v15774_v39 }
 0x35f   : > { %9934 = vmatmul.mubr.bf16.vlgmr.msra.gmra.mrb[0].mxu0 %v15778_v40  ;;  %9123 = vmatpush1.bf16.msra.mxu1 %v13493_v61  ;;  %v13578_v61 = vld [vmem:[%s14845_s23 + $0xbe0] ss:$8 sps:$4 sm:$0xff]  }
 0x360   : > { %9943 = vmatpush1.bf16.msra.mxu0 %v13497_v62  ;;  %9124 = vmatprep.subr.bf16.mxu1 %v13502_v63  ;;  %v13581_v62 = vld [vmem:[%s14845_s23 + $0x1fe0] ss:$8 sps:$4 sm:$0xff]   ;;  %v13586_v63 = vld [vmem:[%s14845_s23 + $0xbf4] ss:$8 sps:$4 sm:$0xff]  }
 0x361   : > { %9944 = vmatprep.subr.bf16.mxu0 %v13505_v0  ;;  %9154 = vmatprep.mubr.bf16.mxu1 %v1847_v14  ;;  %v13589_v0 = vld [vmem:[%s14845_s23 + $0x1ff4] ss:$8 sps:$4 sm:$0xff]   ;;  %v15854_v14 = vrot.slane %v15843_v34, %v14914_v50 }
 0x362   : > { %9974 = vmatprep.mubr.bf16.mxu0 %v2092_v41  ;;  %v15858_v41 = vrot.slane %v15846_v55, %v14914_v50 }
 0x363   : > { %9125 = vmatpush1.bf16.msra.mxu1 %v13500_v45  ;;  %v13584_v45 = vld [vmem:[%s14845_s23 + $0xbf0] ss:$8 sps:$4 sm:$0xff]  }
 0x364   : > { %9945 = vmatpush1.bf16.msra.mxu0 %v13503_v1  ;;  %9126 = vmatprep.subr.bf16.mxu1 %v13508_v54  ;;  %v13587_v1 = vld [vmem:[%s14845_s23 + $0x1ff0] ss:$8 sps:$4 sm:$0xff]   ;;  %v13592_v54 = vld [vmem:[%s14845_s23 + $0xc04] ss:$8 sps:$4 sm:$0xff]  }
 0x365   : > { %9946 = vmatprep.subr.bf16.mxu0 %v13511_v56  ;;  %v13595_v56 = vld [vmem:[%s14845_s23 + $0x2004] ss:$8 sps:$4 sm:$0xff]  }
 0x367   : > { %9127 = vmatpush1.bf16.msra.mxu1 %v13506_v33  ;;  %v1863_v33 = vcombine.high %v15854_v14, %v15854_v14 }
 0x368   : > { %9947 = vmatpush1.bf16.msra.mxu0 %v13509_v3  ;;  %9128 = vmatprep.subr.bf16.mxu1 %v13514_v58  ;;  %v2108_v3 = vcombine.high %v15858_v41, %v15858_v41  ;;  %v1845_v58 = vcombine.high %v15774_v39, %v15774_v39 }
 0x369   : > { %9948 = vmatprep.subr.bf16.mxu0 %v13517_v4  ;;  %v2090_v4 = vcombine.high %v15778_v40, %v15778_v40  ;;  %v13596_v40 = vld [vmem:[%s14845_s23 + $0xc10] ss:$8 sps:$4 sm:$0xff]  }
 0x36a   : > { %v15880_v39 = vrot.slane %v2108_v3, %v14914_v50  ;;  %v13671_v3 = vld [vmem:[%s14845_s23 + $0x20d0] ss:$8 sps:$4 sm:$0xff]  }
 0x36b   : > { %9129 = vmatpush1.bf16.msra.mxu1 %v13512_v5  ;;  %v13590_v5 = vld [vmem:[%s14845_s23 + $0xc00] ss:$8 sps:$4 sm:$0xff]  }
 0x36c   : > { %9949 = vmatpush1.bf16.msra.mxu0 %v13515_v6  ;;  %9130 = vmatprep.subr.bf16.mxu1 %v13520_v7  ;;  %v13593_v6 = vld [vmem:[%s14845_s23 + $0x2000] ss:$8 sps:$4 sm:$0xff]   ;;  %v13598_v7 = vld [vmem:[%s14845_s23 + $0xc14] ss:$8 sps:$4 sm:$0xff]  }
 0x36d   : > { %9950 = vmatprep.subr.bf16.mxu0 %v13523_v8  ;;  %v13601_v8 = vld [vmem:[%s14845_s23 + $0x2014] ss:$8 sps:$4 sm:$0xff]  }
 0x36f   : > { %9131 = vmatpush1.bf16.msra.mxu1 %v13518_v9  ;;  %v15877_v9 = vrot.slane %v1863_v33, %v14914_v50  ;;  %v13668_v33 = vld [vmem:[%s14845_s23 + $0xcd0] ss:$8 sps:$4 sm:$0xff]  }
 0x370   : > { %9951 = vmatpush1.bf16.msra.mxu0 %v13521_v10  ;;  %9132 = vmatprep.subr.bf16.mxu1 %v13526_v11  ;;  %v13599_v10 = vld [vmem:[%s14845_s23 + $0x2010] ss:$8 sps:$4 sm:$0xff]   ;;  %v13604_v11 = vld [vmem:[%s14845_s23 + $0xc24] ss:$8 sps:$4 sm:$0xff]  }
 0x371   : > { %9952 = vmatprep.subr.bf16.mxu0 %v13529_v12  ;;  %v13607_v12 = vld [vmem:[%s14845_s23 + $0x2024] ss:$8 sps:$4 sm:$0xff]  }
 0x373   : > { %9133 = vmatpush1.bf16.msra.mxu1 %v13524_v19  ;;  %v13602_v19 = vld [vmem:[%s14845_s23 + $0xc20] ss:$8 sps:$4 sm:$0xff]  }
 0x374   : > { %9953 = vmatpush1.bf16.msra.mxu0 %v13527_v20  ;;  %9134 = vmatprep.subr.bf16.mxu1 %v13532_v21  ;;  %v13605_v20 = vld [vmem:[%s14845_s23 + $0x2020] ss:$8 sps:$4 sm:$0xff]   ;;  %v13610_v21 = vld [vmem:[%s14845_s23 + $0xc34] ss:$8 sps:$4 sm:$0xff]  }
 0x375   : > { %9954 = vmatprep.subr.bf16.mxu0 %v13535_v22  ;;  %v13613_v22 = vld [vmem:[%s14845_s23 + $0x2034] ss:$8 sps:$4 sm:$0xff]  }
 0x377   : > { %9135 = vmatpush1.bf16.msra.mxu1 %v13530_v42  ;;  %v13608_v42 = vld [vmem:[%s14845_s23 + $0xc30] ss:$8 sps:$4 sm:$0xff]  }
 0x378   : > { %9955 = vmatpush1.bf16.msra.mxu0 %v13533_v23  ;;  %9136 = vmatprep.subr.bf16.mxu1 %v13538_v2  ;;  %v13611_v23 = vld [vmem:[%s14845_s23 + $0x2030] ss:$8 sps:$4 sm:$0xff]   ;;  %v13616_v2 = vld [vmem:[%s14845_s23 + $0xc44] ss:$8 sps:$4 sm:$0xff]  }
 0x379   : > { %9956 = vmatprep.subr.bf16.mxu0 %v13541_v24  ;;  %v13619_v24 = vld [vmem:[%s14845_s23 + $0x2044] ss:$8 sps:$4 sm:$0xff]  }
 0x37b   : > { %9137 = vmatpush1.bf16.msra.mxu1 %v13536_v13  ;;  %v13614_v13 = vld [vmem:[%s14845_s23 + $0xc40] ss:$8 sps:$4 sm:$0xff]  }
 0x37c   : > { %9957 = vmatpush1.bf16.msra.mxu0 %v13539_v53  ;;  %9138 = vmatprep.subr.bf16.mxu1 %v13544_v59  ;;  %v13617_v53 = vld [vmem:[%s14845_s23 + $0x2040] ss:$8 sps:$4 sm:$0xff]   ;;  %v13622_v59 = vld [vmem:[%s14845_s23 + $0xc54] ss:$8 sps:$4 sm:$0xff]  }
 0x37d   : > { %9958 = vmatprep.subr.bf16.mxu0 %v13547_v57  ;;  %v13625_v57 = vld [vmem:[%s14845_s23 + $0x2054] ss:$8 sps:$4 sm:$0xff]  }
 0x37f   : > { %9139 = vmatpush1.bf16.msra.mxu1 %v13542_v27  ;;  %v13620_v27 = vld [vmem:[%s14845_s23 + $0xc50] ss:$8 sps:$4 sm:$0xff]  }
 0x380   : > { %9959 = vmatpush1.bf16.msra.mxu0 %v13545_v28  ;;  %9140 = vmatprep.subr.bf16.mxu1 %v13550_v29  ;;  %v13623_v28 = vld [vmem:[%s14845_s23 + $0x2050] ss:$8 sps:$4 sm:$0xff]   ;;  %v13628_v29 = vld [vmem:[%s14845_s23 + $0xc64] ss:$8 sps:$4 sm:$0xff]  }
 0x381   : > { %9960 = vmatprep.subr.bf16.mxu0 %v13553_v30  ;;  %v13631_v30 = vld [vmem:[%s14845_s23 + $0x2064] ss:$8 sps:$4 sm:$0xff]  }
 0x383   : > { %9141 = vmatpush1.bf16.msra.mxu1 %v13548_v16  ;;  %v13626_v16 = vld [vmem:[%s14845_s23 + $0xc60] ss:$8 sps:$4 sm:$0xff]  }
 0x384   : > { %9961 = vmatpush1.bf16.msra.mxu0 %v13551_v32  ;;  %9142 = vmatprep.subr.bf16.mxu1 %v13556_v35  ;;  %v13629_v32 = vld [vmem:[%s14845_s23 + $0x2060] ss:$8 sps:$4 sm:$0xff]   ;;  %v13634_v35 = vld [vmem:[%s14845_s23 + $0xc74] ss:$8 sps:$4 sm:$0xff]  }
 0x385   : > { %9962 = vmatprep.subr.bf16.mxu0 %v13559_v36  ;;  %v13637_v36 = vld [vmem:[%s14845_s23 + $0x2074] ss:$8 sps:$4 sm:$0xff]  }
 0x387   : > { %9143 = vmatpush1.bf16.msra.mxu1 %v13554_v18  ;;  %v13632_v18 = vld [vmem:[%s14845_s23 + $0xc70] ss:$8 sps:$4 sm:$0xff]  }
 0x388   : > { %9963 = vmatpush1.bf16.msra.mxu0 %v13557_v38  ;;  %9144 = vmatprep.subr.bf16.mxu1 %v13562_v60  ;;  %v13635_v38 = vld [vmem:[%s14845_s23 + $0x2070] ss:$8 sps:$4 sm:$0xff]   ;;  %v13640_v60 = vld [vmem:[%s14845_s23 + $0xc84] ss:$8 sps:$4 sm:$0xff]  }
 0x389   : > { %9964 = vmatprep.subr.bf16.mxu0 %v13565_v43  ;;  %v13643_v43 = vld [vmem:[%s14845_s23 + $0x2084] ss:$8 sps:$4 sm:$0xff]  }
 0x38b   : > { %9145 = vmatpush1.bf16.msra.mxu1 %v13560_v31  ;;  %v13638_v31 = vld [vmem:[%s14845_s23 + $0xc80] ss:$8 sps:$4 sm:$0xff]  }
 0x38c   : > { %9965 = vmatpush1.bf16.msra.mxu0 %v13563_v25  ;;  %9146 = vmatprep.subr.bf16.mxu1 %v13568_v15  ;;  %v13641_v25 = vld [vmem:[%s14845_s23 + $0x2080] ss:$8 sps:$4 sm:$0xff]   ;;  %v13646_v15 = vld [vmem:[%s14845_s23 + $0xc94] ss:$8 sps:$4 sm:$0xff]  }
 0x38d   : > { %9966 = vmatprep.subr.bf16.mxu0 %v13571_v46  ;;  %v13649_v46 = vld [vmem:[%s14845_s23 + $0x2094] ss:$8 sps:$4 sm:$0xff]  }
 0x38f   : > { %9147 = vmatpush1.bf16.msra.mxu1 %v13566_v26  ;;  %v13644_v26 = vld [vmem:[%s14845_s23 + $0xc90] ss:$8 sps:$4 sm:$0xff]  }
 0x390   : > { %9967 = vmatpush1.bf16.msra.mxu0 %v13569_v47  ;;  %9148 = vmatprep.subr.bf16.mxu1 %v13574_v37  ;;  %v13647_v47 = vld [vmem:[%s14845_s23 + $0x2090] ss:$8 sps:$4 sm:$0xff]   ;;  %v13652_v37 = vld [vmem:[%s14845_s23 + $0xca4] ss:$8 sps:$4 sm:$0xff]  }
 0x391   : > { %9968 = vmatprep.subr.bf16.mxu0 %v13577_v48  ;;  %v13655_v48 = vld [vmem:[%s14845_s23 + $0x20a4] ss:$8 sps:$4 sm:$0xff]  }
 0x393   : > { %9149 = vmatpush1.bf16.msra.mxu1 %v13572_v17  ;;  %v13650_v17 = vld [vmem:[%s14845_s23 + $0xca0] ss:$8 sps:$4 sm:$0xff]  }
 0x394   : > { %9969 = vmatpush1.bf16.msra.mxu0 %v13575_v49  ;;  %9150 = vmatprep.subr.bf16.mxu1 %v13580_v51  ;;  %v13653_v49 = vld [vmem:[%s14845_s23 + $0x20a0] ss:$8 sps:$4 sm:$0xff]   ;;  %v13658_v51 = vld [vmem:[%s14845_s23 + $0xcb4] ss:$8 sps:$4 sm:$0xff]  }
 0x395   : > { %9970 = vmatprep.subr.bf16.mxu0 %v13583_v52  ;;  %v13661_v52 = vld [vmem:[%s14845_s23 + $0x20b4] ss:$8 sps:$4 sm:$0xff]  }
 0x397   : > { %9151 = vmatpush1.bf16.msra.mxu1 %v13578_v61  ;;  %v13656_v61 = vld [vmem:[%s14845_s23 + $0xcb0] ss:$8 sps:$4 sm:$0xff]  }
 0x398   : > { %9971 = vmatpush1.bf16.msra.mxu0 %v13581_v62  ;;  %9152 = vmatprep.subr.bf16.mxu1 %v13586_v63  ;;  %v13659_v62 = vld [vmem:[%s14845_s23 + $0x20b0] ss:$8 sps:$4 sm:$0xff]   ;;  %v13664_v63 = vld [vmem:[%s14845_s23 + $0xcc4] ss:$8 sps:$4 sm:$0xff]  }
 0x399   : > { %9972 = vmatprep.subr.bf16.mxu0 %v13589_v0  ;;  %v13667_v0 = vld [vmem:[%s14845_s23 + $0x20c4] ss:$8 sps:$4 sm:$0xff]  }
 0x39b   : > { %9153 = vmatpush1.bf16.msra.mxu1 %v13584_v45  ;;  %v13662_v45 = vld [vmem:[%s14845_s23 + $0xcc0] ss:$8 sps:$4 sm:$0xff]  }
 0x39c   : > { %9973 = vmatpush1.bf16.msra.mxu0 %v13587_v1  ;;  %9163 = vmatprep.subr.bf16.mxu1 %v13592_v54  ;;  %v13665_v1 = vld [vmem:[%s14845_s23 + $0x20c0] ss:$8 sps:$4 sm:$0xff]   ;;  %v13670_v54 = vld [vmem:[%s14845_s23 + $0xcd4] ss:$8 sps:$4 sm:$0xff]  }
 0x39d   : > { %9983 = vmatprep.subr.bf16.mxu0 %v13595_v56  ;;  %v13673_v56 = vld [vmem:[%s14845_s23 + $0x20d4] ss:$8 sps:$4 sm:$0xff]  }
 0x39e   : > { %9155 = vmatmul.mubr.bf16.vlgmr.msra.gmra.mrb[0].mxu1 %v1845_v58  ;;  %v13676_v58 = vld [vmem:[%s14845_s23 + $0xce4] ss:$8 sps:$4 sm:$0xff]  }
 0x39f   : > { %9975 = vmatmul.mubr.bf16.vlgmr.msra.gmra.mrb[0].mxu0 %v2090_v4  ;;  %9164 = vmatpush1.bf16.msra.mxu1 %v13590_v5  ;;  %v13679_v4 = vld [vmem:[%s14845_s23 + $0x20e4] ss:$8 sps:$4 sm:$0xff]   ;;  %v13674_v5 = vld [vmem:[%s14845_s23 + $0xce0] ss:$8 sps:$4 sm:$0xff]  }
 0x3a0   : > { %9984 = vmatpush1.bf16.msra.mxu0 %v13593_v6  ;;  %9165 = vmatprep.subr.bf16.mxu1 %v13598_v7  ;;  %v13677_v6 = vld [vmem:[%s14845_s23 + $0x20e0] ss:$8 sps:$4 sm:$0xff]   ;;  %v13682_v7 = vld [vmem:[%s14845_s23 + $0xcf4] ss:$8 sps:$4 sm:$0xff]  }
 0x3a1   : > { %9985 = vmatprep.subr.bf16.mxu0 %v13601_v8  ;;  %9195 = vmatprep.mubr.bf16.mxu1 %v15877_v9  ;;  %v13685_v8 = vld [vmem:[%s14845_s23 + $0x20f4] ss:$8 sps:$4 sm:$0xff]  }
 0x3a2   : > { %10015 = vmatprep.mubr.bf16.mxu0 %v15880_v39 }
 0x3a3   : > { %9166 = vmatpush1.bf16.msra.mxu1 %v13596_v40  ;;  %v13680_v40 = vld [vmem:[%s14845_s23 + $0xcf0] ss:$8 sps:$4 sm:$0xff]  }
 0x3a4   : > { %9986 = vmatpush1.bf16.msra.mxu0 %v13599_v10  ;;  %9167 = vmatprep.subr.bf16.mxu1 %v13604_v11  ;;  %v13683_v10 = vld [vmem:[%s14845_s23 + $0x20f0] ss:$8 sps:$4 sm:$0xff]   ;;  %v13688_v11 = vld [vmem:[%s14845_s23 + $0xd04] ss:$8 sps:$4 sm:$0xff]  }
 0x3a5   : > { %9987 = vmatprep.subr.bf16.mxu0 %v13607_v12  ;;  %v13691_v12 = vld [vmem:[%s14845_s23 + $0x2104] ss:$8 sps:$4 sm:$0xff]  }
 0x3a7   : > { %9168 = vmatpush1.bf16.msra.mxu1 %v13602_v19  ;;  %v15946_v19 = vrot.slane %v15854_v14, %v14914_v50  ;;  %v1895_v14 = vcombine.high %v15877_v9, %v15877_v9  ;;  %v13700_v9 = vld [vmem:[%s14845_s23 + $0xd24] ss:$8 sps:$4 sm:$0xff]  }
 0x3a8   : > { %9988 = vmatpush1.bf16.msra.mxu0 %v13605_v20  ;;  %9169 = vmatprep.subr.bf16.mxu1 %v13610_v21  ;;  %v15950_v20 = vrot.slane %v15858_v41, %v14914_v50  ;;  %v13686_v21 = vld [vmem:[%s14845_s23 + $0xd00] ss:$8 sps:$4 sm:$0xff]   ;;  %v13692_v41 = vld [vmem:[%s14845_s23 + $0xd10] ss:$8 sps:$4 sm:$0xff]  }
 0x3a9   : > { %9989 = vmatprep.subr.bf16.mxu0 %v13613_v22  ;;  %v13689_v22 = vld [vmem:[%s14845_s23 + $0x2100] ss:$8 sps:$4 sm:$0xff]  }
 0x3ab   : > { %9170 = vmatpush1.bf16.msra.mxu1 %v13608_v42  ;;  %v13694_v42 = vld [vmem:[%s14845_s23 + $0xd14] ss:$8 sps:$4 sm:$0xff]  }
 0x3ac   : > { %9990 = vmatpush1.bf16.msra.mxu0 %v13611_v23  ;;  %9171 = vmatprep.subr.bf16.mxu1 %v13616_v2  ;;  %v13697_v23 = vld [vmem:[%s14845_s23 + $0x2114] ss:$8 sps:$4 sm:$0xff]   ;;  %v2140_v2 = vcombine.high %v15880_v39, %v15880_v39  ;;  %v13698_v39 = vld [vmem:[%s14845_s23 + $0xd20] ss:$8 sps:$4 sm:$0xff]  }
 0x3ad   : > { %9991 = vmatprep.subr.bf16.mxu0 %v13619_v24  ;;  %v13695_v24 = vld [vmem:[%s14845_s23 + $0x2110] ss:$8 sps:$4 sm:$0xff]  }
 0x3af   : > { %9172 = vmatpush1.bf16.msra.mxu1 %v13614_v13  ;;  %v13703_v13 = vld [vmem:[%s14845_s23 + $0x2124] ss:$8 sps:$4 sm:$0xff]  }
 0x3b0   : > { %9992 = vmatpush1.bf16.msra.mxu0 %v13617_v53  ;;  %9173 = vmatprep.subr.bf16.mxu1 %v13622_v59  ;;  %v13701_v53 = vld [vmem:[%s14845_s23 + $0x2120] ss:$8 sps:$4 sm:$0xff]   ;;  %v13706_v59 = vld [vmem:[%s14845_s23 + $0xd34] ss:$8 sps:$4 sm:$0xff]  }
 0x3b1   : > { %9993 = vmatprep.subr.bf16.mxu0 %v13625_v57  ;;  %v13709_v57 = vld [vmem:[%s14845_s23 + $0x2134] ss:$8 sps:$4 sm:$0xff]  }
 0x3b3   : > { %9174 = vmatpush1.bf16.msra.mxu1 %v13620_v27  ;;  %v13704_v27 = vld [vmem:[%s14845_s23 + $0xd30] ss:$8 sps:$4 sm:$0xff]  }
 0x3b4   : > { %9994 = vmatpush1.bf16.msra.mxu0 %v13623_v28  ;;  %9175 = vmatprep.subr.bf16.mxu1 %v13628_v29  ;;  %v13707_v28 = vld [vmem:[%s14845_s23 + $0x2130] ss:$8 sps:$4 sm:$0xff]   ;;  %v13712_v29 = vld [vmem:[%s14845_s23 + $0xd44] ss:$8 sps:$4 sm:$0xff]  }
 0x3b5   : > { %9995 = vmatprep.subr.bf16.mxu0 %v13631_v30  ;;  %v13715_v30 = vld [vmem:[%s14845_s23 + $0x2144] ss:$8 sps:$4 sm:$0xff]  }
 0x3b7   : > { %9176 = vmatpush1.bf16.msra.mxu1 %v13626_v16  ;;  %v13710_v16 = vld [vmem:[%s14845_s23 + $0xd40] ss:$8 sps:$4 sm:$0xff]  }
 0x3b8   : > { %9996 = vmatpush1.bf16.msra.mxu0 %v13629_v32  ;;  %9177 = vmatprep.subr.bf16.mxu1 %v13634_v35  ;;  %v13713_v32 = vld [vmem:[%s14845_s23 + $0x2140] ss:$8 sps:$4 sm:$0xff]   ;;  %v13718_v35 = vld [vmem:[%s14845_s23 + $0xd54] ss:$8 sps:$4 sm:$0xff]  }
 0x3b9   : > { %9997 = vmatprep.subr.bf16.mxu0 %v13637_v36  ;;  %v13721_v36 = vld [vmem:[%s14845_s23 + $0x2154] ss:$8 sps:$4 sm:$0xff]  }
 0x3bb   : > { %9178 = vmatpush1.bf16.msra.mxu1 %v13632_v18  ;;  %v13716_v18 = vld [vmem:[%s14845_s23 + $0xd50] ss:$8 sps:$4 sm:$0xff]  }
 0x3bc   : > { %9998 = vmatpush1.bf16.msra.mxu0 %v13635_v38  ;;  %9179 = vmatprep.subr.bf16.mxu1 %v13640_v60  ;;  %v13719_v38 = vld [vmem:[%s14845_s23 + $0x2150] ss:$8 sps:$4 sm:$0xff]   ;;  %v13724_v60 = vld [vmem:[%s14845_s23 + $0xd64] ss:$8 sps:$4 sm:$0xff]  }
 0x3bd   : > { %9999 = vmatprep.subr.bf16.mxu0 %v13643_v43  ;;  %v13727_v43 = vld [vmem:[%s14845_s23 + $0x2164] ss:$8 sps:$4 sm:$0xff]  }
 0x3bf   : > { %9180 = vmatpush1.bf16.msra.mxu1 %v13638_v31  ;;  %v13722_v31 = vld [vmem:[%s14845_s23 + $0xd60] ss:$8 sps:$4 sm:$0xff]  }
 0x3c0   : > { %10000 = vmatpush1.bf16.msra.mxu0 %v13641_v25  ;;  %9181 = vmatprep.subr.bf16.mxu1 %v13646_v15  ;;  %v13725_v25 = vld [vmem:[%s14845_s23 + $0x2160] ss:$8 sps:$4 sm:$0xff]   ;;  %v13730_v15 = vld [vmem:[%s14845_s23 + $0xd74] ss:$8 sps:$4 sm:$0xff]  }
 0x3c1   : > { %10001 = vmatprep.subr.bf16.mxu0 %v13649_v46  ;;  %v13733_v46 = vld [vmem:[%s14845_s23 + $0x2174] ss:$8 sps:$4 sm:$0xff]  }
 0x3c3   : > { %9182 = vmatpush1.bf16.msra.mxu1 %v13644_v26  ;;  %v13728_v26 = vld [vmem:[%s14845_s23 + $0xd70] ss:$8 sps:$4 sm:$0xff]  }
 0x3c4   : > { %10002 = vmatpush1.bf16.msra.mxu0 %v13647_v47  ;;  %9183 = vmatprep.subr.bf16.mxu1 %v13652_v37  ;;  %v13731_v47 = vld [vmem:[%s14845_s23 + $0x2170] ss:$8 sps:$4 sm:$0xff]   ;;  %v13736_v37 = vld [vmem:[%s14845_s23 + $0xd84] ss:$8 sps:$4 sm:$0xff]  }
 0x3c5   : > { %10003 = vmatprep.subr.bf16.mxu0 %v13655_v48  ;;  %v13739_v48 = vld [vmem:[%s14845_s23 + $0x2184] ss:$8 sps:$4 sm:$0xff]  }
 0x3c7   : > { %9184 = vmatpush1.bf16.msra.mxu1 %v13650_v17  ;;  %v13734_v17 = vld [vmem:[%s14845_s23 + $0xd80] ss:$8 sps:$4 sm:$0xff]  }
 0x3c8   : > { %10004 = vmatpush1.bf16.msra.mxu0 %v13653_v49  ;;  %9185 = vmatprep.subr.bf16.mxu1 %v13658_v51  ;;  %v13737_v49 = vld [vmem:[%s14845_s23 + $0x2180] ss:$8 sps:$4 sm:$0xff]   ;;  %v13742_v51 = vld [vmem:[%s14845_s23 + $0xd94] ss:$8 sps:$4 sm:$0xff]  }
 0x3c9   : > { %10005 = vmatprep.subr.bf16.mxu0 %v13661_v52  ;;  %v13745_v52 = vld [vmem:[%s14845_s23 + $0x2194] ss:$8 sps:$4 sm:$0xff]  }
 0x3cb   : > { %9186 = vmatpush1.bf16.msra.mxu1 %v13656_v61  ;;  %v13740_v61 = vld [vmem:[%s14845_s23 + $0xd90] ss:$8 sps:$4 sm:$0xff]  }
 0x3cc   : > { %10006 = vmatpush1.bf16.msra.mxu0 %v13659_v62  ;;  %9187 = vmatprep.subr.bf16.mxu1 %v13664_v63  ;;  %v13743_v62 = vld [vmem:[%s14845_s23 + $0x2190] ss:$8 sps:$4 sm:$0xff]   ;;  %v13748_v63 = vld [vmem:[%s14845_s23 + $0xda4] ss:$8 sps:$4 sm:$0xff]  }
 0x3cd   : > { %10007 = vmatprep.subr.bf16.mxu0 %v13667_v0  ;;  %v13751_v0 = vld [vmem:[%s14845_s23 + $0x21a4] ss:$8 sps:$4 sm:$0xff]  }
 0x3cf   : > { %9188 = vmatpush1.bf16.msra.mxu1 %v13662_v45  ;;  %v13746_v45 = vld [vmem:[%s14845_s23 + $0xda0] ss:$8 sps:$4 sm:$0xff]  }
 0x3d0   : > { %10008 = vmatpush1.bf16.msra.mxu0 %v13665_v1  ;;  %9189 = vmatprep.subr.bf16.mxu1 %v13670_v54  ;;  %v13749_v1 = vld [vmem:[%s14845_s23 + $0x21a0] ss:$8 sps:$4 sm:$0xff]   ;;  %v13754_v54 = vld [vmem:[%s14845_s23 + $0xdb4] ss:$8 sps:$4 sm:$0xff]  }
 0x3d1   : > { %10009 = vmatprep.subr.bf16.mxu0 %v13673_v56  ;;  %v13757_v56 = vld [vmem:[%s14845_s23 + $0x21b4] ss:$8 sps:$4 sm:$0xff]  }
 0x3d3   : > { %9190 = vmatpush1.bf16.msra.mxu1 %v13668_v33  ;;  %v13752_v33 = vld [vmem:[%s14845_s23 + $0xdb0] ss:$8 sps:$4 sm:$0xff]  }
 0x3d4   : > { %10010 = vmatpush1.bf16.msra.mxu0 %v13671_v3  ;;  %9191 = vmatprep.subr.bf16.mxu1 %v13676_v58  ;;  %v13755_v3 = vld [vmem:[%s14845_s23 + $0x21b0] ss:$8 sps:$4 sm:$0xff]   ;;  %v13760_v58 = vld [vmem:[%s14845_s23 + $0xdc4] ss:$8 sps:$4 sm:$0xff]  }
 0x3d5   : > { %10011 = vmatprep.subr.bf16.mxu0 %v13679_v4  ;;  %v13763_v4 = vld [vmem:[%s14845_s23 + $0x21c4] ss:$8 sps:$4 sm:$0xff]  }
 0x3d7   : > { %9192 = vmatpush1.bf16.msra.mxu1 %v13674_v5  ;;  %v13758_v5 = vld [vmem:[%s14845_s23 + $0xdc0] ss:$8 sps:$4 sm:$0xff]  }
 0x3d8   : > { %10012 = vmatpush1.bf16.msra.mxu0 %v13677_v6  ;;  %9193 = vmatprep.subr.bf16.mxu1 %v13682_v7  ;;  %v13761_v6 = vld [vmem:[%s14845_s23 + $0x21c0] ss:$8 sps:$4 sm:$0xff]   ;;  %v13766_v7 = vld [vmem:[%s14845_s23 + $0xdd4] ss:$8 sps:$4 sm:$0xff]  }
 0x3d9   : > { %10013 = vmatprep.subr.bf16.mxu0 %v13685_v8  ;;  %v13769_v8 = vld [vmem:[%s14845_s23 + $0x21d4] ss:$8 sps:$4 sm:$0xff]  }
 0x3db   : > { %9194 = vmatpush1.bf16.msra.mxu1 %v13680_v40  ;;  %v13764_v40 = vld [vmem:[%s14845_s23 + $0xdd0] ss:$8 sps:$4 sm:$0xff]  }
 0x3dc   : > { %10014 = vmatpush1.bf16.msra.mxu0 %v13683_v10  ;;  %9204 = vmatprep.subr.bf16.mxu1 %v13688_v11  ;;  %v13767_v10 = vld [vmem:[%s14845_s23 + $0x21d0] ss:$8 sps:$4 sm:$0xff]   ;;  %v13772_v11 = vld [vmem:[%s14845_s23 + $0xde4] ss:$8 sps:$4 sm:$0xff]  }
 0x3dd   : > { %10024 = vmatprep.subr.bf16.mxu0 %v13691_v12  ;;  %v13775_v12 = vld [vmem:[%s14845_s23 + $0x21e4] ss:$8 sps:$4 sm:$0xff]  }
 0x3de   : > { %9196 = vmatmul.mubr.bf16.vlgmr.msra.gmra.mrb[0].mxu1 %v15946_v19 }
 0x3df   : > { %10016 = vmatmul.mubr.bf16.vlgmr.msra.gmra.mrb[0].mxu0 %v15950_v20  ;;  %9205 = vmatpush1.bf16.msra.mxu1 %v13686_v21  ;;  %v1848_v21 = vcombine.high %v15843_v34, %v15843_v34  ;;  %v13776_v34 = vld [vmem:[%s14845_s23 + $0xdf0] ss:$8 sps:$4 sm:$0xff]  }
 0x3e0   : > { %10025 = vmatpush1.bf16.msra.mxu0 %v13689_v22  ;;  %9206 = vmatprep.subr.bf16.mxu1 %v13694_v42  ;;  %v2093_v22 = vcombine.high %v15846_v55, %v15846_v55  ;;  %v13770_v42 = vld [vmem:[%s14845_s23 + $0xde0] ss:$8 sps:$4 sm:$0xff]   ;;  %v13779_v55 = vld [vmem:[%s14845_s23 + $0x21f0] ss:$8 sps:$4 sm:$0xff]  }
 0x3e1   : > { %10026 = vmatprep.subr.bf16.mxu0 %v13697_v23  ;;  %9236 = vmatprep.mubr.bf16.mxu1 %v1895_v14  ;;  %v13773_v23 = vld [vmem:[%s14845_s23 + $0x21e0] ss:$8 sps:$4 sm:$0xff]   ;;  %v13778_v14 = vld [vmem:[%s14845_s23 + $0xdf4] ss:$8 sps:$4 sm:$0xff]  }
 0x3e2   : > { %10056 = vmatprep.mubr.bf16.mxu0 %v2140_v2  ;;  %v13781_v2 = vld [vmem:[%s14845_s23 + $0x21f4] ss:$8 sps:$4 sm:$0xff]  }
 0x3e3   : > { %9207 = vmatpush1.bf16.msra.mxu1 %v13692_v41  ;;  %v16023_v41 = vrot.slane %v1848_v21, %v14914_v50  ;;  %v13848_v21 = vld [vmem:[%s14845_s23 + $0xeb0] ss:$8 sps:$4 sm:$0xff]  }
 0x3e4   : > { %10027 = vmatpush1.bf16.msra.mxu0 %v13695_v24  ;;  %9208 = vmatprep.subr.bf16.mxu1 %v13700_v9  ;;  %v16026_v24 = vrot.slane %v2093_v22, %v14914_v50  ;;  %v13784_v9 = vld [vmem:[%s14845_s23 + $0xe04] ss:$8 sps:$4 sm:$0xff]   ;;  %v13851_v22 = vld [vmem:[%s14845_s23 + $0x22b0] ss:$8 sps:$4 sm:$0xff]  }
 0x3e5   : > { %10028 = vmatprep.subr.bf16.mxu0 %v13703_v13  ;;  %v13787_v13 = vld [vmem:[%s14845_s23 + $0x2204] ss:$8 sps:$4 sm:$0xff]  }
 0x3e7   : > { %9209 = vmatpush1.bf16.msra.mxu1 %v13698_v39  ;;  %v1864_v39 = vcombine.high %v16023_v41, %v16023_v41 }
 0x3e8   : > { %10029 = vmatpush1.bf16.msra.mxu0 %v13701_v53  ;;  %9210 = vmatprep.subr.bf16.mxu1 %v13706_v59  ;;  %v2109_v53 = vcombine.high %v16026_v24, %v16026_v24  ;;  %v1893_v59 = vcombine.high %v15946_v19, %v15946_v19 }
 0x3e9   : > { %10030 = vmatprep.subr.bf16.mxu0 %v13709_v57  ;;  %v2138_v57 = vcombine.high %v15950_v20, %v15950_v20  ;;  %v13788_v20 = vld [vmem:[%s14845_s23 + $0xe10] ss:$8 sps:$4 sm:$0xff]  }
 0x3ea   : > { %v16048_v19 = vrot.slane %v2109_v53, %v14914_v50  ;;  %v13871_v53 = vld [vmem:[%s14845_s23 + $0x22e4] ss:$8 sps:$4 sm:$0xff]  }
 0x3eb   : > { %9211 = vmatpush1.bf16.msra.mxu1 %v13704_v27  ;;  %v13782_v27 = vld [vmem:[%s14845_s23 + $0xe00] ss:$8 sps:$4 sm:$0xff]  }
 0x3ec   : > { %10031 = vmatpush1.bf16.msra.mxu0 %v13707_v28  ;;  %9212 = vmatprep.subr.bf16.mxu1 %v13712_v29  ;;  %v13785_v28 = vld [vmem:[%s14845_s23 + $0x2200] ss:$8 sps:$4 sm:$0xff]   ;;  %v13790_v29 = vld [vmem:[%s14845_s23 + $0xe14] ss:$8 sps:$4 sm:$0xff]  }
 0x3ed   : > { %10032 = vmatprep.subr.bf16.mxu0 %v13715_v30  ;;  %v13793_v30 = vld [vmem:[%s14845_s23 + $0x2214] ss:$8 sps:$4 sm:$0xff]  }
 0x3ef   : > { %9213 = vmatpush1.bf16.msra.mxu1 %v13710_v16  ;;  %v16045_v16 = vrot.slane %v1864_v39, %v14914_v50  ;;  %v13868_v39 = vld [vmem:[%s14845_s23 + $0xee4] ss:$8 sps:$4 sm:$0xff]  }
 0x3f0   : > { %10033 = vmatpush1.bf16.msra.mxu0 %v13713_v32  ;;  %9214 = vmatprep.subr.bf16.mxu1 %v13718_v35  ;;  %v13791_v32 = vld [vmem:[%s14845_s23 + $0x2210] ss:$8 sps:$4 sm:$0xff]   ;;  %v13796_v35 = vld [vmem:[%s14845_s23 + $0xe24] ss:$8 sps:$4 sm:$0xff]  }
 0x3f1   : > { %10034 = vmatprep.subr.bf16.mxu0 %v13721_v36  ;;  %v13799_v36 = vld [vmem:[%s14845_s23 + $0x2224] ss:$8 sps:$4 sm:$0xff]  }
 0x3f3   : > { %9215 = vmatpush1.bf16.msra.mxu1 %v13716_v18  ;;  %v13794_v18 = vld [vmem:[%s14845_s23 + $0xe20] ss:$8 sps:$4 sm:$0xff]  }
 0x3f4   : > { %10035 = vmatpush1.bf16.msra.mxu0 %v13719_v38  ;;  %9216 = vmatprep.subr.bf16.mxu1 %v13724_v60  ;;  %v13797_v38 = vld [vmem:[%s14845_s23 + $0x2220] ss:$8 sps:$4 sm:$0xff]   ;;  %v13802_v60 = vld [vmem:[%s14845_s23 + $0xe34] ss:$8 sps:$4 sm:$0xff]  }
 0x3f5   : > { %10036 = vmatprep.subr.bf16.mxu0 %v13727_v43  ;;  %v13805_v43 = vld [vmem:[%s14845_s23 + $0x2234] ss:$8 sps:$4 sm:$0xff]  }
 0x3f7   : > { %9217 = vmatpush1.bf16.msra.mxu1 %v13722_v31  ;;  %v13800_v31 = vld [vmem:[%s14845_s23 + $0xe30] ss:$8 sps:$4 sm:$0xff]  }
 0x3f8   : > { %10037 = vmatpush1.bf16.msra.mxu0 %v13725_v25  ;;  %9218 = vmatprep.subr.bf16.mxu1 %v13730_v15  ;;  %v13803_v25 = vld [vmem:[%s14845_s23 + $0x2230] ss:$8 sps:$4 sm:$0xff]   ;;  %v13808_v15 = vld [vmem:[%s14845_s23 + $0xe44] ss:$8 sps:$4 sm:$0xff]  }
 0x3f9   : > { %10038 = vmatprep.subr.bf16.mxu0 %v13733_v46  ;;  %v13811_v46 = vld [vmem:[%s14845_s23 + $0x2244] ss:$8 sps:$4 sm:$0xff]  }
 0x3fb   : > { %9219 = vmatpush1.bf16.msra.mxu1 %v13728_v26  ;;  %v13806_v26 = vld [vmem:[%s14845_s23 + $0xe40] ss:$8 sps:$4 sm:$0xff]  }
 0x3fc   : > { %10039 = vmatpush1.bf16.msra.mxu0 %v13731_v47  ;;  %9220 = vmatprep.subr.bf16.mxu1 %v13736_v37  ;;  %v13809_v47 = vld [vmem:[%s14845_s23 + $0x2240] ss:$8 sps:$4 sm:$0xff]   ;;  %v13814_v37 = vld [vmem:[%s14845_s23 + $0xe54] ss:$8 sps:$4 sm:$0xff]  }
 0x3fd   : > { %10040 = vmatprep.subr.bf16.mxu0 %v13739_v48  ;;  %v13817_v48 = vld [vmem:[%s14845_s23 + $0x2254] ss:$8 sps:$4 sm:$0xff]  }
 0x3ff   : > { %9221 = vmatpush1.bf16.msra.mxu1 %v13734_v17  ;;  %v13812_v17 = vld [vmem:[%s14845_s23 + $0xe50] ss:$8 sps:$4 sm:$0xff]  }
 0x400   : > { %10041 = vmatpush1.bf16.msra.mxu0 %v13737_v49  ;;  %9222 = vmatprep.subr.bf16.mxu1 %v13742_v51  ;;  %v13815_v49 = vld [vmem:[%s14845_s23 + $0x2250] ss:$8 sps:$4 sm:$0xff]   ;;  %v13820_v51 = vld [vmem:[%s14845_s23 + $0xe64] ss:$8 sps:$4 sm:$0xff]  }
 0x401   : > { %10042 = vmatprep.subr.bf16.mxu0 %v13745_v52  ;;  %v13823_v52 = vld [vmem:[%s14845_s23 + $0x2264] ss:$8 sps:$4 sm:$0xff]  }
 0x403   : > { %9223 = vmatpush1.bf16.msra.mxu1 %v13740_v61  ;;  %v13818_v61 = vld [vmem:[%s14845_s23 + $0xe60] ss:$8 sps:$4 sm:$0xff]  }
 0x404   : > { %10043 = vmatpush1.bf16.msra.mxu0 %v13743_v62  ;;  %9224 = vmatprep.subr.bf16.mxu1 %v13748_v63  ;;  %v13821_v62 = vld [vmem:[%s14845_s23 + $0x2260] ss:$8 sps:$4 sm:$0xff]   ;;  %v13826_v63 = vld [vmem:[%s14845_s23 + $0xe74] ss:$8 sps:$4 sm:$0xff]  }
 0x405   : > { %10044 = vmatprep.subr.bf16.mxu0 %v13751_v0  ;;  %v13829_v0 = vld [vmem:[%s14845_s23 + $0x2274] ss:$8 sps:$4 sm:$0xff]  }
 0x407   : > { %9225 = vmatpush1.bf16.msra.mxu1 %v13746_v45  ;;  %v13824_v45 = vld [vmem:[%s14845_s23 + $0xe70] ss:$8 sps:$4 sm:$0xff]  }
 0x408   : > { %10045 = vmatpush1.bf16.msra.mxu0 %v13749_v1  ;;  %9226 = vmatprep.subr.bf16.mxu1 %v13754_v54  ;;  %v13827_v1 = vld [vmem:[%s14845_s23 + $0x2270] ss:$8 sps:$4 sm:$0xff]   ;;  %v13832_v54 = vld [vmem:[%s14845_s23 + $0xe84] ss:$8 sps:$4 sm:$0xff]  }
 0x409   : > { %10046 = vmatprep.subr.bf16.mxu0 %v13757_v56  ;;  %v13835_v56 = vld [vmem:[%s14845_s23 + $0x2284] ss:$8 sps:$4 sm:$0xff]  }
 0x40b   : > { %9227 = vmatpush1.bf16.msra.mxu1 %v13752_v33  ;;  %v13830_v33 = vld [vmem:[%s14845_s23 + $0xe80] ss:$8 sps:$4 sm:$0xff]  }
 0x40c   : > { %10047 = vmatpush1.bf16.msra.mxu0 %v13755_v3  ;;  %9228 = vmatprep.subr.bf16.mxu1 %v13760_v58  ;;  %v13833_v3 = vld [vmem:[%s14845_s23 + $0x2280] ss:$8 sps:$4 sm:$0xff]   ;;  %v13838_v58 = vld [vmem:[%s14845_s23 + $0xe94] ss:$8 sps:$4 sm:$0xff]  }
 0x40d   : > { %10048 = vmatprep.subr.bf16.mxu0 %v13763_v4  ;;  %v13841_v4 = vld [vmem:[%s14845_s23 + $0x2294] ss:$8 sps:$4 sm:$0xff]  }
 0x40f   : > { %9229 = vmatpush1.bf16.msra.mxu1 %v13758_v5  ;;  %v13836_v5 = vld [vmem:[%s14845_s23 + $0xe90] ss:$8 sps:$4 sm:$0xff]  }
 0x410   : > { %10049 = vmatpush1.bf16.msra.mxu0 %v13761_v6  ;;  %9230 = vmatprep.subr.bf16.mxu1 %v13766_v7  ;;  %v13839_v6 = vld [vmem:[%s14845_s23 + $0x2290] ss:$8 sps:$4 sm:$0xff]   ;;  %v13844_v7 = vld [vmem:[%s14845_s23 + $0xea4] ss:$8 sps:$4 sm:$0xff]  }
 0x411   : > { %10050 = vmatprep.subr.bf16.mxu0 %v13769_v8  ;;  %v13847_v8 = vld [vmem:[%s14845_s23 + $0x22a4] ss:$8 sps:$4 sm:$0xff]  }
 0x413   : > { %9231 = vmatpush1.bf16.msra.mxu1 %v13764_v40  ;;  %v13842_v40 = vld [vmem:[%s14845_s23 + $0xea0] ss:$8 sps:$4 sm:$0xff]  }
 0x414   : > { %10051 = vmatpush1.bf16.msra.mxu0 %v13767_v10  ;;  %9232 = vmatprep.subr.bf16.mxu1 %v13772_v11  ;;  %v13845_v10 = vld [vmem:[%s14845_s23 + $0x22a0] ss:$8 sps:$4 sm:$0xff]   ;;  %v13850_v11 = vld [vmem:[%s14845_s23 + $0xeb4] ss:$8 sps:$4 sm:$0xff]  }
 0x415   : > { %10052 = vmatprep.subr.bf16.mxu0 %v13775_v12  ;;  %v13853_v12 = vld [vmem:[%s14845_s23 + $0x22b4] ss:$8 sps:$4 sm:$0xff]  }
 0x417   : > { %9233 = vmatpush1.bf16.msra.mxu1 %v13770_v42  ;;  %v13856_v42 = vld [vmem:[%s14845_s23 + $0xec4] ss:$8 sps:$4 sm:$0xff]  }
 0x418   : > { %10053 = vmatpush1.bf16.msra.mxu0 %v13773_v23  ;;  %9234 = vmatprep.subr.bf16.mxu1 %v13778_v14  ;;  %v13859_v23 = vld [vmem:[%s14845_s23 + $0x22c4] ss:$8 sps:$4 sm:$0xff]   ;;  %v13854_v14 = vld [vmem:[%s14845_s23 + $0xec0] ss:$8 sps:$4 sm:$0xff]  }
 0x419   : > { %10054 = vmatprep.subr.bf16.mxu0 %v13781_v2  ;;  %v13857_v2 = vld [vmem:[%s14845_s23 + $0x22c0] ss:$8 sps:$4 sm:$0xff]  }
 0x41b   : > { %9235 = vmatpush1.bf16.msra.mxu1 %v13776_v34  ;;  %v13862_v34 = vld [vmem:[%s14845_s23 + $0xed4] ss:$8 sps:$4 sm:$0xff]  }
 0x41c   : > { %10055 = vmatpush1.bf16.msra.mxu0 %v13779_v55  ;;  %9245 = vmatprep.subr.bf16.mxu1 %v13784_v9  ;;  %v13865_v55 = vld [vmem:[%s14845_s23 + $0x22d4] ss:$8 sps:$4 sm:$0xff]   ;;  %v13860_v9 = vld [vmem:[%s14845_s23 + $0xed0] ss:$8 sps:$4 sm:$0xff]  }
 0x41d   : > { %10065 = vmatprep.subr.bf16.mxu0 %v13787_v13  ;;  %v13863_v13 = vld [vmem:[%s14845_s23 + $0x22d0] ss:$8 sps:$4 sm:$0xff]  }
 0x41e   : > { %9237 = vmatmul.mubr.bf16.vlgmr.msra.gmra.mrb[0].mxu1 %v1893_v59  ;;  %v13866_v59 = vld [vmem:[%s14845_s23 + $0xee0] ss:$8 sps:$4 sm:$0xff]  }
 0x41f   : > { %10057 = vmatmul.mubr.bf16.vlgmr.msra.gmra.mrb[0].mxu0 %v2138_v57  ;;  %9246 = vmatpush1.bf16.msra.mxu1 %v13782_v27  ;;  %v13869_v57 = vld [vmem:[%s14845_s23 + $0x22e0] ss:$8 sps:$4 sm:$0xff]   ;;  %v13874_v27 = vld [vmem:[%s14845_s23 + $0xef4] ss:$8 sps:$4 sm:$0xff]  }
 0x420   : > { %10066 = vmatpush1.bf16.msra.mxu0 %v13785_v28  ;;  %9247 = vmatprep.subr.bf16.mxu1 %v13790_v29  ;;  %v13877_v28 = vld [vmem:[%s14845_s23 + $0x22f4] ss:$8 sps:$4 sm:$0xff]   ;;  %v13872_v29 = vld [vmem:[%s14845_s23 + $0xef0] ss:$8 sps:$4 sm:$0xff]  }
 0x421   : > { %10067 = vmatprep.subr.bf16.mxu0 %v13793_v30  ;;  %9277 = vmatprep.mubr.bf16.mxu1 %v16045_v16  ;;  %v13875_v30 = vld [vmem:[%s14845_s23 + $0x22f0] ss:$8 sps:$4 sm:$0xff]  }
 0x422   : > { %10097 = vmatprep.mubr.bf16.mxu0 %v16048_v19 }
 0x423   : > { %9248 = vmatpush1.bf16.msra.mxu1 %v13788_v20  ;;  %v13881_v20 = vld [vmem:[%s14845_s23 + $0xf04] ss:$8 sps:$4 sm:$0xff]  }
 0x424   : > { %10068 = vmatpush1.bf16.msra.mxu0 %v13791_v32  ;;  %9249 = vmatprep.subr.bf16.mxu1 %v13796_v35  ;;  %v13885_v32 = vld [vmem:[%s14845_s23 + $0x2304] ss:$8 sps:$4 sm:$0xff]   ;;  %v16114_v35 = vrot.slane %v16023_v41, %v14914_v50  ;;  %v1896_v41 = vcombine.high %v16045_v16, %v16045_v16 }
 0x425   : > { %10069 = vmatprep.subr.bf16.mxu0 %v13799_v36  ;;  %v16118_v36 = vrot.slane %v16026_v24, %v14914_v50  ;;  %v13886_v24 = vld [vmem:[%s14845_s23 + $0xf10] ss:$8 sps:$4 sm:$0xff]   ;;  %v13894_v16 = vld [vmem:[%s14845_s23 + $0xf24] ss:$8 sps:$4 sm:$0xff]  }
 0x427   : > { %9250 = vmatpush1.bf16.msra.mxu1 %v13794_v18  ;;  %v13879_v18 = vld [vmem:[%s14845_s23 + $0xf00] ss:$8 sps:$4 sm:$0xff]  }
 0x428   : > { %10070 = vmatpush1.bf16.msra.mxu0 %v13797_v38  ;;  %9251 = vmatprep.subr.bf16.mxu1 %v13802_v60  ;;  %v13883_v38 = vld [vmem:[%s14845_s23 + $0x2300] ss:$8 sps:$4 sm:$0xff]   ;;  %v13888_v60 = vld [vmem:[%s14845_s23 + $0xf14] ss:$8 sps:$4 sm:$0xff]  }
 0x429   : > { %10071 = vmatprep.subr.bf16.mxu0 %v13805_v43  ;;  %v13891_v43 = vld [vmem:[%s14845_s23 + $0x2314] ss:$8 sps:$4 sm:$0xff]  }
 0x42b   : > { %9252 = vmatpush1.bf16.msra.mxu1 %v13800_v31  ;;  %v2141_v31 = vcombine.high %v16048_v19, %v16048_v19  ;;  %v13892_v19 = vld [vmem:[%s14845_s23 + $0xf20] ss:$8 sps:$4 sm:$0xff]  }
 0x42c   : > { %10072 = vmatpush1.bf16.msra.mxu0 %v13803_v25  ;;  %9253 = vmatprep.subr.bf16.mxu1 %v13808_v15  ;;  %v13889_v25 = vld [vmem:[%s14845_s23 + $0x2310] ss:$8 sps:$4 sm:$0xff]   ;;  %v13897_v15 = vld [vmem:[%s14845_s23 + $0x2324] ss:$8 sps:$4 sm:$0xff]  }
 0x42d   : > { %10073 = vmatprep.subr.bf16.mxu0 %v13811_v46  ;;  %v13895_v46 = vld [vmem:[%s14845_s23 + $0x2320] ss:$8 sps:$4 sm:$0xff]  }
 0x42f   : > { %9254 = vmatpush1.bf16.msra.mxu1 %v13806_v26  ;;  %v13900_v26 = vld [vmem:[%s14845_s23 + $0xf34] ss:$8 sps:$4 sm:$0xff]  }
 0x430   : > { %10074 = vmatpush1.bf16.msra.mxu0 %v13809_v47  ;;  %9255 = vmatprep.subr.bf16.mxu1 %v13814_v37  ;;  %v13903_v47 = vld [vmem:[%s14845_s23 + $0x2334] ss:$8 sps:$4 sm:$0xff]   ;;  %v13898_v37 = vld [vmem:[%s14845_s23 + $0xf30] ss:$8 sps:$4 sm:$0xff]  }
 0x431   : > { %10075 = vmatprep.subr.bf16.mxu0 %v13817_v48  ;;  %v13901_v48 = vld [vmem:[%s14845_s23 + $0x2330] ss:$8 sps:$4 sm:$0xff]  }
 0x433   : > { %9256 = vmatpush1.bf16.msra.mxu1 %v13812_v17  ;;  %v13906_v17 = vld [vmem:[%s14845_s23 + $0xf44] ss:$8 sps:$4 sm:$0xff]  }
 0x434   : > { %10076 = vmatpush1.bf16.msra.mxu0 %v13815_v49  ;;  %9257 = vmatprep.subr.bf16.mxu1 %v13820_v51  ;;  %v13909_v49 = vld [vmem:[%s14845_s23 + $0x2344] ss:$8 sps:$4 sm:$0xff]   ;;  %v13904_v51 = vld [vmem:[%s14845_s23 + $0xf40] ss:$8 sps:$4 sm:$0xff]  }
 0x435   : > { %10077 = vmatprep.subr.bf16.mxu0 %v13823_v52  ;;  %v13907_v52 = vld [vmem:[%s14845_s23 + $0x2340] ss:$8 sps:$4 sm:$0xff]  }
 0x437   : > { %9258 = vmatpush1.bf16.msra.mxu1 %v13818_v61  ;;  %v13912_v61 = vld [vmem:[%s14845_s23 + $0xf54] ss:$8 sps:$4 sm:$0xff]  }
 0x438   : > { %10078 = vmatpush1.bf16.msra.mxu0 %v13821_v62  ;;  %9259 = vmatprep.subr.bf16.mxu1 %v13826_v63  ;;  %v13915_v62 = vld [vmem:[%s14845_s23 + $0x2354] ss:$8 sps:$4 sm:$0xff]   ;;  %v13910_v63 = vld [vmem:[%s14845_s23 + $0xf50] ss:$8 sps:$4 sm:$0xff]  }
 0x439   : > { %10079 = vmatprep.subr.bf16.mxu0 %v13829_v0  ;;  %v13913_v0 = vld [vmem:[%s14845_s23 + $0x2350] ss:$8 sps:$4 sm:$0xff]  }
 0x43b   : > { %9260 = vmatpush1.bf16.msra.mxu1 %v13824_v45  ;;  %v13918_v45 = vld [vmem:[%s14845_s23 + $0xf64] ss:$8 sps:$4 sm:$0xff]  }
 0x43c   : > { %10080 = vmatpush1.bf16.msra.mxu0 %v13827_v1  ;;  %9261 = vmatprep.subr.bf16.mxu1 %v13832_v54  ;;  %v13921_v1 = vld [vmem:[%s14845_s23 + $0x2364] ss:$8 sps:$4 sm:$0xff]   ;;  %v13916_v54 = vld [vmem:[%s14845_s23 + $0xf60] ss:$8 sps:$4 sm:$0xff]  }
 0x43d   : > { %10081 = vmatprep.subr.bf16.mxu0 %v13835_v56  ;;  %v13919_v56 = vld [vmem:[%s14845_s23 + $0x2360] ss:$8 sps:$4 sm:$0xff]  }
 0x43f   : > { %9262 = vmatpush1.bf16.msra.mxu1 %v13830_v33  ;;  %v13924_v33 = vld [vmem:[%s14845_s23 + $0xf74] ss:$8 sps:$4 sm:$0xff]  }
 0x440   : > { %10082 = vmatpush1.bf16.msra.mxu0 %v13833_v3  ;;  %9263 = vmatprep.subr.bf16.mxu1 %v13838_v58  ;;  %v13927_v3 = vld [vmem:[%s14845_s23 + $0x2374] ss:$8 sps:$4 sm:$0xff]   ;;  %v13922_v58 = vld [vmem:[%s14845_s23 + $0xf70] ss:$8 sps:$4 sm:$0xff]  }
 0x441   : > { %10083 = vmatprep.subr.bf16.mxu0 %v13841_v4  ;;  %v13925_v4 = vld [vmem:[%s14845_s23 + $0x2370] ss:$8 sps:$4 sm:$0xff]  }
 0x443   : > { %9264 = vmatpush1.bf16.msra.mxu1 %v13836_v5  ;;  %v13930_v5 = vld [vmem:[%s14845_s23 + $0xf84] ss:$8 sps:$4 sm:$0xff]  }
 0x444   : > { %10084 = vmatpush1.bf16.msra.mxu0 %v13839_v6  ;;  %9265 = vmatprep.subr.bf16.mxu1 %v13844_v7  ;;  %v13933_v6 = vld [vmem:[%s14845_s23 + $0x2384] ss:$8 sps:$4 sm:$0xff]   ;;  %v13928_v7 = vld [vmem:[%s14845_s23 + $0xf80] ss:$8 sps:$4 sm:$0xff]  }
 0x445   : > { %10085 = vmatprep.subr.bf16.mxu0 %v13847_v8  ;;  %v13931_v8 = vld [vmem:[%s14845_s23 + $0x2380] ss:$8 sps:$4 sm:$0xff]  }
 0x447   : > { %9266 = vmatpush1.bf16.msra.mxu1 %v13842_v40  ;;  %v13936_v40 = vld [vmem:[%s14845_s23 + $0xf94] ss:$8 sps:$4 sm:$0xff]  }
 0x448   : > { %10086 = vmatpush1.bf16.msra.mxu0 %v13845_v10  ;;  %9267 = vmatprep.subr.bf16.mxu1 %v13850_v11  ;;  %v13939_v10 = vld [vmem:[%s14845_s23 + $0x2394] ss:$8 sps:$4 sm:$0xff]   ;;  %v13934_v11 = vld [vmem:[%s14845_s23 + $0xf90] ss:$8 sps:$4 sm:$0xff]  }
 0x449   : > { %10087 = vmatprep.subr.bf16.mxu0 %v13853_v12  ;;  %v13937_v12 = vld [vmem:[%s14845_s23 + $0x2390] ss:$8 sps:$4 sm:$0xff]  }
 0x44b   : > { %9268 = vmatpush1.bf16.msra.mxu1 %v13848_v21  ;;  %v13942_v21 = vld [vmem:[%s14845_s23 + $0xfa4] ss:$8 sps:$4 sm:$0xff]  }
 0x44c   : > { %10088 = vmatpush1.bf16.msra.mxu0 %v13851_v22  ;;  %9269 = vmatprep.subr.bf16.mxu1 %v13856_v42  ;;  %v13945_v22 = vld [vmem:[%s14845_s23 + $0x23a4] ss:$8 sps:$4 sm:$0xff]   ;;  %v13940_v42 = vld [vmem:[%s14845_s23 + $0xfa0] ss:$8 sps:$4 sm:$0xff]  }
 0x44d   : > { %10089 = vmatprep.subr.bf16.mxu0 %v13859_v23  ;;  %v13943_v23 = vld [vmem:[%s14845_s23 + $0x23a0] ss:$8 sps:$4 sm:$0xff]  }
 0x44f   : > { %9270 = vmatpush1.bf16.msra.mxu1 %v13854_v14  ;;  %v13948_v14 = vld [vmem:[%s14845_s23 + $0xfb4] ss:$8 sps:$4 sm:$0xff]  }
 0x450   : > { %10090 = vmatpush1.bf16.msra.mxu0 %v13857_v2  ;;  %9271 = vmatprep.subr.bf16.mxu1 %v13862_v34  ;;  %v13951_v2 = vld [vmem:[%s14845_s23 + $0x23b4] ss:$8 sps:$4 sm:$0xff]   ;;  %v13946_v34 = vld [vmem:[%s14845_s23 + $0xfb0] ss:$8 sps:$4 sm:$0xff]  }
 0x451   : > { %10091 = vmatprep.subr.bf16.mxu0 %v13865_v55  ;;  %v13949_v55 = vld [vmem:[%s14845_s23 + $0x23b0] ss:$8 sps:$4 sm:$0xff]  }
 0x453   : > { %9272 = vmatpush1.bf16.msra.mxu1 %v13860_v9  ;;  %v13954_v9 = vld [vmem:[%s14845_s23 + $0xfc4] ss:$8 sps:$4 sm:$0xff]  }
 0x454   : > { %10092 = vmatpush1.bf16.msra.mxu0 %v13863_v13  ;;  %9273 = vmatprep.subr.bf16.mxu1 %v13868_v39  ;;  %v13957_v13 = vld [vmem:[%s14845_s23 + $0x23c4] ss:$8 sps:$4 sm:$0xff]   ;;  %v13952_v39 = vld [vmem:[%s14845_s23 + $0xfc0] ss:$8 sps:$4 sm:$0xff]  }
 0x455   : > { %10093 = vmatprep.subr.bf16.mxu0 %v13871_v53  ;;  %v13955_v53 = vld [vmem:[%s14845_s23 + $0x23c0] ss:$8 sps:$4 sm:$0xff]  }
 0x457   : > { %9274 = vmatpush1.bf16.msra.mxu1 %v13866_v59  ;;  %v13960_v59 = vld [vmem:[%s14845_s23 + $0xfd4] ss:$8 sps:$4 sm:$0xff]  }
 0x458   : > { %10094 = vmatpush1.bf16.msra.mxu0 %v13869_v57  ;;  %9275 = vmatprep.subr.bf16.mxu1 %v13874_v27  ;;  %v13963_v57 = vld [vmem:[%s14845_s23 + $0x23d4] ss:$8 sps:$4 sm:$0xff]   ;;  %v13958_v27 = vld [vmem:[%s14845_s23 + $0xfd0] ss:$8 sps:$4 sm:$0xff]  }
 0x459   : > { %10095 = vmatprep.subr.bf16.mxu0 %v13877_v28  ;;  %v13961_v28 = vld [vmem:[%s14845_s23 + $0x23d0] ss:$8 sps:$4 sm:$0xff]  }
 0x45b   : > { %9276 = vmatpush1.bf16.msra.mxu1 %v13872_v29  ;;  %v13966_v29 = vld [vmem:[%s14845_s23 + $0xfe4] ss:$8 sps:$4 sm:$0xff]  }
 0x45c   : > { %10096 = vmatpush1.bf16.msra.mxu0 %v13875_v30  ;;  %9286 = vmatprep.subr.bf16.mxu1 %v13881_v20  ;;  %v13969_v30 = vld [vmem:[%s14845_s23 + $0x23e4] ss:$8 sps:$4 sm:$0xff]   ;;  %v16183_v20 = vld [vmem:[%s14911_s17 + $0x20] sm:$0xff] }
 0x45d   : > { %10106 = vmatprep.subr.bf16.mxu0 %v13885_v32  ;;  %v16186_v32 = vld [vmem:[%s14911_s17 + $0x48] sm:$0xff] }
 0x45e   : > { %9278 = vmatmul.mubr.bf16.vlgmr.msra.gmra.mrb[0].mxu1 %v16114_v35 }
 0x45f   : > { %10098 = vmatmul.mubr.bf16.vlgmr.msra.gmra.mrb[0].mxu0 %v16118_v36  ;;  %9287 = vmatpush1.bf16.msra.mxu1 %v13879_v18  ;;  %v13964_v18 = vld [vmem:[%s14845_s23 + $0xfe0] ss:$8 sps:$4 sm:$0xff]  }
 0x460   : > { %10107 = vmatpush1.bf16.msra.mxu0 %v13883_v38  ;;  %9288 = vmatprep.subr.bf16.mxu1 %v13888_v60  ;;  %v13967_v38 = vld [vmem:[%s14845_s23 + $0x23e0] ss:$8 sps:$4 sm:$0xff]   ;;  %v13972_v60 = vld [vmem:[%s14845_s23 + $0xff4] ss:$8 sps:$4 sm:$0xff]  }
 0x461   : > { %10108 = vmatprep.subr.bf16.mxu0 %v13891_v43  ;;  %9318 = vmatprep.mubr.bf16.mxu1 %v1896_v41  ;;  %v13975_v43 = vld [vmem:[%s14845_s23 + $0x23f4] ss:$8 sps:$4 sm:$0xff]   ;;  %v16194_v41 = vrot.slane %v16183_v20, %v14914_v50 }
 0x462   : > { %10138 = vmatprep.mubr.bf16.mxu0 %v2141_v31  ;;  %v16198_v31 = vrot.slane %v16186_v32, %v14914_v50 }
 0x463   : > { %9289 = vmatpush1.bf16.msra.mxu1 %v13886_v24  ;;  %v13970_v24 = vld [vmem:[%s14845_s23 + $0xff0] ss:$8 sps:$4 sm:$0xff]  }
 0x464   : > { %10109 = vmatpush1.bf16.msra.mxu0 %v13889_v25  ;;  %9290 = vmatprep.subr.bf16.mxu1 %v13894_v16  ;;  %v13973_v25 = vld [vmem:[%s14845_s23 + $0x23f0] ss:$8 sps:$4 sm:$0xff]   ;;  %v13978_v16 = vld [vmem:[%s14845_s23 + $0x1004] ss:$8 sps:$4 sm:$0xff]  }
 0x465   : > { %10110 = vmatprep.subr.bf16.mxu0 %v13897_v15  ;;  %v13981_v15 = vld [vmem:[%s14845_s23 + $0x2404] ss:$8 sps:$4 sm:$0xff]  }
 0x467   : > { %9291 = vmatpush1.bf16.msra.mxu1 %v13892_v19  ;;  %v1912_v19 = vcombine.high %v16194_v41, %v16194_v41 }
 0x468   : > { %10111 = vmatpush1.bf16.msra.mxu0 %v13895_v46  ;;  %9292 = vmatprep.subr.bf16.mxu1 %v13900_v26  ;;  %v2157_v46 = vcombine.high %v16198_v31, %v16198_v31  ;;  %v1894_v26 = vcombine.high %v16114_v35, %v16114_v35 }
 0x469   : > { %10112 = vmatprep.subr.bf16.mxu0 %v13903_v47  ;;  %v2139_v47 = vcombine.high %v16118_v36, %v16118_v36  ;;  %v13982_v36 = vld [vmem:[%s14845_s23 + $0x1010] ss:$8 sps:$4 sm:$0xff]  }
 0x46a   : > { %v16220_v35 = vrot.slane %v2157_v46, %v14914_v50  ;;  %v14057_v46 = vld [vmem:[%s14845_s23 + $0x24d0] ss:$8 sps:$4 sm:$0xff]  }
 0x46b   : > { %9293 = vmatpush1.bf16.msra.mxu1 %v13898_v37  ;;  %v13976_v37 = vld [vmem:[%s14845_s23 + $0x1000] ss:$8 sps:$4 sm:$0xff]  }
 0x46c   : > { %10113 = vmatpush1.bf16.msra.mxu0 %v13901_v48  ;;  %9294 = vmatprep.subr.bf16.mxu1 %v13906_v17  ;;  %v13979_v48 = vld [vmem:[%s14845_s23 + $0x2400] ss:$8 sps:$4 sm:$0xff]   ;;  %v13984_v17 = vld [vmem:[%s14845_s23 + $0x1014] ss:$8 sps:$4 sm:$0xff]  }
 0x46d   : > { %10114 = vmatprep.subr.bf16.mxu0 %v13909_v49  ;;  %v13987_v49 = vld [vmem:[%s14845_s23 + $0x2414] ss:$8 sps:$4 sm:$0xff]  }
 0x46f   : > { %9295 = vmatpush1.bf16.msra.mxu1 %v13904_v51  ;;  %v16217_v51 = vrot.slane %v1912_v19, %v14914_v50  ;;  %v14054_v19 = vld [vmem:[%s14845_s23 + $0x10d0] ss:$8 sps:$4 sm:$0xff]  }
 0x470   : > { %10115 = vmatpush1.bf16.msra.mxu0 %v13907_v52  ;;  %9296 = vmatprep.subr.bf16.mxu1 %v13912_v61  ;;  %v13985_v52 = vld [vmem:[%s14845_s23 + $0x2410] ss:$8 sps:$4 sm:$0xff]   ;;  %v13990_v61 = vld [vmem:[%s14845_s23 + $0x1024] ss:$8 sps:$4 sm:$0xff]  }
 0x471   : > { %10116 = vmatprep.subr.bf16.mxu0 %v13915_v62  ;;  %v13993_v62 = vld [vmem:[%s14845_s23 + $0x2424] ss:$8 sps:$4 sm:$0xff]  }
 0x473   : > { %9297 = vmatpush1.bf16.msra.mxu1 %v13910_v63  ;;  %v13988_v63 = vld [vmem:[%s14845_s23 + $0x1020] ss:$8 sps:$4 sm:$0xff]  }
 0x474   : > { %10117 = vmatpush1.bf16.msra.mxu0 %v13913_v0  ;;  %9298 = vmatprep.subr.bf16.mxu1 %v13918_v45  ;;  %v13991_v0 = vld [vmem:[%s14845_s23 + $0x2420] ss:$8 sps:$4 sm:$0xff]   ;;  %v13996_v45 = vld [vmem:[%s14845_s23 + $0x1034] ss:$8 sps:$4 sm:$0xff]  }
 0x475   : > { %10118 = vmatprep.subr.bf16.mxu0 %v13921_v1  ;;  %v13999_v1 = vld [vmem:[%s14845_s23 + $0x2434] ss:$8 sps:$4 sm:$0xff]  }
 0x477   : > { %9299 = vmatpush1.bf16.msra.mxu1 %v13916_v54  ;;  %v13994_v54 = vld [vmem:[%s14845_s23 + $0x1030] ss:$8 sps:$4 sm:$0xff]  }
 0x478   : > { %10119 = vmatpush1.bf16.msra.mxu0 %v13919_v56  ;;  %9300 = vmatprep.subr.bf16.mxu1 %v13924_v33  ;;  %v13997_v56 = vld [vmem:[%s14845_s23 + $0x2430] ss:$8 sps:$4 sm:$0xff]   ;;  %v14002_v33 = vld [vmem:[%s14845_s23 + $0x1044] ss:$8 sps:$4 sm:$0xff]  }
 0x479   : > { %10120 = vmatprep.subr.bf16.mxu0 %v13927_v3  ;;  %v14005_v3 = vld [vmem:[%s14845_s23 + $0x2444] ss:$8 sps:$4 sm:$0xff]  }
 0x47b   : > { %9301 = vmatpush1.bf16.msra.mxu1 %v13922_v58  ;;  %v14000_v58 = vld [vmem:[%s14845_s23 + $0x1040] ss:$8 sps:$4 sm:$0xff]  }
 0x47c   : > { %10121 = vmatpush1.bf16.msra.mxu0 %v13925_v4  ;;  %9302 = vmatprep.subr.bf16.mxu1 %v13930_v5  ;;  %v14003_v4 = vld [vmem:[%s14845_s23 + $0x2440] ss:$8 sps:$4 sm:$0xff]   ;;  %v14008_v5 = vld [vmem:[%s14845_s23 + $0x1054] ss:$8 sps:$4 sm:$0xff]  }
 0x47d   : > { %10122 = vmatprep.subr.bf16.mxu0 %v13933_v6  ;;  %v14011_v6 = vld [vmem:[%s14845_s23 + $0x2454] ss:$8 sps:$4 sm:$0xff]  }
 0x47f   : > { %9303 = vmatpush1.bf16.msra.mxu1 %v13928_v7  ;;  %v14006_v7 = vld [vmem:[%s14845_s23 + $0x1050] ss:$8 sps:$4 sm:$0xff]  }
 0x480   : > { %10123 = vmatpush1.bf16.msra.mxu0 %v13931_v8  ;;  %9304 = vmatprep.subr.bf16.mxu1 %v13936_v40  ;;  %v14009_v8 = vld [vmem:[%s14845_s23 + $0x2450] ss:$8 sps:$4 sm:$0xff]   ;;  %v14014_v40 = vld [vmem:[%s14845_s23 + $0x1064] ss:$8 sps:$4 sm:$0xff]  }
 0x481   : > { %10124 = vmatprep.subr.bf16.mxu0 %v13939_v10  ;;  %v14017_v10 = vld [vmem:[%s14845_s23 + $0x2464] ss:$8 sps:$4 sm:$0xff]  }
 0x483   : > { %9305 = vmatpush1.bf16.msra.mxu1 %v13934_v11  ;;  %v14012_v11 = vld [vmem:[%s14845_s23 + $0x1060] ss:$8 sps:$4 sm:$0xff]  }
 0x484   : > { %10125 = vmatpush1.bf16.msra.mxu0 %v13937_v12  ;;  %9306 = vmatprep.subr.bf16.mxu1 %v13942_v21  ;;  %v14015_v12 = vld [vmem:[%s14845_s23 + $0x2460] ss:$8 sps:$4 sm:$0xff]   ;;  %v14020_v21 = vld [vmem:[%s14845_s23 + $0x1074] ss:$8 sps:$4 sm:$0xff]  }
 0x485   : > { %10126 = vmatprep.subr.bf16.mxu0 %v13945_v22  ;;  %v14023_v22 = vld [vmem:[%s14845_s23 + $0x2474] ss:$8 sps:$4 sm:$0xff]  }
 0x487   : > { %9307 = vmatpush1.bf16.msra.mxu1 %v13940_v42  ;;  %v14018_v42 = vld [vmem:[%s14845_s23 + $0x1070] ss:$8 sps:$4 sm:$0xff]  }
 0x488   : > { %10127 = vmatpush1.bf16.msra.mxu0 %v13943_v23  ;;  %9308 = vmatprep.subr.bf16.mxu1 %v13948_v14  ;;  %v14021_v23 = vld [vmem:[%s14845_s23 + $0x2470] ss:$8 sps:$4 sm:$0xff]   ;;  %v14026_v14 = vld [vmem:[%s14845_s23 + $0x1084] ss:$8 sps:$4 sm:$0xff]  }
 0x489   : > { %10128 = vmatprep.subr.bf16.mxu0 %v13951_v2  ;;  %v14029_v2 = vld [vmem:[%s14845_s23 + $0x2484] ss:$8 sps:$4 sm:$0xff]  }
 0x48b   : > { %9309 = vmatpush1.bf16.msra.mxu1 %v13946_v34  ;;  %v14024_v34 = vld [vmem:[%s14845_s23 + $0x1080] ss:$8 sps:$4 sm:$0xff]  }
 0x48c   : > { %10129 = vmatpush1.bf16.msra.mxu0 %v13949_v55  ;;  %9310 = vmatprep.subr.bf16.mxu1 %v13954_v9  ;;  %v14027_v55 = vld [vmem:[%s14845_s23 + $0x2480] ss:$8 sps:$4 sm:$0xff]   ;;  %v14032_v9 = vld [vmem:[%s14845_s23 + $0x1094] ss:$8 sps:$4 sm:$0xff]  }
 0x48d   : > { %10130 = vmatprep.subr.bf16.mxu0 %v13957_v13  ;;  %v14035_v13 = vld [vmem:[%s14845_s23 + $0x2494] ss:$8 sps:$4 sm:$0xff]  }
 0x48f   : > { %9311 = vmatpush1.bf16.msra.mxu1 %v13952_v39  ;;  %v14030_v39 = vld [vmem:[%s14845_s23 + $0x1090] ss:$8 sps:$4 sm:$0xff]  }
 0x490   : > { %10131 = vmatpush1.bf16.msra.mxu0 %v13955_v53  ;;  %9312 = vmatprep.subr.bf16.mxu1 %v13960_v59  ;;  %v14033_v53 = vld [vmem:[%s14845_s23 + $0x2490] ss:$8 sps:$4 sm:$0xff]   ;;  %v14038_v59 = vld [vmem:[%s14845_s23 + $0x10a4] ss:$8 sps:$4 sm:$0xff]  }
 0x491   : > { %10132 = vmatprep.subr.bf16.mxu0 %v13963_v57  ;;  %v14041_v57 = vld [vmem:[%s14845_s23 + $0x24a4] ss:$8 sps:$4 sm:$0xff]  }
 0x493   : > { %9313 = vmatpush1.bf16.msra.mxu1 %v13958_v27  ;;  %v14036_v27 = vld [vmem:[%s14845_s23 + $0x10a0] ss:$8 sps:$4 sm:$0xff]  }
 0x494   : > { %10133 = vmatpush1.bf16.msra.mxu0 %v13961_v28  ;;  %9314 = vmatprep.subr.bf16.mxu1 %v13966_v29  ;;  %v14039_v28 = vld [vmem:[%s14845_s23 + $0x24a0] ss:$8 sps:$4 sm:$0xff]   ;;  %v14044_v29 = vld [vmem:[%s14845_s23 + $0x10b4] ss:$8 sps:$4 sm:$0xff]  }
 0x495   : > { %10134 = vmatprep.subr.bf16.mxu0 %v13969_v30  ;;  %v14047_v30 = vld [vmem:[%s14845_s23 + $0x24b4] ss:$8 sps:$4 sm:$0xff]  }
 0x497   : > { %9315 = vmatpush1.bf16.msra.mxu1 %v13964_v18  ;;  %v14042_v18 = vld [vmem:[%s14845_s23 + $0x10b0] ss:$8 sps:$4 sm:$0xff]  }
 0x498   : > { %10135 = vmatpush1.bf16.msra.mxu0 %v13967_v38  ;;  %9316 = vmatprep.subr.bf16.mxu1 %v13972_v60  ;;  %v14045_v38 = vld [vmem:[%s14845_s23 + $0x24b0] ss:$8 sps:$4 sm:$0xff]   ;;  %v14050_v60 = vld [vmem:[%s14845_s23 + $0x10c4] ss:$8 sps:$4 sm:$0xff]  }
 0x499   : > { %10136 = vmatprep.subr.bf16.mxu0 %v13975_v43  ;;  %v14053_v43 = vld [vmem:[%s14845_s23 + $0x24c4] ss:$8 sps:$4 sm:$0xff]  }
 0x49b   : > { %9317 = vmatpush1.bf16.msra.mxu1 %v13970_v24  ;;  %v14048_v24 = vld [vmem:[%s14845_s23 + $0x10c0] ss:$8 sps:$4 sm:$0xff]  }
 0x49c   : > { %10137 = vmatpush1.bf16.msra.mxu0 %v13973_v25  ;;  %9327 = vmatprep.subr.bf16.mxu1 %v13978_v16  ;;  %v14051_v25 = vld [vmem:[%s14845_s23 + $0x24c0] ss:$8 sps:$4 sm:$0xff]   ;;  %v14056_v16 = vld [vmem:[%s14845_s23 + $0x10d4] ss:$8 sps:$4 sm:$0xff]  }
 0x49d   : > { %10147 = vmatprep.subr.bf16.mxu0 %v13981_v15  ;;  %v14059_v15 = vld [vmem:[%s14845_s23 + $0x24d4] ss:$8 sps:$4 sm:$0xff]  }
 0x49e   : > { %9319 = vmatmul.mubr.bf16.vlgmr.msra.gmra.mrb[0].mxu1 %v1894_v26  ;;  %v14062_v26 = vld [vmem:[%s14845_s23 + $0x10e4] ss:$8 sps:$4 sm:$0xff]  }
 0x49f   : > { %10139 = vmatmul.mubr.bf16.vlgmr.msra.gmra.mrb[0].mxu0 %v2139_v47  ;;  %9328 = vmatpush1.bf16.msra.mxu1 %v13976_v37  ;;  %v14065_v47 = vld [vmem:[%s14845_s23 + $0x24e4] ss:$8 sps:$4 sm:$0xff]   ;;  %v14060_v37 = vld [vmem:[%s14845_s23 + $0x10e0] ss:$8 sps:$4 sm:$0xff]  }
 0x4a0   : > { %10148 = vmatpush1.bf16.msra.mxu0 %v13979_v48  ;;  %9329 = vmatprep.subr.bf16.mxu1 %v13984_v17  ;;  %v14063_v48 = vld [vmem:[%s14845_s23 + $0x24e0] ss:$8 sps:$4 sm:$0xff]   ;;  %v14068_v17 = vld [vmem:[%s14845_s23 + $0x10f4] ss:$8 sps:$4 sm:$0xff]  }
 0x4a1   : > { %10149 = vmatprep.subr.bf16.mxu0 %v13987_v49  ;;  %9359 = vmatprep.mubr.bf16.mxu1 %v16217_v51  ;;  %v14071_v49 = vld [vmem:[%s14845_s23 + $0x24f4] ss:$8 sps:$4 sm:$0xff]  }
 0x4a2   : > { %10179 = vmatprep.mubr.bf16.mxu0 %v16220_v35 }
 0x4a3   : > { %9330 = vmatpush1.bf16.msra.mxu1 %v13982_v36  ;;  %v14066_v36 = vld [vmem:[%s14845_s23 + $0x10f0] ss:$8 sps:$4 sm:$0xff]  }
 0x4a4   : > { %10150 = vmatpush1.bf16.msra.mxu0 %v13985_v52  ;;  %9331 = vmatprep.subr.bf16.mxu1 %v13990_v61  ;;  %v14069_v52 = vld [vmem:[%s14845_s23 + $0x24f0] ss:$8 sps:$4 sm:$0xff]   ;;  %v14074_v61 = vld [vmem:[%s14845_s23 + $0x1104] ss:$8 sps:$4 sm:$0xff]  }
 0x4a5   : > { %10151 = vmatprep.subr.bf16.mxu0 %v13993_v62  ;;  %v14077_v62 = vld [vmem:[%s14845_s23 + $0x2504] ss:$8 sps:$4 sm:$0xff]  }
 0x4a7   : > { %9332 = vmatpush1.bf16.msra.mxu1 %v13988_v63  ;;  %v16286_v63 = vrot.slane %v16194_v41, %v14914_v50  ;;  %v1944_v41 = vcombine.high %v16217_v51, %v16217_v51  ;;  %v14086_v51 = vld [vmem:[%s14845_s23 + $0x1124] ss:$8 sps:$4 sm:$0xff]  }
 0x4a8   : > { %10152 = vmatpush1.bf16.msra.mxu0 %v13991_v0  ;;  %9333 = vmatprep.subr.bf16.mxu1 %v13996_v45  ;;  %v16290_v0 = vrot.slane %v16198_v31, %v14914_v50  ;;  %v14072_v45 = vld [vmem:[%s14845_s23 + $0x1100] ss:$8 sps:$4 sm:$0xff]   ;;  %v14078_v31 = vld [vmem:[%s14845_s23 + $0x1110] ss:$8 sps:$4 sm:$0xff]  }
 0x4a9   : > { %10153 = vmatprep.subr.bf16.mxu0 %v13999_v1  ;;  %v14075_v1 = vld [vmem:[%s14845_s23 + $0x2500] ss:$8 sps:$4 sm:$0xff]  }
 0x4ab   : > { %9334 = vmatpush1.bf16.msra.mxu1 %v13994_v54  ;;  %v14080_v54 = vld [vmem:[%s14845_s23 + $0x1114] ss:$8 sps:$4 sm:$0xff]  }
 0x4ac   : > { %10154 = vmatpush1.bf16.msra.mxu0 %v13997_v56  ;;  %9335 = vmatprep.subr.bf16.mxu1 %v14002_v33  ;;  %v14083_v56 = vld [vmem:[%s14845_s23 + $0x2514] ss:$8 sps:$4 sm:$0xff]   ;;  %v2189_v33 = vcombine.high %v16220_v35, %v16220_v35  ;;  %v14084_v35 = vld [vmem:[%s14845_s23 + $0x1120] ss:$8 sps:$4 sm:$0xff]  }
 0x4ad   : > { %10155 = vmatprep.subr.bf16.mxu0 %v14005_v3  ;;  %v14081_v3 = vld [vmem:[%s14845_s23 + $0x2510] ss:$8 sps:$4 sm:$0xff]  }
 0x4af   : > { %9336 = vmatpush1.bf16.msra.mxu1 %v14000_v58  ;;  %v14089_v58 = vld [vmem:[%s14845_s23 + $0x2524] ss:$8 sps:$4 sm:$0xff]  }
 0x4b0   : > { %10156 = vmatpush1.bf16.msra.mxu0 %v14003_v4  ;;  %9337 = vmatprep.subr.bf16.mxu1 %v14008_v5  ;;  %v14087_v4 = vld [vmem:[%s14845_s23 + $0x2520] ss:$8 sps:$4 sm:$0xff]   ;;  %v14092_v5 = vld [vmem:[%s14845_s23 + $0x1134] ss:$8 sps:$4 sm:$0xff]  }
 0x4b1   : > { %10157 = vmatprep.subr.bf16.mxu0 %v14011_v6  ;;  %v14095_v6 = vld [vmem:[%s14845_s23 + $0x2534] ss:$8 sps:$4 sm:$0xff]  }
 0x4b3   : > { %9338 = vmatpush1.bf16.msra.mxu1 %v14006_v7  ;;  %v14090_v7 = vld [vmem:[%s14845_s23 + $0x1130] ss:$8 sps:$4 sm:$0xff]  }
 0x4b4   : > { %10158 = vmatpush1.bf16.msra.mxu0 %v14009_v8  ;;  %9339 = vmatprep.subr.bf16.mxu1 %v14014_v40  ;;  %v14093_v8 = vld [vmem:[%s14845_s23 + $0x2530] ss:$8 sps:$4 sm:$0xff]   ;;  %v14098_v40 = vld [vmem:[%s14845_s23 + $0x1144] ss:$8 sps:$4 sm:$0xff]  }
 0x4b5   : > { %10159 = vmatprep.subr.bf16.mxu0 %v14017_v10  ;;  %v14101_v10 = vld [vmem:[%s14845_s23 + $0x2544] ss:$8 sps:$4 sm:$0xff]  }
 0x4b7   : > { %9340 = vmatpush1.bf16.msra.mxu1 %v14012_v11  ;;  %v14096_v11 = vld [vmem:[%s14845_s23 + $0x1140] ss:$8 sps:$4 sm:$0xff]  }
 0x4b8   : > { %10160 = vmatpush1.bf16.msra.mxu0 %v14015_v12  ;;  %9341 = vmatprep.subr.bf16.mxu1 %v14020_v21  ;;  %v14099_v12 = vld [vmem:[%s14845_s23 + $0x2540] ss:$8 sps:$4 sm:$0xff]   ;;  %v14104_v21 = vld [vmem:[%s14845_s23 + $0x1154] ss:$8 sps:$4 sm:$0xff]  }
 0x4b9   : > { %10161 = vmatprep.subr.bf16.mxu0 %v14023_v22  ;;  %v14107_v22 = vld [vmem:[%s14845_s23 + $0x2554] ss:$8 sps:$4 sm:$0xff]  }
 0x4bb   : > { %9342 = vmatpush1.bf16.msra.mxu1 %v14018_v42  ;;  %v14102_v42 = vld [vmem:[%s14845_s23 + $0x1150] ss:$8 sps:$4 sm:$0xff]  }
 0x4bc   : > { %10162 = vmatpush1.bf16.msra.mxu0 %v14021_v23  ;;  %9343 = vmatprep.subr.bf16.mxu1 %v14026_v14  ;;  %v14105_v23 = vld [vmem:[%s14845_s23 + $0x2550] ss:$8 sps:$4 sm:$0xff]   ;;  %v14110_v14 = vld [vmem:[%s14845_s23 + $0x1164] ss:$8 sps:$4 sm:$0xff]  }
 0x4bd   : > { %10163 = vmatprep.subr.bf16.mxu0 %v14029_v2  ;;  %v14113_v2 = vld [vmem:[%s14845_s23 + $0x2564] ss:$8 sps:$4 sm:$0xff]  }
 0x4bf   : > { %9344 = vmatpush1.bf16.msra.mxu1 %v14024_v34  ;;  %v14108_v34 = vld [vmem:[%s14845_s23 + $0x1160] ss:$8 sps:$4 sm:$0xff]  }
 0x4c0   : > { %10164 = vmatpush1.bf16.msra.mxu0 %v14027_v55  ;;  %9345 = vmatprep.subr.bf16.mxu1 %v14032_v9  ;;  %v14111_v55 = vld [vmem:[%s14845_s23 + $0x2560] ss:$8 sps:$4 sm:$0xff]   ;;  %v14116_v9 = vld [vmem:[%s14845_s23 + $0x1174] ss:$8 sps:$4 sm:$0xff]  }
 0x4c1   : > { %10165 = vmatprep.subr.bf16.mxu0 %v14035_v13  ;;  %v14119_v13 = vld [vmem:[%s14845_s23 + $0x2574] ss:$8 sps:$4 sm:$0xff]  }
 0x4c3   : > { %9346 = vmatpush1.bf16.msra.mxu1 %v14030_v39  ;;  %v14114_v39 = vld [vmem:[%s14845_s23 + $0x1170] ss:$8 sps:$4 sm:$0xff]  }
 0x4c4   : > { %10166 = vmatpush1.bf16.msra.mxu0 %v14033_v53  ;;  %9347 = vmatprep.subr.bf16.mxu1 %v14038_v59  ;;  %v14117_v53 = vld [vmem:[%s14845_s23 + $0x2570] ss:$8 sps:$4 sm:$0xff]   ;;  %v14122_v59 = vld [vmem:[%s14845_s23 + $0x1184] ss:$8 sps:$4 sm:$0xff]  }
 0x4c5   : > { %10167 = vmatprep.subr.bf16.mxu0 %v14041_v57  ;;  %v14125_v57 = vld [vmem:[%s14845_s23 + $0x2584] ss:$8 sps:$4 sm:$0xff]  }
 0x4c7   : > { %9348 = vmatpush1.bf16.msra.mxu1 %v14036_v27  ;;  %v14120_v27 = vld [vmem:[%s14845_s23 + $0x1180] ss:$8 sps:$4 sm:$0xff]  }
 0x4c8   : > { %10168 = vmatpush1.bf16.msra.mxu0 %v14039_v28  ;;  %9349 = vmatprep.subr.bf16.mxu1 %v14044_v29  ;;  %v14123_v28 = vld [vmem:[%s14845_s23 + $0x2580] ss:$8 sps:$4 sm:$0xff]   ;;  %v14128_v29 = vld [vmem:[%s14845_s23 + $0x1194] ss:$8 sps:$4 sm:$0xff]  }
 0x4c9   : > { %10169 = vmatprep.subr.bf16.mxu0 %v14047_v30  ;;  %v14131_v30 = vld [vmem:[%s14845_s23 + $0x2594] ss:$8 sps:$4 sm:$0xff]  }
 0x4cb   : > { %9350 = vmatpush1.bf16.msra.mxu1 %v14042_v18  ;;  %v14126_v18 = vld [vmem:[%s14845_s23 + $0x1190] ss:$8 sps:$4 sm:$0xff]  }
 0x4cc   : > { %10170 = vmatpush1.bf16.msra.mxu0 %v14045_v38  ;;  %9351 = vmatprep.subr.bf16.mxu1 %v14050_v60  ;;  %v14129_v38 = vld [vmem:[%s14845_s23 + $0x2590] ss:$8 sps:$4 sm:$0xff]   ;;  %v14134_v60 = vld [vmem:[%s14845_s23 + $0x11a4] ss:$8 sps:$4 sm:$0xff]  }
 0x4cd   : > { %10171 = vmatprep.subr.bf16.mxu0 %v14053_v43  ;;  %v14137_v43 = vld [vmem:[%s14845_s23 + $0x25a4] ss:$8 sps:$4 sm:$0xff]  }
 0x4cf   : > { %9352 = vmatpush1.bf16.msra.mxu1 %v14048_v24  ;;  %v14132_v24 = vld [vmem:[%s14845_s23 + $0x11a0] ss:$8 sps:$4 sm:$0xff]  }
 0x4d0   : > { %10172 = vmatpush1.bf16.msra.mxu0 %v14051_v25  ;;  %9353 = vmatprep.subr.bf16.mxu1 %v14056_v16  ;;  %v14135_v25 = vld [vmem:[%s14845_s23 + $0x25a0] ss:$8 sps:$4 sm:$0xff]   ;;  %v14140_v16 = vld [vmem:[%s14845_s23 + $0x11b4] ss:$8 sps:$4 sm:$0xff]  }
 0x4d1   : > { %10173 = vmatprep.subr.bf16.mxu0 %v14059_v15  ;;  %v14143_v15 = vld [vmem:[%s14845_s23 + $0x25b4] ss:$8 sps:$4 sm:$0xff]  }
 0x4d3   : > { %9354 = vmatpush1.bf16.msra.mxu1 %v14054_v19  ;;  %v14138_v19 = vld [vmem:[%s14845_s23 + $0x11b0] ss:$8 sps:$4 sm:$0xff]  }
 0x4d4   : > { %10174 = vmatpush1.bf16.msra.mxu0 %v14057_v46  ;;  %9355 = vmatprep.subr.bf16.mxu1 %v14062_v26  ;;  %v14141_v46 = vld [vmem:[%s14845_s23 + $0x25b0] ss:$8 sps:$4 sm:$0xff]   ;;  %v14146_v26 = vld [vmem:[%s14845_s23 + $0x11c4] ss:$8 sps:$4 sm:$0xff]  }
 0x4d5   : > { %10175 = vmatprep.subr.bf16.mxu0 %v14065_v47  ;;  %v14149_v47 = vld [vmem:[%s14845_s23 + $0x25c4] ss:$8 sps:$4 sm:$0xff]  }
 0x4d7   : > { %9356 = vmatpush1.bf16.msra.mxu1 %v14060_v37  ;;  %v14144_v37 = vld [vmem:[%s14845_s23 + $0x11c0] ss:$8 sps:$4 sm:$0xff]  }
 0x4d8   : > { %10176 = vmatpush1.bf16.msra.mxu0 %v14063_v48  ;;  %9357 = vmatprep.subr.bf16.mxu1 %v14068_v17  ;;  %v14147_v48 = vld [vmem:[%s14845_s23 + $0x25c0] ss:$8 sps:$4 sm:$0xff]   ;;  %v14152_v17 = vld [vmem:[%s14845_s23 + $0x11d4] ss:$8 sps:$4 sm:$0xff]  }
 0x4d9   : > { %10177 = vmatprep.subr.bf16.mxu0 %v14071_v49  ;;  %v14155_v49 = vld [vmem:[%s14845_s23 + $0x25d4] ss:$8 sps:$4 sm:$0xff]  }
 0x4db   : > { %9358 = vmatpush1.bf16.msra.mxu1 %v14066_v36  ;;  %v14150_v36 = vld [vmem:[%s14845_s23 + $0x11d0] ss:$8 sps:$4 sm:$0xff]  }
 0x4dc   : > { %10178 = vmatpush1.bf16.msra.mxu0 %v14069_v52  ;;  %9368 = vmatprep.subr.bf16.mxu1 %v14074_v61  ;;  %v14153_v52 = vld [vmem:[%s14845_s23 + $0x25d0] ss:$8 sps:$4 sm:$0xff]   ;;  %v14158_v61 = vld [vmem:[%s14845_s23 + $0x11e4] ss:$8 sps:$4 sm:$0xff]  }
 0x4dd   : > { %10188 = vmatprep.subr.bf16.mxu0 %v14077_v62  ;;  %v14161_v62 = vld [vmem:[%s14845_s23 + $0x25e4] ss:$8 sps:$4 sm:$0xff]  }
 0x4de   : > { %9360 = vmatmul.mubr.bf16.vlgmr.msra.gmra.mrb[0].mxu1 %v16286_v63 }
 0x4df   : > { %10180 = vmatmul.mubr.bf16.vlgmr.msra.gmra.mrb[0].mxu0 %v16290_v0  ;;  %9369 = vmatpush1.bf16.msra.mxu1 %v14072_v45  ;;  %v1897_v45 = vcombine.high %v16183_v20, %v16183_v20  ;;  %v14162_v20 = vld [vmem:[%s14845_s23 + $0x11f0] ss:$8 sps:$4 sm:$0xff]  }
 0x4e0   : > { %10189 = vmatpush1.bf16.msra.mxu0 %v14075_v1  ;;  %9370 = vmatprep.subr.bf16.mxu1 %v14080_v54  ;;  %v2142_v1 = vcombine.high %v16186_v32, %v16186_v32  ;;  %v14156_v54 = vld [vmem:[%s14845_s23 + $0x11e0] ss:$8 sps:$4 sm:$0xff]   ;;  %v14165_v32 = vld [vmem:[%s14845_s23 + $0x25f0] ss:$8 sps:$4 sm:$0xff]  }
 0x4e1   : > { %10190 = vmatprep.subr.bf16.mxu0 %v14083_v56  ;;  %9400 = vmatprep.mubr.bf16.mxu1 %v1944_v41  ;;  %v14159_v56 = vld [vmem:[%s14845_s23 + $0x25e0] ss:$8 sps:$4 sm:$0xff]   ;;  %v14164_v41 = vld [vmem:[%s14845_s23 + $0x11f4] ss:$8 sps:$4 sm:$0xff]  }
 0x4e2   : > { %10220 = vmatprep.mubr.bf16.mxu0 %v2189_v33  ;;  %v14167_v33 = vld [vmem:[%s14845_s23 + $0x25f4] ss:$8 sps:$4 sm:$0xff]  }
 0x4e3   : > { %9371 = vmatpush1.bf16.msra.mxu1 %v14078_v31  ;;  %v16363_v31 = vrot.slane %v1897_v45, %v14914_v50  ;;  %v14234_v45 = vld [vmem:[%s14845_s23 + $0x12b0] ss:$8 sps:$4 sm:$0xff]  }
 0x4e4   : > { %10191 = vmatpush1.bf16.msra.mxu0 %v14081_v3  ;;  %9372 = vmatprep.subr.bf16.mxu1 %v14086_v51  ;;  %v16366_v3 = vrot.slane %v2142_v1, %v14914_v50  ;;  %v14170_v51 = vld [vmem:[%s14845_s23 + $0x1204] ss:$8 sps:$4 sm:$0xff]   ;;  %v14237_v1 = vld [vmem:[%s14845_s23 + $0x26b0] ss:$8 sps:$4 sm:$0xff]  }
 0x4e5   : > { %10192 = vmatprep.subr.bf16.mxu0 %v14089_v58  ;;  %v14173_v58 = vld [vmem:[%s14845_s23 + $0x2604] ss:$8 sps:$4 sm:$0xff]  }
 0x4e7   : > { %9373 = vmatpush1.bf16.msra.mxu1 %v14084_v35  ;;  %v1913_v35 = vcombine.high %v16363_v31, %v16363_v31 }
 0x4e8   : > { %10193 = vmatpush1.bf16.msra.mxu0 %v14087_v4  ;;  %9374 = vmatprep.subr.bf16.mxu1 %v14092_v5  ;;  %v2158_v4 = vcombine.high %v16366_v3, %v16366_v3  ;;  %v1942_v5 = vcombine.high %v16286_v63, %v16286_v63 }
 0x4e9   : > { %10194 = vmatprep.subr.bf16.mxu0 %v14095_v6  ;;  %v2187_v6 = vcombine.high %v16290_v0, %v16290_v0  ;;  %v14174_v0 = vld [vmem:[%s14845_s23 + $0x1210] ss:$8 sps:$4 sm:$0xff]  }
 0x4ea   : > { %v16388_v63 = vrot.slane %v2158_v4, %v14914_v50  ;;  %v14257_v4 = vld [vmem:[%s14845_s23 + $0x26e4] ss:$8 sps:$4 sm:$0xff]  }
 0x4eb   : > { %9375 = vmatpush1.bf16.msra.mxu1 %v14090_v7  ;;  %v14168_v7 = vld [vmem:[%s14845_s23 + $0x1200] ss:$8 sps:$4 sm:$0xff]  }
 0x4ec   : > { %10195 = vmatpush1.bf16.msra.mxu0 %v14093_v8  ;;  %9376 = vmatprep.subr.bf16.mxu1 %v14098_v40  ;;  %v14171_v8 = vld [vmem:[%s14845_s23 + $0x2600] ss:$8 sps:$4 sm:$0xff]   ;;  %v14176_v40 = vld [vmem:[%s14845_s23 + $0x1214] ss:$8 sps:$4 sm:$0xff]  }
 0x4ed   : > { %10196 = vmatprep.subr.bf16.mxu0 %v14101_v10  ;;  %v14179_v10 = vld [vmem:[%s14845_s23 + $0x2614] ss:$8 sps:$4 sm:$0xff]  }
 0x4ef   : > { %9377 = vmatpush1.bf16.msra.mxu1 %v14096_v11  ;;  %v16385_v11 = vrot.slane %v1913_v35, %v14914_v50  ;;  %v14254_v35 = vld [vmem:[%s14845_s23 + $0x12e4] ss:$8 sps:$4 sm:$0xff]  }
 0x4f0   : > { %10197 = vmatpush1.bf16.msra.mxu0 %v14099_v12  ;;  %9378 = vmatprep.subr.bf16.mxu1 %v14104_v21  ;;  %v14177_v12 = vld [vmem:[%s14845_s23 + $0x2610] ss:$8 sps:$4 sm:$0xff]   ;;  %v14182_v21 = vld [vmem:[%s14845_s23 + $0x1224] ss:$8 sps:$4 sm:$0xff]  }
 0x4f1   : > { %10198 = vmatprep.subr.bf16.mxu0 %v14107_v22  ;;  %v14185_v22 = vld [vmem:[%s14845_s23 + $0x2624] ss:$8 sps:$4 sm:$0xff]  }
 0x4f3   : > { %9379 = vmatpush1.bf16.msra.mxu1 %v14102_v42  ;;  %v14180_v42 = vld [vmem:[%s14845_s23 + $0x1220] ss:$8 sps:$4 sm:$0xff]  }
 0x4f4   : > { %10199 = vmatpush1.bf16.msra.mxu0 %v14105_v23  ;;  %9380 = vmatprep.subr.bf16.mxu1 %v14110_v14  ;;  %v14183_v23 = vld [vmem:[%s14845_s23 + $0x2620] ss:$8 sps:$4 sm:$0xff]   ;;  %v14188_v14 = vld [vmem:[%s14845_s23 + $0x1234] ss:$8 sps:$4 sm:$0xff]  }
 0x4f5   : > { %10200 = vmatprep.subr.bf16.mxu0 %v14113_v2  ;;  %v14191_v2 = vld [vmem:[%s14845_s23 + $0x2634] ss:$8 sps:$4 sm:$0xff]  }
 0x4f7   : > { %9381 = vmatpush1.bf16.msra.mxu1 %v14108_v34  ;;  %v14186_v34 = vld [vmem:[%s14845_s23 + $0x1230] ss:$8 sps:$4 sm:$0xff]  }
 0x4f8   : > { %10201 = vmatpush1.bf16.msra.mxu0 %v14111_v55  ;;  %9382 = vmatprep.subr.bf16.mxu1 %v14116_v9  ;;  %v14189_v55 = vld [vmem:[%s14845_s23 + $0x2630] ss:$8 sps:$4 sm:$0xff]   ;;  %v14194_v9 = vld [vmem:[%s14845_s23 + $0x1244] ss:$8 sps:$4 sm:$0xff]  }
 0x4f9   : > { %10202 = vmatprep.subr.bf16.mxu0 %v14119_v13  ;;  %v14197_v13 = vld [vmem:[%s14845_s23 + $0x2644] ss:$8 sps:$4 sm:$0xff]  }
 0x4fb   : > { %9383 = vmatpush1.bf16.msra.mxu1 %v14114_v39  ;;  %v14192_v39 = vld [vmem:[%s14845_s23 + $0x1240] ss:$8 sps:$4 sm:$0xff]  }
 0x4fc   : > { %10203 = vmatpush1.bf16.msra.mxu0 %v14117_v53  ;;  %9384 = vmatprep.subr.bf16.mxu1 %v14122_v59  ;;  %v14195_v53 = vld [vmem:[%s14845_s23 + $0x2640] ss:$8 sps:$4 sm:$0xff]   ;;  %v14200_v59 = vld [vmem:[%s14845_s23 + $0x1254] ss:$8 sps:$4 sm:$0xff]  }
 0x4fd   : > { %10204 = vmatprep.subr.bf16.mxu0 %v14125_v57  ;;  %v14203_v57 = vld [vmem:[%s14845_s23 + $0x2654] ss:$8 sps:$4 sm:$0xff]  }
 0x4ff   : > { %9385 = vmatpush1.bf16.msra.mxu1 %v14120_v27  ;;  %v14198_v27 = vld [vmem:[%s14845_s23 + $0x1250] ss:$8 sps:$4 sm:$0xff]  }
 0x500   : > { %10205 = vmatpush1.bf16.msra.mxu0 %v14123_v28  ;;  %9386 = vmatprep.subr.bf16.mxu1 %v14128_v29  ;;  %v14201_v28 = vld [vmem:[%s14845_s23 + $0x2650] ss:$8 sps:$4 sm:$0xff]   ;;  %v14206_v29 = vld [vmem:[%s14845_s23 + $0x1264] ss:$8 sps:$4 sm:$0xff]  }
 0x501   : > { %10206 = vmatprep.subr.bf16.mxu0 %v14131_v30  ;;  %v14209_v30 = vld [vmem:[%s14845_s23 + $0x2664] ss:$8 sps:$4 sm:$0xff]  }
 0x503   : > { %9387 = vmatpush1.bf16.msra.mxu1 %v14126_v18  ;;  %v14204_v18 = vld [vmem:[%s14845_s23 + $0x1260] ss:$8 sps:$4 sm:$0xff]  }
 0x504   : > { %10207 = vmatpush1.bf16.msra.mxu0 %v14129_v38  ;;  %9388 = vmatprep.subr.bf16.mxu1 %v14134_v60  ;;  %v14207_v38 = vld [vmem:[%s14845_s23 + $0x2660] ss:$8 sps:$4 sm:$0xff]   ;;  %v14212_v60 = vld [vmem:[%s14845_s23 + $0x1274] ss:$8 sps:$4 sm:$0xff]  }
 0x505   : > { %10208 = vmatprep.subr.bf16.mxu0 %v14137_v43  ;;  %v14215_v43 = vld [vmem:[%s14845_s23 + $0x2674] ss:$8 sps:$4 sm:$0xff]  }
 0x507   : > { %9389 = vmatpush1.bf16.msra.mxu1 %v14132_v24  ;;  %v14210_v24 = vld [vmem:[%s14845_s23 + $0x1270] ss:$8 sps:$4 sm:$0xff]  }
 0x508   : > { %10209 = vmatpush1.bf16.msra.mxu0 %v14135_v25  ;;  %9390 = vmatprep.subr.bf16.mxu1 %v14140_v16  ;;  %v14213_v25 = vld [vmem:[%s14845_s23 + $0x2670] ss:$8 sps:$4 sm:$0xff]   ;;  %v14218_v16 = vld [vmem:[%s14845_s23 + $0x1284] ss:$8 sps:$4 sm:$0xff]  }
 0x509   : > { %10210 = vmatprep.subr.bf16.mxu0 %v14143_v15  ;;  %v14221_v15 = vld [vmem:[%s14845_s23 + $0x2684] ss:$8 sps:$4 sm:$0xff]  }
 0x50b   : > { %9391 = vmatpush1.bf16.msra.mxu1 %v14138_v19  ;;  %v14216_v19 = vld [vmem:[%s14845_s23 + $0x1280] ss:$8 sps:$4 sm:$0xff]  }
 0x50c   : > { %10211 = vmatpush1.bf16.msra.mxu0 %v14141_v46  ;;  %9392 = vmatprep.subr.bf16.mxu1 %v14146_v26  ;;  %v14219_v46 = vld [vmem:[%s14845_s23 + $0x2680] ss:$8 sps:$4 sm:$0xff]   ;;  %v14224_v26 = vld [vmem:[%s14845_s23 + $0x1294] ss:$8 sps:$4 sm:$0xff]  }
 0x50d   : > { %10212 = vmatprep.subr.bf16.mxu0 %v14149_v47  ;;  %v14227_v47 = vld [vmem:[%s14845_s23 + $0x2694] ss:$8 sps:$4 sm:$0xff]  }
 0x50f   : > { %9393 = vmatpush1.bf16.msra.mxu1 %v14144_v37  ;;  %v14222_v37 = vld [vmem:[%s14845_s23 + $0x1290] ss:$8 sps:$4 sm:$0xff]  }
 0x510   : > { %10213 = vmatpush1.bf16.msra.mxu0 %v14147_v48  ;;  %9394 = vmatprep.subr.bf16.mxu1 %v14152_v17  ;;  %v14225_v48 = vld [vmem:[%s14845_s23 + $0x2690] ss:$8 sps:$4 sm:$0xff]   ;;  %v14230_v17 = vld [vmem:[%s14845_s23 + $0x12a4] ss:$8 sps:$4 sm:$0xff]  }
 0x511   : > { %10214 = vmatprep.subr.bf16.mxu0 %v14155_v49  ;;  %v14233_v49 = vld [vmem:[%s14845_s23 + $0x26a4] ss:$8 sps:$4 sm:$0xff]  }
 0x513   : > { %9395 = vmatpush1.bf16.msra.mxu1 %v14150_v36  ;;  %v14228_v36 = vld [vmem:[%s14845_s23 + $0x12a0] ss:$8 sps:$4 sm:$0xff]  }
 0x514   : > { %10215 = vmatpush1.bf16.msra.mxu0 %v14153_v52  ;;  %9396 = vmatprep.subr.bf16.mxu1 %v14158_v61  ;;  %v14231_v52 = vld [vmem:[%s14845_s23 + $0x26a0] ss:$8 sps:$4 sm:$0xff]   ;;  %v14236_v61 = vld [vmem:[%s14845_s23 + $0x12b4] ss:$8 sps:$4 sm:$0xff]  }
 0x515   : > { %10216 = vmatprep.subr.bf16.mxu0 %v14161_v62  ;;  %v14239_v62 = vld [vmem:[%s14845_s23 + $0x26b4] ss:$8 sps:$4 sm:$0xff]  }
 0x517   : > { %9397 = vmatpush1.bf16.msra.mxu1 %v14156_v54  ;;  %v14242_v54 = vld [vmem:[%s14845_s23 + $0x12c4] ss:$8 sps:$4 sm:$0xff]  }
 0x518   : > { %10217 = vmatpush1.bf16.msra.mxu0 %v14159_v56  ;;  %9398 = vmatprep.subr.bf16.mxu1 %v14164_v41  ;;  %v14245_v56 = vld [vmem:[%s14845_s23 + $0x26c4] ss:$8 sps:$4 sm:$0xff]   ;;  %v14240_v41 = vld [vmem:[%s14845_s23 + $0x12c0] ss:$8 sps:$4 sm:$0xff]  }
 0x519   : > { %10218 = vmatprep.subr.bf16.mxu0 %v14167_v33  ;;  %v14243_v33 = vld [vmem:[%s14845_s23 + $0x26c0] ss:$8 sps:$4 sm:$0xff]  }
 0x51b   : > { %9399 = vmatpush1.bf16.msra.mxu1 %v14162_v20  ;;  %v14248_v20 = vld [vmem:[%s14845_s23 + $0x12d4] ss:$8 sps:$4 sm:$0xff]  }
 0x51c   : > { %10219 = vmatpush1.bf16.msra.mxu0 %v14165_v32  ;;  %9409 = vmatprep.subr.bf16.mxu1 %v14170_v51  ;;  %v14251_v32 = vld [vmem:[%s14845_s23 + $0x26d4] ss:$8 sps:$4 sm:$0xff]   ;;  %v14246_v51 = vld [vmem:[%s14845_s23 + $0x12d0] ss:$8 sps:$4 sm:$0xff]  }
 0x51d   : > { %10229 = vmatprep.subr.bf16.mxu0 %v14173_v58  ;;  %v14249_v58 = vld [vmem:[%s14845_s23 + $0x26d0] ss:$8 sps:$4 sm:$0xff]  }
 0x51e   : > { %9401 = vmatmul.mubr.bf16.vlgmr.msra.gmra.mrb[0].mxu1 %v1942_v5  ;;  %v14252_v5 = vld [vmem:[%s14845_s23 + $0x12e0] ss:$8 sps:$4 sm:$0xff]  }
 0x51f   : > { %10221 = vmatmul.mubr.bf16.vlgmr.msra.gmra.mrb[0].mxu0 %v2187_v6  ;;  %9410 = vmatpush1.bf16.msra.mxu1 %v14168_v7  ;;  %v14255_v6 = vld [vmem:[%s14845_s23 + $0x26e0] ss:$8 sps:$4 sm:$0xff]   ;;  %v14260_v7 = vld [vmem:[%s14845_s23 + $0x12f4] ss:$8 sps:$4 sm:$0xff]  }
 0x520   : > { %10230 = vmatpush1.bf16.msra.mxu0 %v14171_v8  ;;  %9411 = vmatprep.subr.bf16.mxu1 %v14176_v40  ;;  %v14263_v8 = vld [vmem:[%s14845_s23 + $0x26f4] ss:$8 sps:$4 sm:$0xff]   ;;  %v14258_v40 = vld [vmem:[%s14845_s23 + $0x12f0] ss:$8 sps:$4 sm:$0xff]  }
 0x521   : > { %10231 = vmatprep.subr.bf16.mxu0 %v14179_v10  ;;  %9441 = vmatprep.mubr.bf16.mxu1 %v16385_v11  ;;  %v14261_v10 = vld [vmem:[%s14845_s23 + $0x26f0] ss:$8 sps:$4 sm:$0xff]  }
 0x522   : > { %10261 = vmatprep.mubr.bf16.mxu0 %v16388_v63 }
 0x523   : > { %9412 = vmatpush1.bf16.msra.mxu1 %v14174_v0  ;;  %v14267_v0 = vld [vmem:[%s14845_s23 + $0x1304] ss:$8 sps:$4 sm:$0xff]  }
 0x524   : > { %10232 = vmatpush1.bf16.msra.mxu0 %v14177_v12  ;;  %9413 = vmatprep.subr.bf16.mxu1 %v14182_v21  ;;  %v14271_v12 = vld [vmem:[%s14845_s23 + $0x2704] ss:$8 sps:$4 sm:$0xff]   ;;  %v16454_v21 = vrot.slane %v16363_v31, %v14914_v50  ;;  %v1945_v31 = vcombine.high %v16385_v11, %v16385_v11 }
 0x525   : > { %10233 = vmatprep.subr.bf16.mxu0 %v14185_v22  ;;  %v16458_v22 = vrot.slane %v16366_v3, %v14914_v50  ;;  %v14272_v50 = vld [vmem:[%s14845_s23 + $0x1310] ss:$8 sps:$4 sm:$0xff]   ;;  %v14280_v11 = vld [vmem:[%s14845_s23 + $0x1324] ss:$8 sps:$4 sm:$0xff]  }
 0x526   : > { %v14275_v3 = vld [vmem:[%s14845_s23 + $0x2710] ss:$8 sps:$4 sm:$0xff]  }
 0x527   : > { %9414 = vmatpush1.bf16.msra.mxu1 %v14180_v42  ;;  %v14265_v42 = vld [vmem:[%s14845_s23 + $0x1300] ss:$8 sps:$4 sm:$0xff]  }
 0x528   : > { %10234 = vmatpush1.bf16.msra.mxu0 %v14183_v23  ;;  %9415 = vmatprep.subr.bf16.mxu1 %v14188_v14  ;;  %v14269_v23 = vld [vmem:[%s14845_s23 + $0x2700] ss:$8 sps:$4 sm:$0xff]   ;;  %v14274_v14 = vld [vmem:[%s14845_s23 + $0x1314] ss:$8 sps:$4 sm:$0xff]  }
 0x529   : > { %10235 = vmatprep.subr.bf16.mxu0 %v14191_v2  ;;  %v14277_v2 = vld [vmem:[%s14845_s23 + $0x2714] ss:$8 sps:$4 sm:$0xff]  }
 0x52b   : > { %9416 = vmatpush1.bf16.msra.mxu1 %v14186_v34  ;;  %v2190_v34 = vcombine.high %v16388_v63, %v16388_v63  ;;  %v14278_v63 = vld [vmem:[%s14845_s23 + $0x1320] ss:$8 sps:$4 sm:$0xff]  }
 0x52c   : > { %10236 = vmatpush1.bf16.msra.mxu0 %v14189_v55  ;;  %9417 = vmatprep.subr.bf16.mxu1 %v14194_v9  ;;  %v14283_v55 = vld [vmem:[%s14845_s23 + $0x2724] ss:$8 sps:$4 sm:$0xff]   ;;  %v14281_v9 = vld [vmem:[%s14845_s23 + $0x2720] ss:$8 sps:$4 sm:$0xff]  }
 0x52d   : > { %10237 = vmatprep.subr.bf16.mxu0 %v14197_v13  ;;  %v14286_v13 = vld [vmem:[%s14845_s23 + $0x1334] ss:$8 sps:$4 sm:$0xff]  }
 0x52f   : > { %9418 = vmatpush1.bf16.msra.mxu1 %v14192_v39  ;;  %v14289_v39 = vld [vmem:[%s14845_s23 + $0x2734] ss:$8 sps:$4 sm:$0xff]  }
 0x530   : > { %10238 = vmatpush1.bf16.msra.mxu0 %v14195_v53  ;;  %9419 = vmatprep.subr.bf16.mxu1 %v14200_v59  ;;  %v14284_v53 = vld [vmem:[%s14845_s23 + $0x1330] ss:$8 sps:$4 sm:$0xff]  }
 0x531   : > { %10239 = vmatprep.subr.bf16.mxu0 %v14203_v57  ;;  %v14287_v59 = vld [vmem:[%s14845_s23 + $0x2730] ss:$8 sps:$4 sm:$0xff]   ;;  %v14292_v57 = vld [vmem:[%s14845_s23 + $0x1344] ss:$8 sps:$4 sm:$0xff]  }
 0x533   : > { %9420 = vmatpush1.bf16.msra.mxu1 %v14198_v27  ;;  %v14295_v27 = vld [vmem:[%s14845_s23 + $0x2744] ss:$8 sps:$4 sm:$0xff]  }
 0x534   : > { %10240 = vmatpush1.bf16.msra.mxu0 %v14201_v28  ;;  %9421 = vmatprep.subr.bf16.mxu1 %v14206_v29  ;;  %v14290_v28 = vld [vmem:[%s14845_s23 + $0x1340] ss:$8 sps:$4 sm:$0xff]  }
 0x535   : > { %10241 = vmatprep.subr.bf16.mxu0 %v14209_v30  ;;  %v14293_v29 = vld [vmem:[%s14845_s23 + $0x2740] ss:$8 sps:$4 sm:$0xff]   ;;  %v14298_v30 = vld [vmem:[%s14845_s23 + $0x1354] ss:$8 sps:$4 sm:$0xff]  }
 0x537   : > { %9422 = vmatpush1.bf16.msra.mxu1 %v14204_v18  ;;  %v14301_v18 = vld [vmem:[%s14845_s23 + $0x2754] ss:$8 sps:$4 sm:$0xff]  }
 0x538   : > { %10242 = vmatpush1.bf16.msra.mxu0 %v14207_v38  ;;  %9423 = vmatprep.subr.bf16.mxu1 %v14212_v60  ;;  %v14296_v38 = vld [vmem:[%s14845_s23 + $0x1350] ss:$8 sps:$4 sm:$0xff]  }
 0x539   : > { %10243 = vmatprep.subr.bf16.mxu0 %v14215_v43  ;;  %v14299_v60 = vld [vmem:[%s14845_s23 + $0x2750] ss:$8 sps:$4 sm:$0xff]   ;;  %v14304_v43 = vld [vmem:[%s14845_s23 + $0x1364] ss:$8 sps:$4 sm:$0xff]  }
 0x53b   : > { %9424 = vmatpush1.bf16.msra.mxu1 %v14210_v24  ;;  %v14307_v24 = vld [vmem:[%s14845_s23 + $0x2764] ss:$8 sps:$4 sm:$0xff]  }
 0x53c   : > { %10244 = vmatpush1.bf16.msra.mxu0 %v14213_v25  ;;  %9425 = vmatprep.subr.bf16.mxu1 %v14218_v16  ;;  %v14302_v25 = vld [vmem:[%s14845_s23 + $0x1360] ss:$8 sps:$4 sm:$0xff]  }
 0x53d   : > { %10245 = vmatprep.subr.bf16.mxu0 %v14221_v15  ;;  %v14305_v16 = vld [vmem:[%s14845_s23 + $0x2760] ss:$8 sps:$4 sm:$0xff]   ;;  %v14310_v15 = vld [vmem:[%s14845_s23 + $0x1374] ss:$8 sps:$4 sm:$0xff]  }
 0x53f   : > { %9426 = vmatpush1.bf16.msra.mxu1 %v14216_v19  ;;  %v14313_v19 = vld [vmem:[%s14845_s23 + $0x2774] ss:$8 sps:$4 sm:$0xff]  }
 0x540   : > { %10246 = vmatpush1.bf16.msra.mxu0 %v14219_v46  ;;  %9427 = vmatprep.subr.bf16.mxu1 %v14224_v26  ;;  %v14308_v46 = vld [vmem:[%s14845_s23 + $0x1370] ss:$8 sps:$4 sm:$0xff]  }
 0x541   : > { %10247 = vmatprep.subr.bf16.mxu0 %v14227_v47  ;;  %v14311_v26 = vld [vmem:[%s14845_s23 + $0x2770] ss:$8 sps:$4 sm:$0xff]   ;;  %v14316_v47 = vld [vmem:[%s14845_s23 + $0x1384] ss:$8 sps:$4 sm:$0xff]  }
 0x543   : > { %9428 = vmatpush1.bf16.msra.mxu1 %v14222_v37  ;;  %v14319_v37 = vld [vmem:[%s14845_s23 + $0x2784] ss:$8 sps:$4 sm:$0xff]  }
 0x544   : > { %10248 = vmatpush1.bf16.msra.mxu0 %v14225_v48  ;;  %9429 = vmatprep.subr.bf16.mxu1 %v14230_v17  ;;  %v14314_v48 = vld [vmem:[%s14845_s23 + $0x1380] ss:$8 sps:$4 sm:$0xff]  }
 0x545   : > { %10249 = vmatprep.subr.bf16.mxu0 %v14233_v49  ;;  %v14317_v17 = vld [vmem:[%s14845_s23 + $0x2780] ss:$8 sps:$4 sm:$0xff]   ;;  %v14322_v49 = vld [vmem:[%s14845_s23 + $0x1394] ss:$8 sps:$4 sm:$0xff]  }
 0x547   : > { %9430 = vmatpush1.bf16.msra.mxu1 %v14228_v36  ;;  %v14325_v36 = vld [vmem:[%s14845_s23 + $0x2794] ss:$8 sps:$4 sm:$0xff]  }
 0x548   : > { %10250 = vmatpush1.bf16.msra.mxu0 %v14231_v52  ;;  %9431 = vmatprep.subr.bf16.mxu1 %v14236_v61  ;;  %v14320_v52 = vld [vmem:[%s14845_s23 + $0x1390] ss:$8 sps:$4 sm:$0xff]  }
 0x549   : > { %10251 = vmatprep.subr.bf16.mxu0 %v14239_v62  ;;  %v14323_v61 = vld [vmem:[%s14845_s23 + $0x2790] ss:$8 sps:$4 sm:$0xff]   ;;  %v14328_v62 = vld [vmem:[%s14845_s23 + $0x13a4] ss:$8 sps:$4 sm:$0xff]  }
 0x54b   : > { %9432 = vmatpush1.bf16.msra.mxu1 %v14234_v45  ;;  %v14331_v45 = vld [vmem:[%s14845_s23 + $0x27a4] ss:$8 sps:$4 sm:$0xff]  }
 0x54c   : > { %10252 = vmatpush1.bf16.msra.mxu0 %v14237_v1  ;;  %9433 = vmatprep.subr.bf16.mxu1 %v14242_v54  ;;  %v14326_v1 = vld [vmem:[%s14845_s23 + $0x13a0] ss:$8 sps:$4 sm:$0xff]  }
 0x54d   : > { %10253 = vmatprep.subr.bf16.mxu0 %v14245_v56  ;;  %v14329_v54 = vld [vmem:[%s14845_s23 + $0x27a0] ss:$8 sps:$4 sm:$0xff]   ;;  %v14334_v56 = vld [vmem:[%s14845_s23 + $0x13b4] ss:$8 sps:$4 sm:$0xff]  }
 0x54f   : > { %9434 = vmatpush1.bf16.msra.mxu1 %v14240_v41  ;;  %v14337_v41 = vld [vmem:[%s14845_s23 + $0x27b4] ss:$8 sps:$4 sm:$0xff]  }
 0x550   : > { %10254 = vmatpush1.bf16.msra.mxu0 %v14243_v33  ;;  %9435 = vmatprep.subr.bf16.mxu1 %v14248_v20  ;;  %v14332_v33 = vld [vmem:[%s14845_s23 + $0x13b0] ss:$8 sps:$4 sm:$0xff]  }
 0x551   : > { %10255 = vmatprep.subr.bf16.mxu0 %v14251_v32  ;;  %v14335_v20 = vld [vmem:[%s14845_s23 + $0x27b0] ss:$8 sps:$4 sm:$0xff]   ;;  %v14340_v32 = vld [vmem:[%s14845_s23 + $0x13c4] ss:$8 sps:$4 sm:$0xff]  }
 0x553   : > { %9436 = vmatpush1.bf16.msra.mxu1 %v14246_v51  ;;  %v14343_v51 = vld [vmem:[%s14845_s23 + $0x27c4] ss:$8 sps:$4 sm:$0xff]  }
 0x554   : > { %10256 = vmatpush1.bf16.msra.mxu0 %v14249_v58  ;;  %9437 = vmatprep.subr.bf16.mxu1 %v14254_v35  ;;  %v14338_v58 = vld [vmem:[%s14845_s23 + $0x13c0] ss:$8 sps:$4 sm:$0xff]  }
 0x555   : > { %10257 = vmatprep.subr.bf16.mxu0 %v14257_v4  ;;  %v14341_v35 = vld [vmem:[%s14845_s23 + $0x27c0] ss:$8 sps:$4 sm:$0xff]   ;;  %v14346_v4 = vld [vmem:[%s14845_s23 + $0x13d4] ss:$8 sps:$4 sm:$0xff]  }
 0x557   : > { %9438 = vmatpush1.bf16.msra.mxu1 %v14252_v5  ;;  %v14349_v5 = vld [vmem:[%s14845_s23 + $0x27d4] ss:$8 sps:$4 sm:$0xff]  }
 0x558   : > { %10258 = vmatpush1.bf16.msra.mxu0 %v14255_v6  ;;  %9439 = vmatprep.subr.bf16.mxu1 %v14260_v7  ;;  %v14344_v6 = vld [vmem:[%s14845_s23 + $0x13d0] ss:$8 sps:$4 sm:$0xff]  }
 0x559   : > { %10259 = vmatprep.subr.bf16.mxu0 %v14263_v8  ;;  %v14347_v7 = vld [vmem:[%s14845_s23 + $0x27d0] ss:$8 sps:$4 sm:$0xff]   ;;  %v14352_v8 = vld [vmem:[%s14845_s23 + $0x13e4] ss:$8 sps:$4 sm:$0xff]  }
 0x55b   : > { %9440 = vmatpush1.bf16.msra.mxu1 %v14258_v40  ;;  %v14355_v40 = vld [vmem:[%s14845_s23 + $0x27e4] ss:$8 sps:$4 sm:$0xff]  }
 0x55c   : > { %10260 = vmatpush1.bf16.msra.mxu0 %v14261_v10  ;;  %9450 = vmatprep.subr.bf16.mxu1 %v14267_v0  ;;  %v14350_v10 = vld [vmem:[%s14845_s23 + $0x13e0] ss:$8 sps:$4 sm:$0xff]  }
 0x55d   : > { %10270 = vmatprep.subr.bf16.mxu0 %v14271_v12  ;;  %v14353_v0 = vld [vmem:[%s14845_s23 + $0x27e0] ss:$8 sps:$4 sm:$0xff]   ;;  %v14358_v12 = vld [vmem:[%s14845_s23 + $0x13f4] ss:$8 sps:$4 sm:$0xff]  }
 0x55e   : > { %9442 = vmatmul.mubr.bf16.vlgmr.msra.gmra.mrb[0].mxu1 %v16454_v21 }
 0x55f   : > { %10262 = vmatmul.mubr.bf16.vlgmr.msra.gmra.mrb[0].mxu0 %v16458_v22  ;;  %9451 = vmatpush1.bf16.msra.mxu1 %v14265_v42  ;;  %v14361_v42 = vld [vmem:[%s14845_s23 + $0x27f4] ss:$8 sps:$4 sm:$0xff]  }
 0x560   : > { %10271 = vmatpush1.bf16.msra.mxu0 %v14269_v23  ;;  %9452 = vmatprep.subr.bf16.mxu1 %v14274_v14  ;;  %v14356_v23 = vld [vmem:[%s14845_s23 + $0x13f0] ss:$8 sps:$4 sm:$0xff]  }
 0x561   : > { %10272 = vmatprep.subr.bf16.mxu0 %v14277_v2  ;;  %9482 = vmatprep.mubr.bf16.mxu1 %v1945_v31  ;;  %v14359_v14 = vld [vmem:[%s14845_s23 + $0x27f0] ss:$8 sps:$4 sm:$0xff]   ;;  %v1943_v2 = vcombine.high %v16454_v21, %v16454_v21  ;;  %v2188_v31 = vcombine.high %v16458_v22, %v16458_v22 }
 0x562   : > { %10302 = vmatprep.mubr.bf16.mxu0 %v2190_v34  ;;  %v14595_v34 = vmov 1983009808  }
 0x563   : > { %9453 = vmatpush1.bf16.msra.mxu1 %v14272_v50  ;;  %v10315_v50 = vunpack.c.l.s4 %v14595_v34 }
 0x564   : > { %10273 = vmatpush1.bf16.msra.mxu0 %v14275_v3  ;;  %9454 = vmatprep.subr.bf16.mxu1 %v14280_v11 }
 0x565   : > { %10274 = vmatprep.subr.bf16.mxu0 %v14283_v55  ;;  %v10316_v3 = vunpack.c.0.s8 %v10315_v50 }
 0x567   : > { %9455 = vmatpush1.bf16.msra.mxu1 %v14278_v63 }
 0x568   : > { %10275 = vmatpush1.bf16.msra.mxu0 %v14281_v9  ;;  %9456 = vmatprep.subr.bf16.mxu1 %v14286_v13 }
 0x569   : > { %10276 = vmatprep.subr.bf16.mxu0 %v14289_v39 }
 0x56b   : > { %9457 = vmatpush1.bf16.msra.mxu1 %v14284_v53  ;;  %v16533_v53 = vsub.s32 %v10316_v3, %v14901_v44  ;;  %v10360_v3 = vld [vmem:[%s16718_s3 + $0x50] sm:$0xff] (!%p12039_p11) }
 0x56c   : > { %10277 = vmatpush1.bf16.msra.mxu0 %v14287_v59  ;;  %9458 = vmatprep.subr.bf16.mxu1 %v14292_v57 }
 0x56d   : > { %10278 = vmatprep.subr.bf16.mxu0 %v14295_v27 }
 0x56f   : > { %9459 = vmatpush1.bf16.msra.mxu1 %v14290_v28  ;;  %v410_v28 = vld [vmem:[#allocation2] sm:$0xf] }
 0x570   : > { %10279 = vmatpush1.bf16.msra.mxu0 %v14293_v29  ;;  %9460 = vmatprep.subr.bf16.mxu1 %v14298_v30 }
 0x571   : > { %10280 = vmatprep.subr.bf16.mxu0 %v14301_v18  ;;  %v10366_v18 = vld [vmem:[%s16718_s3 + $0x80] sm:$0xff] (!%p12039_p11) }
 0x573   : > { %9461 = vmatpush1.bf16.msra.mxu1 %v14296_v38  ;;  %v10367_v38 = vld [vmem:[%s16718_s3 + $0x88] sm:$0xff] (!%p12039_p11) }
 0x574   : > { %10281 = vmatpush1.bf16.msra.mxu0 %v14299_v60  ;;  %9462 = vmatprep.subr.bf16.mxu1 %v14304_v43  ;;  %v10350_v60 = vld [vmem:[%s16718_s3] sm:$0xff] (!%p12039_p11)  ;;  %v12131_v43 = vpack.c.bf16 (!%p12039_p11), %v10367_v38, %v10366_v18  ;;  %v10364_v38 = vld [vmem:[%s16718_s3 + $0x70] sm:$0xff] (!%p12039_p11) }
 0x575   : > { %10282 = vmatprep.subr.bf16.mxu0 %v14307_v24  ;;  %v10351_v24 = vld [vmem:[%s16718_s3 + $0x8] sm:$0xff] (!%p12039_p11) }
 0x577   : > { %9463 = vmatpush1.bf16.msra.mxu1 %v14302_v25  ;;  %v10368_v25 = vld [vmem:[%s16718_s3 + $0x90] sm:$0xff] (!%p12039_p11) }
 0x578   : > { %10283 = vmatpush1.bf16.msra.mxu0 %v14305_v16  ;;  %9464 = vmatprep.subr.bf16.mxu1 %v14310_v15  ;;  %v10369_v16 = vld [vmem:[%s16718_s3 + $0x98] sm:$0xff] (!%p12039_p11)  ;;  %v14596_v15 = vmov (!%p12039_p11), 0.0|0.0  }
 0x579   : > { %10284 = vmatprep.subr.bf16.mxu0 %v14313_v19  ;;  %v12133_v19 = vpack.c.bf16 (!%p12039_p11), %v10351_v24, %v10350_v60  ;;  %v10365_v60 = vld [vmem:[%s16718_s3 + $0x78] sm:$0xff] (!%p12039_p11)  ;;  %v10476_v24 = vld [vmem:[%s16720_s5 + $0x28] sm:$0xff] (!%p12039_p11) }
 0x57b   : > { %9465 = vmatpush1.bf16.msra.mxu1 %v14308_v46  ;;  %v12135_v46 = vpack.c.bf16 (!%p12039_p11), %v10369_v16, %v10368_v25  ;;  %v10477_v16 = vld [vmem:[%s16720_s5 + $0x30] sm:$0xff] (!%p12039_p11) }
 0x57c   : > { %10285 = vmatpush1.bf16.msra.mxu0 %v14311_v26  ;;  %9466 = vmatprep.subr.bf16.mxu1 %v14316_v47  ;;  %v10352_v26 = vld [vmem:[%s16718_s3 + $0x10] sm:$0xff] (!%p12039_p11)  ;;  %v10353_v47 = vld [vmem:[%s16718_s3 + $0x18] sm:$0xff] (!%p12039_p11) }
 0x57d   : > { %10286 = vmatprep.subr.bf16.mxu0 %v14319_v37  ;;  %v10370_v37 = vld [vmem:[%s16718_s3 + $0xa0] sm:$0xff] (!%p12039_p11) }
 0x57f   : > { %9467 = vmatpush1.bf16.msra.mxu1 %v14314_v48  ;;  %v10371_v48 = vld [vmem:[%s16718_s3 + $0xa8] sm:$0xff] (!%p12039_p11) }
 0x580   : > { %10287 = vmatpush1.bf16.msra.mxu0 %v14317_v17  ;;  %9468 = vmatprep.subr.bf16.mxu1 %v14322_v49  ;;  %v12137_v17 = vpack.c.bf16 (!%p12039_p11), %v10353_v47, %v10352_v26  ;;  %v12139_v49 = vpack.c.bf16 (!%p12039_p11), %v10371_v48, %v10370_v37  ;;  %v14598_v26 = vmov (!%p12039_p11), 0.0   ;;  %v12040_v37 = vld [vmem:[#allocation8] ss:$0 sm:$0xff] (!%p12039_p11) }
 0x581   : > { %10288 = vmatprep.subr.bf16.mxu0 %v14325_v36  ;;  %v10354_v36 = vld [vmem:[%s16718_s3 + $0x20] sm:$0xff] (!%p12039_p11) }
 0x583   : > { %9469 = vmatpush1.bf16.msra.mxu1 %v14320_v52  ;;  %v10355_v52 = vld [vmem:[%s16718_s3 + $0x28] sm:$0xff] (!%p12039_p11) }
 0x584   : > { %10289 = vmatpush1.bf16.msra.mxu0 %v14323_v61  ;;  %9470 = vmatprep.subr.bf16.mxu1 %v14328_v62  ;;  %v10372_v61 = vld [vmem:[%s16718_s3 + $0xb0] sm:$0xff] (!%p12039_p11)  ;;  %v10373_v62 = vld [vmem:[%s16718_s3 + $0xb8] sm:$0xff] (!%p12039_p11) }
 0x585   : > { %10290 = vmatprep.subr.bf16.mxu0 %v14331_v45  ;;  %v12141_v45 = vpack.c.bf16 (!%p12039_p11), %v10355_v52, %v10354_v36  ;;  %v10562_v36 = vld [vmem:[%s16722_s7 + $0x8] sm:$0xff] (!%p12039_p11) }
 0x587   : > { %9471 = vmatpush1.bf16.msra.mxu1 %v14326_v1  ;;  %v10333_v1 = vsub.s32 (!%p12039_p11), 0, %v14901_v44 }
 0x588   : > { %10291 = vmatpush1.bf16.msra.mxu0 %v14329_v54  ;;  %9472 = vmatprep.subr.bf16.mxu1 %v14334_v56  ;;  %v10337_v54 = vsub.s32 (!%p12039_p11), 1, %v14901_v44  ;;  %v12143_v56 = vpack.c.bf16 (!%p12039_p11), %v10373_v62, %v10372_v61  ;;  %v10471_v44 = vld [vmem:[%s16720_s5] sm:$0xff] (!%p12039_p11) }
 0x589   : > { %10292 = vmatprep.subr.bf16.mxu0 %v14337_v41  ;;  %v10356_v41 = vld [vmem:[%s16718_s3 + $0x30] sm:$0xff] (!%p12039_p11) }
 0x58b   : > { %9473 = vmatpush1.bf16.msra.mxu1 %v14332_v33  ;;  %v10357_v33 = vld [vmem:[%s16718_s3 + $0x38] sm:$0xff] (!%p12039_p11) }
 0x58c   : > { %10293 = vmatpush1.bf16.msra.mxu0 %v14335_v20  ;;  %9474 = vmatprep.subr.bf16.mxu1 %v14340_v32  ;;  %v10374_v20 = vld [vmem:[%s16718_s3 + $0xc0] sm:$0xff] (!%p12039_p11)  ;;  %v10375_v32 = vld [vmem:[%s16718_s3 + $0xc8] sm:$0xff] (!%p12039_p11) }
 0x58d   : > { %10294 = vmatprep.subr.bf16.mxu0 %v14343_v51  ;;  %v10329_v51 = vld [vmem:[#allocation6] sm:$0x3] (!%p12039_p11) }
 0x58f   : > { %9475 = vmatpush1.bf16.msra.mxu1 %v14338_v58  ;;  %v10472_v58 = vld [vmem:[%s16720_s5 + $0x8] sm:$0xff] (!%p12039_p11) }
 0x590   : > { %10295 = vmatpush1.bf16.msra.mxu0 %v14341_v35  ;;  %9476 = vmatprep.subr.bf16.mxu1 %v14346_v4  ;;  %v12145_v35 = vpack.c.bf16 (!%p12039_p11), %v10357_v33, %v10356_v41  ;;  %v10334_v4 = vrot.slane (!%p12039_p11), %v10329_v51, %v10333_v1  ;;  %v10564_v1 = vld [vmem:[%s16722_s7 + $0x18] sm:$0xff] (!%p12039_p11) }
 0x591   : > { %10296 = vmatprep.subr.bf16.mxu0 %v14349_v5  ;;  %v10338_v5 = vrot.slane (!%p12039_p11), %v10329_v51, %v10337_v54  ;;  %v12043_v51 = vld [vmem:[#allocation11] ss:$0 sm:$0xff] (!%p12039_p11) }
 0x593   : > { %9477 = vmatpush1.bf16.msra.mxu1 %v14344_v6  ;;  %v12164_v6 = vpack.c.bf16 (!%p12039_p11), %v10472_v58, %v10471_v44 }
 0x594   : > { %10297 = vmatpush1.bf16.msra.mxu0 %v14347_v7  ;;  %9478 = vmatprep.subr.bf16.mxu1 %v14352_v8  ;;  %v10473_v7 = vld [vmem:[%s16720_s5 + $0x10] sm:$0xff] (!%p12039_p11)  ;;  %v10474_v8 = vld [vmem:[%s16720_s5 + $0x18] sm:$0xff] (!%p12039_p11) }
 0x595   : > { %10298 = vmatprep.subr.bf16.mxu0 %v14355_v40  ;;  %v12147_v40 = vpack.c.bf16 (!%p12039_p11), %v10375_v32, %v10374_v20 }
 0x597   : > { %9479 = vmatpush1.bf16.msra.mxu1 %v14350_v10  ;;  %v10358_v10 = vld [vmem:[%s16718_s3 + $0x40] sm:$0xff] (!%p12039_p11) }
 0x598   : > { %10299 = vmatpush1.bf16.msra.mxu0 %v14353_v0  ;;  %9480 = vmatprep.subr.bf16.mxu1 %v14358_v12  ;;  %v10359_v0 = vld [vmem:[%s16718_s3 + $0x48] sm:$0xff] (!%p12039_p11)  ;;  %v10376_v12 = vld [vmem:[%s16718_s3 + $0xd0] sm:$0xff] (!%p12039_p11) }
 0x599   : > { %10300 = vmatprep.subr.bf16.mxu0 %v14361_v42  ;;  %v10377_v42 = vld [vmem:[%s16718_s3 + $0xd8] sm:$0xff] (!%p12039_p11) }
 0x59a   : > { %v12151_v50 = vpack.c.bf16 (!%p12039_p11), %v10377_v42, %v10376_v12 }
 0x59b   : > { %9481 = vmatpush1.bf16.msra.mxu1 %v14356_v23  ;;  %v10339_v23 = vcombine.low (!%p12039_p11), %v10334_v4, %v10338_v5 }
 0x59c   : > { %10301 = vmatpush1.bf16.msra.mxu0 %v14359_v14  ;;  %12163 = vmatprep.subr.bf16.mxu1 (!%p12039_p11), %v14596_v15  ;;  %v12167_v14 = vpack.c.bf16 (!%p12039_p11), %v10474_v8, %v10473_v7 }
 0x59d   : > { %12132 = vmatprep.subr.bf16.mxu0 (!%p12039_p11), %v12131_v43  ;;  %v10346_v34 = vrot.slane (!%p12039_p11), %v10339_v23, %v16533_v53  ;;  %v12161_v43 = vpack.c.bf16 (!%p12039_p11), %v10365_v60, %v10364_v38 }
 0x59e   : > { %9483 = vmatmul.mubr.bf16.vlgmr.msra.gmra.mrb[0].mxu1 %v1943_v2 }
 0x59f   : > { %10303 = vmatmul.mubr.bf16.vlgmr.msra.gmra.mrb[0].mxu0 %v2188_v31  ;;  %12165 = vmatpush3.bf16.msra.mxu1 (!%p12039_p11), %v12164_v6  ;;  %v12149_v31 = vpack.c.bf16 (!%p12039_p11), %v10359_v0, %v10358_v10 }
 0x5a0   : > { %12134 = vmatpush3.bf16.msra.mxu0 (!%p12039_p11), %v12133_v19  ;;  %12166 = vmatprep.subr.bf16.mxu1 (!%p12039_p11), %v14596_v15  ;;  %v10478_v19 = vld [vmem:[%s16720_s5 + $0x38] sm:$0xff] (!%p12039_p11) }
 0x5a1   : > { %12136 = vmatprep.subr.bf16.mxu0 (!%p12039_p11), %v12135_v46  ;;  %v12173_v46 = vpack.c.bf16 (!%p12039_p11), %v10478_v19, %v10477_v16  ;;  %12117 = vmatprep.mubr.msk.f32.mxu1 (!%p12039_p11), %vm14597_vm0, %v14598_v26 }
 0x5a3   : > { %12168 = vmatpush3.bf16.msra.mxu1 (!%p12039_p11), %v12167_v14 }
 0x5a4   : > { %12138 = vmatpush3.bf16.msra.mxu0 (!%p12039_p11), %v12137_v17  ;;  %12169 = vmatprep.subr.bf16.mxu1 (!%p12039_p11), %v14596_v15 }
 0x5a5   : > { %12140 = vmatprep.subr.bf16.mxu0 (!%p12039_p11), %v12139_v49  ;;  %v10561_v49 = vld [vmem:[%s16722_s7] sm:$0xff] (!%p12039_p11) }
 0x5a6   : > { %v12176_v61 = vpack.c.bf16 (!%p12039_p11), %v10562_v36, %v10561_v49 }
 0x5a8   : > { %12142 = vmatpush3.bf16.msra.mxu0 (!%p12039_p11), %v12141_v45  ;;  %v10563_v45 = vld [vmem:[%s16722_s7 + $0x10] sm:$0xff] (!%p12039_p11) }
 0x5a9   : > { %12144 = vmatprep.subr.bf16.mxu0 (!%p12039_p11), %v12143_v56  ;;  %v12179_v54 = vpack.c.bf16 (!%p12039_p11), %v10564_v1, %v10563_v45  ;;  %v12041_v56 = vld [vmem:[#allocation9] ss:$0 sm:$0xff] (!%p12039_p11) }
 0x5ac   : > { %12146 = vmatpush3.bf16.msra.mxu0 (!%p12039_p11), %v12145_v35 }
 0x5ad   : > { %12148 = vmatprep.subr.bf16.mxu0 (!%p12039_p11), %v12147_v40 }
 0x5b0   : > { %12150 = vmatpush3.bf16.msra.mxu0 (!%p12039_p11), %v12149_v31 }
 0x5b1   : > { %12152 = vmatprep.subr.bf16.mxu0 (!%p12039_p11), %v12151_v50 }
 0x671   : > { %v9484_v11 = vpop.f32.mrb[0].mxu1 }
 0x672   : > { %v10304_v55 = vpop.f32.mrb[0].mxu0  ;;  %v9486_v9 = vpop.f32.mrb[1].mxu1 }
 0x673   : > { %v12181_v63 = vadd.f32 %v10304_v55, %v9484_v11  ;;  %v10306_v13 = vpop.f32.mrb[1].mxu0  ;;  %v9488_v21 = vpop.f32.mrb[2].mxu1  ;;  %v10361_v11 = vld [vmem:[%s16718_s3 + $0x58] sm:$0xff] (!%p12039_p11)  ;;  %v10378_v55 = vld [vmem:[%s16718_s3 + $0xe0] sm:$0xff] (!%p12039_p11) }
 0x674   : > { %v12182_v39 = vadd.f32 %v10306_v13, %v9486_v9  ;;  %v10308_v59 = vpop.f32.mrb[2].mxu0  ;;  %v9489_v57 = vpop.f32.mrb[3].mxu1  ;;  %v12153_v13 = vpack.c.bf16 (!%p12039_p11), %v10361_v11, %v10360_v3 }
 0x675   : > { %v10309_v22 = vpop.f32.mrb[3].mxu0  ;;  %v10362_v59 = vld [vmem:[%s16718_s3 + $0x60] sm:$0xff] (!%p12039_p11)  ;;  %v10363_v57 = vld [vmem:[%s16718_s3 + $0x68] sm:$0xff] (!%p12039_p11) }
 0x676   : > { %v10313_v27 = vcombine.low %v12181_v63, %v12182_v39  ;;  %10327 = sbr.rel (%p12039_p11) target bundleno = 2327 (0x917), region = 84  ;;  %v10379_v63 = vld [vmem:[%s16718_s3 + $0xe8] sm:$0xff] (!%p12039_p11)  ;;  %v10380_v22 = vld [vmem:[%s16718_s3 + $0xf0] sm:$0xff] (!%p12039_p11)  ;;  %12154 = vmatpush3.bf16.msra.mxu0 (!%p12039_p11), %v12153_v13 }
 0x677   : > { %v12155_v21 = vpack.c.bf16 (!%p12039_p11), %v10379_v63, %v10378_v55 }
 0x678   : > { %v10320_v29 = vrot.slane %v10313_v27, %v16533_v53  ;;  %v10381_v27 = vld [vmem:[%s16718_s3 + $0xf8] sm:$0xff] (!%p12039_p11) }
 0x679   : > { %12156 = vmatprep.subr.bf16.mxu0 (!%p12039_p11), %v12155_v21  ;;  %v12159_v18 = vpack.c.bf16 (!%p12039_p11), %v10381_v27, %v10380_v22 }
 0x67a   : > { %v10322_v30 = vadd.f32 %v10320_v29, %v410_v28  ;;  %v12157_v29 = vpack.c.bf16 (!%p12039_p11), %v10363_v57, %v10362_v59 }
 0x67c   : > { %10323 = vst [vmem:[#allocation2] sm:$0xf] %v10322_v30  ;;  %12158 = vmatpush3.bf16.msra.mxu0 (!%p12039_p11), %v12157_v29 }
 0x67d   : > { %12160 = vmatprep.subr.bf16.mxu0 %v12159_v18 }
 0x680   : > { %12162 = vmatpush3.bf16.msra.mxu0 %v12161_v43 }
 0x683   : > { %v10328_v2 = vld [vmem:[#allocation2] sm:$0xf] }
 0x684   : > { %v10348_v9 = vadd.f32 %v10346_v34, %v10328_v2 }
 0x686   : > { %v10349_v39 = vmax.f32 %v10348_v9, 0.0 }
 0x688   : > { %v10396_v28 = vrot.slane %v10349_v39, %v16533_v53  ;;  %v10475_v53 = vld [vmem:[%s16720_s5 + $0x20] sm:$0xff] }
 0x689   : > { %v12170_v25 = vpack.c.bf16 %v10476_v24, %v10475_v53 }
 0x68a   : > { %v10397_v30 = vcombine.high %v10396_v28, %v10396_v28 }
 0x68b   : > { %12171 = vmatpush3.bf16.msra.mxu1 %v12170_v25 }
 0x68c   : > { %10464 = vmatprep.mubr.f32.mxu0 %v10397_v30  ;;  %12172 = vmatprep.subr.bf16.mxu1 %v14596_v15 }
 0x68d   : > { %10465 = vmatmul.mubr.f32.vlgmr.msra.gmra.mrb[0].mxu0 %v10396_v28 }
 0x68f   : > { %12174 = vmatpush3.bf16.msra.mxu1 %v12173_v46 }
 0x690   : > { %12175 = vmatprep.subr.bf16.mxu1 %v14596_v15 }
 0x760   : > { %v12084_v47 = vpop.f32.mrb[0].mxu0 }
 0x761   : > { %v12085_v48 = vpop.f32.mrb[1].mxu0 }
 0x762   : > { %v12086_v17 = vadd.f32 %v12085_v48, %v12084_v47 }
 0x764   : > { %v10467_v52 = vadd.f32 %v12086_v17, %v12040_v37 }
 0x766   : > { %v10470_v62 = vmax.f32 %v10467_v52, 0.0 }
 0x768   : > { %12118 = vmatmul.mubr.msk.f32.vlgmr.msra.gmra.mrb[0].mxu1 %vm10486_vm1, %v10470_v62 }
 0x769   : > { %12177 = vmatpush3.bf16.msra.mxu1 %v12176_v61  ;;  %12128 = vmatprep.mubr.msk.f32.mxu1 %vm14597_vm0, %v14598_v26 }
 0x76a   : > { %12178 = vmatprep.subr.bf16.mxu1 %v14596_v15 }
 0x76d   : > { %12180 = vmatpush3.bf16.msra.mxu1 %v12179_v54 }
 0x83b   : > { %v10556_v41 = vpop.f32.mrb[0].mxu1 }
 0x83c   : > { %v10557_v33 = vadd.f32 %v12041_v56, %v10556_v41  ;;  %v12119_v20 = vpop.f32.mrb[1].mxu1 }
 0x83e   : > { %v10560_v32 = vmax.f32 %v10557_v33, 0.0 }
 0x840   : > { %12129 = vmatmul.mubr.msk.f32.vlgmr.msra.gmra.mrb[2].mxu1 %vm10572_vm2, %v10560_v32 }
 0x913   : > { %v10642_v44 = vpop.f32.mrb[2].mxu1 }
 0x914   : > { %v10643_v15 = vadd.f32 %v12043_v51, %v10642_v44  ;;  %v12130_v58 = vpop.f32.mrb[3].mxu1 }
 0x916   : > { %10647 = vst.msk [vmem:[#allocation12] sm:$0x3] %vm10646_vm3, %v10643_v15 }
 0x917 PF: > { %p12385_p1 = scmp.eq.s32.totalorder %s14669_s13, 2  ;;  %s14599_s24 = smov [#allocation12]  }
 0x918   : > { %s10655_s27 = sshll.u32 %s14599_s24, 4  ;;  %s10656_s27 = int_to_ptr.vmem [resolvable:$true] %s10655_s27 }
 0x919   : > { %s14512_s23 = scalar_lea.vmem %s10656_s27, 32  ;;  %p14519_p0 = scmp.lt.s32.totalorder %s10656_s27, %s10656_s27 }
 0x91a   : > { %p14513_p4 = scmp.ne.s32.totalorder %s10656_s27, %s14512_s23  ;;  %p14520_p2 = scmp.lt.s32.totalorder %s14512_s23, %s14512_s23 }
 0x91c   : > { %p14514_p8 = pnand %p14513_p4, %p12385_p1  ;;  %p14521_p6 = por %p14520_p2, %p14519_p0 }
 0x91e   : > { %p14515_p12 = pneg %p14514_p8 }
 0x920   : > { %p14522_p13 = pnand %p14521_p6, %p14515_p12 }
 0x922   : > { %14525 = shalt.err (!%p14522_p13)
}
 0x923   : > { %s14526_s29 = scalar_lea.hbm %s16724_s9, 32 }
 0x924   : > { %p14527_p3 = scmp.ne.s32.totalorder %s16724_s9, %s14526_s29  ;;  %p14532_p10 = scmp.lt.u32.totalorder %s14526_s29, %s16724_s9 }
 0x926   : > { %p14528_p5 = pnand %p14527_p3, %p12385_p1 }
 0x928   : > { %p14529_p7 = pneg %p14528_p5 }
 0x92a   : > { %p14534_p9 = pnand %p14532_p10, %p14529_p7 }
 0x92c   : > { %14537 = shalt.err (!%p14534_p9)
}
 0x92d   : > { %12356 = dma.vmem_to_hbm [thread:$0]  (%p12385_p1), %s10656_s27, 32, %s16724_s9, [#allocation5]  }
 0x92e   : > { %14567 = dma.done.wait (%p12385_p1), [#allocation5], 32  }
 0x92f   : > { %14569 = vsyncadd (%p12385_p1), [#allocation5], 4294967264 }
 0x930 PF: > { %p22_p11 = scmp.ge.s32.totalorder %s14789_s28, 5   ;;  %s16740_s30 = smov %s14576_s10 }
 0x931   : > { %s16741_s10 = smov %s14580_s11  ;;  %s16742_s11 = smov %s14800_s25 }
 0x932   : > { %s16743_s12 = smov %s14789_s28  ;;  %24 = sbr.rel (!%p22_p11) target bundleno = 6 (0x6), region = 118 }
 0x939   :  { %10668 = vsyncpa [#allocation4], 1 }
 0x93a   :  { %10670 = vsyncpa [#allocation4 + $0x1], 1 }
 0x93b   :  { %10671 = vsyncpa [#allocation7], 1 }
 0x93c   :  { %10672 = vsyncpa [#allocation10], 1 }
 0x93d   :  { %10673 = vsyncpa [#allocation5], 1 }
 0x93e   :  { %10675 = vsyncpa [#allocation5 + $0x1], 1 }

</bundles_post_ra>
